<compile_context>
chip_gen: v7x
topology: tpu7x:2x2x1
jax: 0.10.0
libtpu: 0.0.40
codegen_flags: <defaults>
</compile_context>

<pallas_src>
import functools

import numpy as np

import jax
import jax.numpy as jnp
from jax.experimental import pallas as pl
from jax.experimental.pallas import tpu as pltpu

KSIZE = 5
PAD = 2
BN_EPS = 1e-5
LEAKY_SLOPE = 0.01


def _round_up(x, m):
    return (x + m - 1) // m * m


def _geometry(H, W):
    """Flat zero-padded spatial layout used for activations inside the kernel.

    Pixel (y, x) lives at flat lane index  base + y*Wp + x  of a length-L
    vector.  Wp = W + 2*PAD leaves a zero gap between rows (horizontal
    padding); `margin` zero lanes on each side give the vertical padding.
    A conv tap (dy, dx) is then a pure shift by (dy-PAD)*Wp + (dx-PAD).
    """
    Wp = W + 2 * PAD
    margin = PAD * Wp + PAD                 # largest |tap shift|
    win = _round_up(H * Wp, 128)            # lane-aligned compute window
    base = _round_up(margin, 128)           # aligned origin -> aligned writes
    L = _round_up(base + win + margin, 128)
    return Wp, margin, win, base, L


def _psdnet_kernel(x_ref, w_ref, shift_ref, mask_ref, o_ref,
                   a_ref, r_ref, y_ref, *, cp, wp, base, win, chunk,
                   num_layers):
    """Fused 5-layer conv(+BN)+activation forward for one batch element.

    x_ref:     (1, cp, L)               flat zero-padded input image
    w_ref:     (num_layers, cp, 25*cp)  BN-scale-folded conv weights (im2col order)
    shift_ref: (num_layers, cp, 1)      folded bias / BN shift
    mask_ref:  (1, win)                 1.0 at valid pixel lanes, 0.0 elsewhere
    o_ref:     (1, cp, win)             final sigmoid output (window layout)
    a_ref:     (cp, L)        VMEM scratch: activation buffer (padded flat layout)
    r_ref:     (25*cp, chunk) VMEM scratch: im2col matrix for one lane chunk
    y_ref:     (cp, win)      VMEM scratch: current layer's output window
    """
    a_ref[...] = x_ref[0]

    # Static chunking of the lane window (single chunk at small image sizes).
    chunks = []
    off = 0
    while off < win:
        chunks.append((off, min(chunk, win - off)))
        off += chunk

    for layer in range(num_layers):
        last = layer == num_layers - 1
        for (off, ch) in chunks:
            # im2col: each of the 25 taps is a static shifted window of the
            # flat zero-padded activation (lane shifts + aligned sublane
            # stores into the im2col scratch).
            t = 0
            for dy in range(KSIZE):
                for dx in range(KSIZE):
                    s = (dy - PAD) * wp + (dx - PAD)
                    r_ref[t * cp:(t + 1) * cp, :ch] = (
                        a_ref[:, base + s + off:base + s + off + ch])
                    t += 1

            # One MXU matmul per layer/chunk: (cp, 25*cp) @ (25*cp, ch).
            acc = jnp.dot(w_ref[layer], r_ref[:, :ch],
                          preferred_element_type=jnp.float32)   # (cp, ch)
            y = acc + shift_ref[layer]                           # folded shift

            if last:
                o_ref[0, :, off:off + ch] = jax.nn.sigmoid(y)
            else:
                y = jnp.where(y > 0, y, LEAKY_SLOPE * y)         # LeakyReLU
                # Keep gap/margin lanes exactly zero so they continue acting
                # as the conv zero padding for the next layer.
                y_ref[:, off:off + ch] = y * mask_ref[:, off:off + ch]

        if not last:
            a_ref[:, base:base + win] = y_ref[...]


def _fold_layer(w_oihw, b, bn, cp):
    """Fold conv bias + (optional) eval-mode BN into (wf, shift).

    BN scale is multiplied directly into the weights, so the in-kernel
    epilogue is a single add.  wf: (cp, 25*cp) with column index
    (dy*5+dx)*cp + ci, zero-padded in both channel dims.  shift: (cp, 1).
    """
    cout, cin = w_oihw.shape[0], w_oihw.shape[1]
    w = w_oihw.astype(jnp.float32)
    if bn is None:
        shift = b.astype(jnp.float32)
    else:
        gamma, beta, mean, var = bn
        scale = gamma / jnp.sqrt(var + BN_EPS)
        shift = beta + scale * (b - mean)
        w = w * scale[:, None, None, None]
    w = jnp.pad(w, ((0, cp - cout), (0, cp - cin), (0, 0), (0, 0)))
    wf = jnp.transpose(w, (0, 2, 3, 1)).reshape(cp, KSIZE * KSIZE * cp)
    shift = jnp.pad(shift, (0, cp - cout)).reshape(cp, 1)
    return wf, shift


def my_net_forward(x_nchw, layers):
    """x_nchw: (N, 3, H, W) -> (N, out_channel, H, W) (My_Net.forward, BN eval)."""
    N, cin, H, W = x_nchw.shape
    out_channel = layers[-1]["w"].shape[0]
    cp = _round_up(max(cin, out_channel), 8)
    Wp, _margin, win, base, L = _geometry(H, W)
    num_layers = len(layers)

    # Lane-chunk size: cap the im2col scratch at ~4 MiB (multiple of 128).
    max_r_bytes = 4 * 1024 * 1024
    chunk = max(128, (max_r_bytes // (KSIZE * KSIZE * cp * 4)) // 128 * 128)
    chunk = min(chunk, win)

    # Stack folded, pre-flattened params for all layers (one operand each).
    wfs, shifts = [], []
    for i, lyr in enumerate(layers):
        bn = None if i == num_layers - 1 else (
            lyr["gamma"], lyr["beta"], lyr["mean"], lyr["var"])
        wf, sh = _fold_layer(lyr["w"], lyr["b"], bn, cp)
        wfs.append(wf)
        shifts.append(sh)
    w_all = jnp.stack(wfs)          # (5, cp, 25*cp)
    shift_all = jnp.stack(shifts)   # (5, cp, 1)

    # Valid-pixel lane mask over the compute window (compile-time constant).
    p = np.arange(win)
    mask = ((p < H * Wp) & (p % Wp < W)).astype(np.float32).reshape(1, win)
    mask = jnp.asarray(mask)

    # Pack NCHW input into the flat zero-padded lane layout (one-time, tiny).
    x = x_nchw.astype(jnp.float32)
    x = jnp.pad(x, ((0, 0), (0, cp - cin), (0, 0), (0, Wp - W)))      # (N,cp,H,Wp)
    x = x.reshape(N, cp, H * Wp)
    x_flat = jnp.pad(x, ((0, 0), (0, 0), (base, L - base - H * Wp)))  # (N,cp,L)

    kernel = functools.partial(_psdnet_kernel, cp=cp, wp=Wp, base=base,
                               win=win, chunk=chunk, num_layers=num_layers)

    out_flat = pl.pallas_call(
        kernel,
        out_shape=jax.ShapeDtypeStruct((N, cp, win), jnp.float32),
        grid_spec=pltpu.PrefetchScalarGridSpec(
            num_scalar_prefetch=0,
            grid=(N,),
            in_specs=[
                pl.BlockSpec((1, cp, L), lambda n: (n, 0, 0)),
                pl.BlockSpec((num_layers, cp, KSIZE * KSIZE * cp),
                             lambda n: (0, 0, 0)),
                pl.BlockSpec((num_layers, cp, 1), lambda n: (0, 0, 0)),
                pl.BlockSpec((1, win), lambda n: (0, 0)),
            ],
            out_specs=pl.BlockSpec((1, cp, win), lambda n: (n, 0, 0)),
            scratch_shapes=[
                pltpu.VMEM((cp, L), jnp.float32),                        # act buf
                pltpu.VMEM((KSIZE * KSIZE * cp, chunk), jnp.float32),    # im2col
                pltpu.VMEM((cp, win), jnp.float32),                      # layer out
            ],
        ),
        compiler_params=pltpu.CompilerParams(
            dimension_semantics=("parallel",)),
    )(x_flat, w_all, shift_all, mask)

    # Unpack window layout -> NCHW (drop padded channels / gap / tail lanes).
    out = out_flat[:, :out_channel, :H * Wp].reshape(N, out_channel, H, Wp)
    return out[:, :, :, :W]


def init_params(key, out_channel):
    """Deterministic synthetic parameters matching My_Net(out_channel) shapes."""
    layers = []
    cin = 3
    for i in range(5):
        key, kw, kb, kg, kbt, km, kv = jax.random.split(key, 7)
        cout = out_channel
        lyr = {
            "w": 0.1 * jax.random.normal(kw, (cout, cin, KSIZE, KSIZE),
                                         jnp.float32),
            "b": 0.1 * jax.random.normal(kb, (cout,), jnp.float32),
        }
        if i < 4:  # conv1..conv4: BatchNorm2d (eval mode) + LeakyReLU
            lyr["gamma"] = 1.0 + 0.1 * jax.random.normal(kg, (cout,), jnp.float32)
            lyr["beta"] = 0.1 * jax.random.normal(kbt, (cout,), jnp.float32)
            lyr["mean"] = 0.1 * jax.random.normal(km, (cout,), jnp.float32)
            lyr["var"] = jnp.abs(jax.random.normal(kv, (cout,), jnp.float32)) + 0.5
        layers.append(lyr)
        cin = cout
    return layers


def ref_forward(x_nchw, layers):
    """Pure-JAX reference (same math as the PyTorch module, BN eval mode)."""
    y = x_nchw.astype(jnp.float32)
    for i, lyr in enumerate(layers):
        y = jax.lax.conv_general_dilated(
            y, lyr["w"], window_strides=(1, 1),
            padding=((PAD, PAD), (PAD, PAD)),
            dimension_numbers=("NCHW", "OIHW", "NCHW"),
            precision=jax.lax.Precision.HIGHEST)
        y = y + lyr["b"][None, :, None, None]
        if i < len(layers) - 1:
            scale = lyr["gamma"] / jnp.sqrt(lyr["var"] + BN_EPS)
            y = (y - lyr["mean"][None, :, None, None]) * scale[None, :, None, None] \
                + lyr["beta"][None, :, None, None]
            y = jnp.where(y > 0, y, LEAKY_SLOPE * y)
        else:
            y = jax.nn.sigmoid(y)
    return y


if __name__ == "__main__":
    key = jax.random.PRNGKey(0)
    key, kx = jax.random.split(key)

    out_channel = 8
    N, C, H, W = 2, 3, 16, 16
    x = jax.random.normal(kx, (N, C, H, W), jnp.float32)

    layers = init_params(key, out_channel)

    fwd = jax.jit(lambda inp: my_net_forward(inp, layers))
    out = fwd(x)
    jax.block_until_ready(out)

    assert out.shape == (N, out_channel, H, W), out.shape
    ref = ref_forward(x, layers)
    max_err = float(jnp.max(jnp.abs(out - ref)))
    assert max_err < 1e-2, f"mismatch vs reference: max_err={max_err}"
    print("KERNEL_OK")
</pallas_src>

<mosaic_0001>
module attributes {stable_mosaic.version = 11 : i64} {
  func.func @_psdnet_kernel(%arg0: i32, %arg1: memref<1x8x640xf32, #tpu.memory_space<vmem>>, %arg2: memref<5x8x200xf32, #tpu.memory_space<vmem>>, %arg3: memref<5x8x1xf32, #tpu.memory_space<vmem>>, %arg4: memref<1x384xf32, #tpu.memory_space<vmem>>, %arg5: memref<1x8x384xf32, #tpu.memory_space<vmem>>, %arg6: memref<8x640xf32, #tpu.memory_space<vmem>>, %arg7: memref<200x384xf32, #tpu.memory_space<vmem>>, %arg8: memref<8x384xf32, #tpu.memory_space<vmem>>) attributes {dimension_semantics = [#tpu.dimension_semantics<parallel>], iteration_bounds = array<i64: 2>, scalar_prefetch = 0 : i64, scratch_operands = 3 : i64, tpu.core_type = #tpu.core_type<tc>, window_params = [{transform_indices = @transform_0, window_bounds = array<i64: 1, 8, 640>}, {pipeline_mode = #tpu.pipeline_mode<synchronous>, transform_indices = @transform_1, window_bounds = array<i64: 5, 8, 200>}, {pipeline_mode = #tpu.pipeline_mode<synchronous>, transform_indices = @transform_2, window_bounds = array<i64: 5, 8, 1>}, {pipeline_mode = #tpu.pipeline_mode<synchronous>, transform_indices = @transform_3, window_bounds = array<i64: 1, 384>}, {transform_indices = @transform_4, window_bounds = array<i64: 1, 8, 384>}]} {
    %c0 = arith.constant 0 : index
    %c0_0 = arith.constant 0 : index
    %c0_1 = arith.constant 0 : index
    %0 = vector.load %arg1[%c0, %c0_0, %c0_1] : memref<1x8x640xf32, #tpu.memory_space<vmem>>, vector<1x8x640xf32>
    %1 = vector.shape_cast %0 : vector<1x8x640xf32> to vector<8x640xf32>
    %c0_2 = arith.constant 0 : index
    %c0_3 = arith.constant 0 : index
    %2 = vector.load %arg6[%c0_2, %c0_3] : memref<8x640xf32, #tpu.memory_space<vmem>>, vector<8x640xf32>
    tpu.vector_store %arg6[%c0_2, %c0_3], %1 {strides = array<i32>} : memref<8x640xf32, #tpu.memory_space<vmem>>, vector<8x640xf32>,
    %c0_4 = arith.constant 0 : index
    %c86 = arith.constant 86 : index
    %3 = vector.load %arg6[%c0_4, %c86] : memref<8x640xf32, #tpu.memory_space<vmem>>, vector<8x384xf32>
    %c0_5 = arith.constant 0 : index
    %c0_6 = arith.constant 0 : index
    %4 = vector.load %arg7[%c0_5, %c0_6] : memref<200x384xf32, #tpu.memory_space<vmem>>, vector<8x384xf32>
    tpu.vector_store %arg7[%c0_5, %c0_6], %3 {strides = array<i32>} : memref<200x384xf32, #tpu.memory_space<vmem>>, vector<8x384xf32>,
    %c0_7 = arith.constant 0 : index
    %c87 = arith.constant 87 : index
    %5 = vector.load %arg6[%c0_7, %c87] : memref<8x640xf32, #tpu.memory_space<vmem>>, vector<8x384xf32>
    %c8 = arith.constant 8 : index
    %c0_8 = arith.constant 0 : index
    %6 = vector.load %arg7[%c8, %c0_8] : memref<200x384xf32, #tpu.memory_space<vmem>>, vector<8x384xf32>
    tpu.vector_store %arg7[%c8, %c0_8], %5 {strides = array<i32>} : memref<200x384xf32, #tpu.memory_space<vmem>>, vector<8x384xf32>,
    %c0_9 = arith.constant 0 : index
    %c88 = arith.constant 88 : index
    %7 = vector.load %arg6[%c0_9, %c88] : memref<8x640xf32, #tpu.memory_space<vmem>>, vector<8x384xf32>
    %c16 = arith.constant 16 : index
    %c0_10 = arith.constant 0 : index
    %8 = vector.load %arg7[%c16, %c0_10] : memref<200x384xf32, #tpu.memory_space<vmem>>, vector<8x384xf32>
    tpu.vector_store %arg7[%c16, %c0_10], %7 {strides = array<i32>} : memref<200x384xf32, #tpu.memory_space<vmem>>, vector<8x384xf32>,
    %c0_11 = arith.constant 0 : index
    %c89 = arith.constant 89 : index
    %9 = vector.load %arg6[%c0_11, %c89] : memref<8x640xf32, #tpu.memory_space<vmem>>, vector<8x384xf32>
    %c24 = arith.constant 24 : index
    %c0_12 = arith.constant 0 : index
    %10 = vector.load %arg7[%c24, %c0_12] : memref<200x384xf32, #tpu.memory_space<vmem>>, vector<8x384xf32>
    tpu.vector_store %arg7[%c24, %c0_12], %9 {strides = array<i32>} : memref<200x384xf32, #tpu.memory_space<vmem>>, vector<8x384xf32>,
    %c0_13 = arith.constant 0 : index
    %c90 = arith.constant 90 : index
    %11 = vector.load %arg6[%c0_13, %c90] : memref<8x640xf32, #tpu.memory_space<vmem>>, vector<8x384xf32>
    %c32 = arith.constant 32 : index
    %c0_14 = arith.constant 0 : index
    %12 = vector.load %arg7[%c32, %c0_14] : memref<200x384xf32, #tpu.memory_space<vmem>>, vector<8x384xf32>
    tpu.vector_store %arg7[%c32, %c0_14], %11 {strides = array<i32>} : memref<200x384xf32, #tpu.memory_space<vmem>>, vector<8x384xf32>,
    %c0_15 = arith.constant 0 : index
    %c106 = arith.constant 106 : index
    %13 = vector.load %arg6[%c0_15, %c106] : memref<8x640xf32, #tpu.memory_space<vmem>>, vector<8x384xf32>
    %c40 = arith.constant 40 : index
    %c0_16 = arith.constant 0 : index
    %14 = vector.load %arg7[%c40, %c0_16] : memref<200x384xf32, #tpu.memory_space<vmem>>, vector<8x384xf32>
    tpu.vector_store %arg7[%c40, %c0_16], %13 {strides = array<i32>} : memref<200x384xf32, #tpu.memory_space<vmem>>, vector<8x384xf32>,
    %c0_17 = arith.constant 0 : index
    %c107 = arith.constant 107 : index
    %15 = vector.load %arg6[%c0_17, %c107] : memref<8x640xf32, #tpu.memory_space<vmem>>, vector<8x384xf32>
    %c48 = arith.constant 48 : index
    %c0_18 = arith.constant 0 : index
    %16 = vector.load %arg7[%c48, %c0_18] : memref<200x384xf32, #tpu.memory_space<vmem>>, vector<8x384xf32>
    tpu.vector_store %arg7[%c48, %c0_18], %15 {strides = array<i32>} : memref<200x384xf32, #tpu.memory_space<vmem>>, vector<8x384xf32>,
    %c0_19 = arith.constant 0 : index
    %c108 = arith.constant 108 : index
    %17 = vector.load %arg6[%c0_19, %c108] : memref<8x640xf32, #tpu.memory_space<vmem>>, vector<8x384xf32>
    %c56 = arith.constant 56 : index
    %c0_20 = arith.constant 0 : index
    %18 = vector.load %arg7[%c56, %c0_20] : memref<200x384xf32, #tpu.memory_space<vmem>>, vector<8x384xf32>
    tpu.vector_store %arg7[%c56, %c0_20], %17 {strides = array<i32>} : memref<200x384xf32, #tpu.memory_space<vmem>>, vector<8x384xf32>,
    %c0_21 = arith.constant 0 : index
    %c109 = arith.constant 109 : index
    %19 = vector.load %arg6[%c0_21, %c109] : memref<8x640xf32, #tpu.memory_space<vmem>>, vector<8x384xf32>
    %c64 = arith.constant 64 : index
    %c0_22 = arith.constant 0 : index
    %20 = vector.load %arg7[%c64, %c0_22] : memref<200x384xf32, #tpu.memory_space<vmem>>, vector<8x384xf32>
    tpu.vector_store %arg7[%c64, %c0_22], %19 {strides = array<i32>} : memref<200x384xf32, #tpu.memory_space<vmem>>, vector<8x384xf32>,
    %c0_23 = arith.constant 0 : index
    %c110 = arith.constant 110 : index
    %21 = vector.load %arg6[%c0_23, %c110] : memref<8x640xf32, #tpu.memory_space<vmem>>, vector<8x384xf32>
    %c72 = arith.constant 72 : index
    %c0_24 = arith.constant 0 : index
    %22 = vector.load %arg7[%c72, %c0_24] : memref<200x384xf32, #tpu.memory_space<vmem>>, vector<8x384xf32>
    tpu.vector_store %arg7[%c72, %c0_24], %21 {strides = array<i32>} : memref<200x384xf32, #tpu.memory_space<vmem>>, vector<8x384xf32>,
    %c0_25 = arith.constant 0 : index
    %c126 = arith.constant 126 : index
    %23 = vector.load %arg6[%c0_25, %c126] : memref<8x640xf32, #tpu.memory_space<vmem>>, vector<8x384xf32>
    %c80 = arith.constant 80 : index
    %c0_26 = arith.constant 0 : index
    %24 = vector.load %arg7[%c80, %c0_26] : memref<200x384xf32, #tpu.memory_space<vmem>>, vector<8x384xf32>
    tpu.vector_store %arg7[%c80, %c0_26], %23 {strides = array<i32>} : memref<200x384xf32, #tpu.memory_space<vmem>>, vector<8x384xf32>,
    %c0_27 = arith.constant 0 : index
    %c127 = arith.constant 127 : index
    %25 = vector.load %arg6[%c0_27, %c127] : memref<8x640xf32, #tpu.memory_space<vmem>>, vector<8x384xf32>
    %c88_28 = arith.constant 88 : index
    %c0_29 = arith.constant 0 : index
    %26 = vector.load %arg7[%c88_28, %c0_29] : memref<200x384xf32, #tpu.memory_space<vmem>>, vector<8x384xf32>
    tpu.vector_store %arg7[%c88_28, %c0_29], %25 {strides = array<i32>} : memref<200x384xf32, #tpu.memory_space<vmem>>, vector<8x384xf32>,
    %c0_30 = arith.constant 0 : index
    %c128 = arith.constant 128 : index
    %27 = vector.load %arg6[%c0_30, %c128] : memref<8x640xf32, #tpu.memory_space<vmem>>, vector<8x384xf32>
    %c96 = arith.constant 96 : index
    %c0_31 = arith.constant 0 : index
    %28 = vector.load %arg7[%c96, %c0_31] : memref<200x384xf32, #tpu.memory_space<vmem>>, vector<8x384xf32>
    tpu.vector_store %arg7[%c96, %c0_31], %27 {strides = array<i32>} : memref<200x384xf32, #tpu.memory_space<vmem>>, vector<8x384xf32>,
    %c0_32 = arith.constant 0 : index
    %c129 = arith.constant 129 : index
    %29 = vector.load %arg6[%c0_32, %c129] : memref<8x640xf32, #tpu.memory_space<vmem>>, vector<8x384xf32>
    %c104 = arith.constant 104 : index
    %c0_33 = arith.constant 0 : index
    %30 = vector.load %arg7[%c104, %c0_33] : memref<200x384xf32, #tpu.memory_space<vmem>>, vector<8x384xf32>
    tpu.vector_store %arg7[%c104, %c0_33], %29 {strides = array<i32>} : memref<200x384xf32, #tpu.memory_space<vmem>>, vector<8x384xf32>,
    %c0_34 = arith.constant 0 : index
    %c130 = arith.constant 130 : index
    %31 = vector.load %arg6[%c0_34, %c130] : memref<8x640xf32, #tpu.memory_space<vmem>>, vector<8x384xf32>
    %c112 = arith.constant 112 : index
    %c0_35 = arith.constant 0 : index
    %32 = vector.load %arg7[%c112, %c0_35] : memref<200x384xf32, #tpu.memory_space<vmem>>, vector<8x384xf32>
    tpu.vector_store %arg7[%c112, %c0_35], %31 {strides = array<i32>} : memref<200x384xf32, #tpu.memory_space<vmem>>, vector<8x384xf32>,
    %c0_36 = arith.constant 0 : index
    %c146 = arith.constant 146 : index
    %33 = vector.load %arg6[%c0_36, %c146] : memref<8x640xf32, #tpu.memory_space<vmem>>, vector<8x384xf32>
    %c120 = arith.constant 120 : index
    %c0_37 = arith.constant 0 : index
    %34 = vector.load %arg7[%c120, %c0_37] : memref<200x384xf32, #tpu.memory_space<vmem>>, vector<8x384xf32>
    tpu.vector_store %arg7[%c120, %c0_37], %33 {strides = array<i32>} : memref<200x384xf32, #tpu.memory_space<vmem>>, vector<8x384xf32>,
    %c0_38 = arith.constant 0 : index
    %c147 = arith.constant 147 : index
    %35 = vector.load %arg6[%c0_38, %c147] : memref<8x640xf32, #tpu.memory_space<vmem>>, vector<8x384xf32>
    %c128_39 = arith.constant 128 : index
    %c0_40 = arith.constant 0 : index
    %36 = vector.load %arg7[%c128_39, %c0_40] : memref<200x384xf32, #tpu.memory_space<vmem>>, vector<8x384xf32>
    tpu.vector_store %arg7[%c128_39, %c0_40], %35 {strides = array<i32>} : memref<200x384xf32, #tpu.memory_space<vmem>>, vector<8x384xf32>,
    %c0_41 = arith.constant 0 : index
    %c148 = arith.constant 148 : index
    %37 = vector.load %arg6[%c0_41, %c148] : memref<8x640xf32, #tpu.memory_space<vmem>>, vector<8x384xf32>
    %c136 = arith.constant 136 : index
    %c0_42 = arith.constant 0 : index
    %38 = vector.load %arg7[%c136, %c0_42] : memref<200x384xf32, #tpu.memory_space<vmem>>, vector<8x384xf32>
    tpu.vector_store %arg7[%c136, %c0_42], %37 {strides = array<i32>} : memref<200x384xf32, #tpu.memory_space<vmem>>, vector<8x384xf32>,
    %c0_43 = arith.constant 0 : index
    %c149 = arith.constant 149 : index
    %39 = vector.load %arg6[%c0_43, %c149] : memref<8x640xf32, #tpu.memory_space<vmem>>, vector<8x384xf32>
    %c144 = arith.constant 144 : index
    %c0_44 = arith.constant 0 : index
    %40 = vector.load %arg7[%c144, %c0_44] : memref<200x384xf32, #tpu.memory_space<vmem>>, vector<8x384xf32>
    tpu.vector_store %arg7[%c144, %c0_44], %39 {strides = array<i32>} : memref<200x384xf32, #tpu.memory_space<vmem>>, vector<8x384xf32>,
    %c0_45 = arith.constant 0 : index
    %c150 = arith.constant 150 : index
    %41 = vector.load %arg6[%c0_45, %c150] : memref<8x640xf32, #tpu.memory_space<vmem>>, vector<8x384xf32>
    %c152 = arith.constant 152 : index
    %c0_46 = arith.constant 0 : index
    %42 = vector.load %arg7[%c152, %c0_46] : memref<200x384xf32, #tpu.memory_space<vmem>>, vector<8x384xf32>
    tpu.vector_store %arg7[%c152, %c0_46], %41 {strides = array<i32>} : memref<200x384xf32, #tpu.memory_space<vmem>>, vector<8x384xf32>,
    %c0_47 = arith.constant 0 : index
    %c166 = arith.constant 166 : index
    %43 = vector.load %arg6[%c0_47, %c166] : memref<8x640xf32, #tpu.memory_space<vmem>>, vector<8x384xf32>
    %c160 = arith.constant 160 : index
    %c0_48 = arith.constant 0 : index
    %44 = vector.load %arg7[%c160, %c0_48] : memref<200x384xf32, #tpu.memory_space<vmem>>, vector<8x384xf32>
    tpu.vector_store %arg7[%c160, %c0_48], %43 {strides = array<i32>} : memref<200x384xf32, #tpu.memory_space<vmem>>, vector<8x384xf32>,
    %c0_49 = arith.constant 0 : index
    %c167 = arith.constant 167 : index
    %45 = vector.load %arg6[%c0_49, %c167] : memref<8x640xf32, #tpu.memory_space<vmem>>, vector<8x384xf32>
    %c168 = arith.constant 168 : index
    %c0_50 = arith.constant 0 : index
    %46 = vector.load %arg7[%c168, %c0_50] : memref<200x384xf32, #tpu.memory_space<vmem>>, vector<8x384xf32>
    tpu.vector_store %arg7[%c168, %c0_50], %45 {strides = array<i32>} : memref<200x384xf32, #tpu.memory_space<vmem>>, vector<8x384xf32>,
    %c0_51 = arith.constant 0 : index
    %c168_52 = arith.constant 168 : index
    %47 = vector.load %arg6[%c0_51, %c168_52] : memref<8x640xf32, #tpu.memory_space<vmem>>, vector<8x384xf32>
    %c176 = arith.constant 176 : index
    %c0_53 = arith.constant 0 : index
    %48 = vector.load %arg7[%c176, %c0_53] : memref<200x384xf32, #tpu.memory_space<vmem>>, vector<8x384xf32>
    tpu.vector_store %arg7[%c176, %c0_53], %47 {strides = array<i32>} : memref<200x384xf32, #tpu.memory_space<vmem>>, vector<8x384xf32>,
    %c0_54 = arith.constant 0 : index
    %c169 = arith.constant 169 : index
    %49 = vector.load %arg6[%c0_54, %c169] : memref<8x640xf32, #tpu.memory_space<vmem>>, vector<8x384xf32>
    %c184 = arith.constant 184 : index
    %c0_55 = arith.constant 0 : index
    %50 = vector.load %arg7[%c184, %c0_55] : memref<200x384xf32, #tpu.memory_space<vmem>>, vector<8x384xf32>
    tpu.vector_store %arg7[%c184, %c0_55], %49 {strides = array<i32>} : memref<200x384xf32, #tpu.memory_space<vmem>>, vector<8x384xf32>,
    %c0_56 = arith.constant 0 : index
    %c170 = arith.constant 170 : index
    %51 = vector.load %arg6[%c0_56, %c170] : memref<8x640xf32, #tpu.memory_space<vmem>>, vector<8x384xf32>
    %c192 = arith.constant 192 : index
    %c0_57 = arith.constant 0 : index
    %52 = vector.load %arg7[%c192, %c0_57] : memref<200x384xf32, #tpu.memory_space<vmem>>, vector<8x384xf32>
    tpu.vector_store %arg7[%c192, %c0_57], %51 {strides = array<i32>} : memref<200x384xf32, #tpu.memory_space<vmem>>, vector<8x384xf32>,
    %c0_58 = arith.constant 0 : index
    %c0_59 = arith.constant 0 : index
    %c0_60 = arith.constant 0 : index
    %53 = vector.load %arg2[%c0_58, %c0_59, %c0_60] : memref<5x8x200xf32, #tpu.memory_space<vmem>>, vector<1x8x200xf32>
    %54 = vector.shape_cast %53 : vector<1x8x200xf32> to vector<8x200xf32>
    %c0_61 = arith.constant 0 : index
    %c0_62 = arith.constant 0 : index
    %55 = vector.load %arg7[%c0_61, %c0_62] : memref<200x384xf32, #tpu.memory_space<vmem>>, vector<200x384xf32>
    %cst = arith.constant dense<0.000000e+00> : vector<8x384xf32>
    %56 = tpu.matmul %54, %55, %cst {dimension_numbers = #tpu.dot_dimension_numbers<[1], [0], [0], [1], [0, 0, 1, 1], [], []>} : vector<8x200xf32>, vector<200x384xf32>, vector<8x384xf32> -> vector<8x384xf32>
    %c0_63 = arith.constant 0 : index
    %c0_64 = arith.constant 0 : index
    %c0_65 = arith.constant 0 : index
    %57 = vector.load %arg3[%c0_63, %c0_64, %c0_65] : memref<5x8x1xf32, #tpu.memory_space<vmem>>, vector<1x8x1xf32>
    %58 = vector.shape_cast %57 : vector<1x8x1xf32> to vector<8x1xf32>
    %59 = vector.broadcast %58 : vector<8x1xf32> to vector<8x384xf32>
    %60 = arith.addf %56, %59 : vector<8x384xf32>
    %cst_66 = arith.constant 0.000000e+00 : f32
    %61 = vector.broadcast %cst_66 : f32 to vector<8x384xf32>
    %62 = arith.cmpf ogt, %60, %61 : vector<8x384xf32>
    %cst_67 = arith.constant 0.00999999977 : f32
    %63 = vector.broadcast %cst_67 : f32 to vector<8x384xf32>
    %64 = arith.mulf %63, %60 : vector<8x384xf32>
    %65 = arith.select %62, %60, %64 : vector<8x384xi1>, vector<8x384xf32>
    %c0_68 = arith.constant 0 : index
    %c0_69 = arith.constant 0 : index
    %66 = vector.load %arg4[%c0_68, %c0_69] : memref<1x384xf32, #tpu.memory_space<vmem>>, vector<1x384xf32>
    %67 = vector.broadcast %66 : vector<1x384xf32> to vector<8x384xf32>
    %68 = arith.mulf %65, %67 : vector<8x384xf32>
    %c0_70 = arith.constant 0 : index
    %c0_71 = arith.constant 0 : index
    %69 = vector.load %arg8[%c0_70, %c0_71] : memref<8x384xf32, #tpu.memory_space<vmem>>, vector<8x384xf32>
    tpu.vector_store %arg8[%c0_70, %c0_71], %68 {strides = array<i32>} : memref<8x384xf32, #tpu.memory_space<vmem>>, vector<8x384xf32>,
    %c0_72 = arith.constant 0 : index
    %c0_73 = arith.constant 0 : index
    %70 = vector.load %arg8[%c0_72, %c0_73] : memref<8x384xf32, #tpu.memory_space<vmem>>, vector<8x384xf32>
    %c0_74 = arith.constant 0 : index
    %c128_75 = arith.constant 128 : index
    %71 = vector.load %arg6[%c0_74, %c128_75] : memref<8x640xf32, #tpu.memory_space<vmem>>, vector<8x384xf32>
    tpu.vector_store %arg6[%c0_74, %c128_75], %70 {strides = array<i32>} : memref<8x640xf32, #tpu.memory_space<vmem>>, vector<8x384xf32>,
    %c0_76 = arith.constant 0 : index
    %c86_77 = arith.constant 86 : index
    %72 = vector.load %arg6[%c0_76, %c86_77] : memref<8x640xf32, #tpu.memory_space<vmem>>, vector<8x384xf32>
    %c0_78 = arith.constant 0 : index
    %c0_79 = arith.constant 0 : index
    %73 = vector.load %arg7[%c0_78, %c0_79] : memref<200x384xf32, #tpu.memory_space<vmem>>, vector<8x384xf32>
    tpu.vector_store %arg7[%c0_78, %c0_79], %72 {strides = array<i32>} : memref<200x384xf32, #tpu.memory_space<vmem>>, vector<8x384xf32>,
    %c0_80 = arith.constant 0 : index
    %c87_81 = arith.constant 87 : index
    %74 = vector.load %arg6[%c0_80, %c87_81] : memref<8x640xf32, #tpu.memory_space<vmem>>, vector<8x384xf32>
    %c8_82 = arith.constant 8 : index
    %c0_83 = arith.constant 0 : index
    %75 = vector.load %arg7[%c8_82, %c0_83] : memref<200x384xf32, #tpu.memory_space<vmem>>, vector<8x384xf32>
    tpu.vector_store %arg7[%c8_82, %c0_83], %74 {strides = array<i32>} : memref<200x384xf32, #tpu.memory_space<vmem>>, vector<8x384xf32>,
    %c0_84 = arith.constant 0 : index
    %c88_85 = arith.constant 88 : index
    %76 = vector.load %arg6[%c0_84, %c88_85] : memref<8x640xf32, #tpu.memory_space<vmem>>, vector<8x384xf32>
    %c16_86 = arith.constant 16 : index
    %c0_87 = arith.constant 0 : index
    %77 = vector.load %arg7[%c16_86, %c0_87] : memref<200x384xf32, #tpu.memory_space<vmem>>, vector<8x384xf32>
    tpu.vector_store %arg7[%c16_86, %c0_87], %76 {strides = array<i32>} : memref<200x384xf32, #tpu.memory_space<vmem>>, vector<8x384xf32>,
    %c0_88 = arith.constant 0 : index
    %c89_89 = arith.constant 89 : index
    %78 = vector.load %arg6[%c0_88, %c89_89] : memref<8x640xf32, #tpu.memory_space<vmem>>, vector<8x384xf32>
    %c24_90 = arith.constant 24 : index
    %c0_91 = arith.constant 0 : index
    %79 = vector.load %arg7[%c24_90, %c0_91] : memref<200x384xf32, #tpu.memory_space<vmem>>, vector<8x384xf32>
    tpu.vector_store %arg7[%c24_90, %c0_91], %78 {strides = array<i32>} : memref<200x384xf32, #tpu.memory_space<vmem>>, vector<8x384xf32>,
    %c0_92 = arith.constant 0 : index
    %c90_93 = arith.constant 90 : index
    %80 = vector.load %arg6[%c0_92, %c90_93] : memref<8x640xf32, #tpu.memory_space<vmem>>, vector<8x384xf32>
    %c32_94 = arith.constant 32 : index
    %c0_95 = arith.constant 0 : index
    %81 = vector.load %arg7[%c32_94, %c0_95] : memref<200x384xf32, #tpu.memory_space<vmem>>, vector<8x384xf32>
    tpu.vector_store %arg7[%c32_94, %c0_95], %80 {strides = array<i32>} : memref<200x384xf32, #tpu.memory_space<vmem>>, vector<8x384xf32>,
    %c0_96 = arith.constant 0 : index
    %c106_97 = arith.constant 106 : index
    %82 = vector.load %arg6[%c0_96, %c106_97] : memref<8x640xf32, #tpu.memory_space<vmem>>, vector<8x384xf32>
    %c40_98 = arith.constant 40 : index
    %c0_99 = arith.constant 0 : index
    %83 = vector.load %arg7[%c40_98, %c0_99] : memref<200x384xf32, #tpu.memory_space<vmem>>, vector<8x384xf32>
    tpu.vector_store %arg7[%c40_98, %c0_99], %82 {strides = array<i32>} : memref<200x384xf32, #tpu.memory_space<vmem>>, vector<8x384xf32>,
    %c0_100 = arith.constant 0 : index
    %c107_101 = arith.constant 107 : index
    %84 = vector.load %arg6[%c0_100, %c107_101] : memref<8x640xf32, #tpu.memory_space<vmem>>, vector<8x384xf32>
    %c48_102 = arith.constant 48 : index
    %c0_103 = arith.constant 0 : index
    %85 = vector.load %arg7[%c48_102, %c0_103] : memref<200x384xf32, #tpu.memory_space<vmem>>, vector<8x384xf32>
    tpu.vector_store %arg7[%c48_102, %c0_103], %84 {strides = array<i32>} : memref<200x384xf32, #tpu.memory_space<vmem>>, vector<8x384xf32>,
    %c0_104 = arith.constant 0 : index
    %c108_105 = arith.constant 108 : index
    %86 = vector.load %arg6[%c0_104, %c108_105] : memref<8x640xf32, #tpu.memory_space<vmem>>, vector<8x384xf32>
    %c56_106 = arith.constant 56 : index
    %c0_107 = arith.constant 0 : index
    %87 = vector.load %arg7[%c56_106, %c0_107] : memref<200x384xf32, #tpu.memory_space<vmem>>, vector<8x384xf32>
    tpu.vector_store %arg7[%c56_106, %c0_107], %86 {strides = array<i32>} : memref<200x384xf32, #tpu.memory_space<vmem>>, vector<8x384xf32>,
    %c0_108 = arith.constant 0 : index
    %c109_109 = arith.constant 109 : index
    %88 = vector.load %arg6[%c0_108, %c109_109] : memref<8x640xf32, #tpu.memory_space<vmem>>, vector<8x384xf32>
    %c64_110 = arith.constant 64 : index
    %c0_111 = arith.constant 0 : index
    %89 = vector.load %arg7[%c64_110, %c0_111] : memref<200x384xf32, #tpu.memory_space<vmem>>, vector<8x384xf32>
    tpu.vector_store %arg7[%c64_110, %c0_111], %88 {strides = array<i32>} : memref<200x384xf32, #tpu.memory_space<vmem>>, vector<8x384xf32>,
    %c0_112 = arith.constant 0 : index
    %c110_113 = arith.constant 110 : index
    %90 = vector.load %arg6[%c0_112, %c110_113] : memref<8x640xf32, #tpu.memory_space<vmem>>, vector<8x384xf32>
    %c72_114 = arith.constant 72 : index
    %c0_115 = arith.constant 0 : index
    %91 = vector.load %arg7[%c72_114, %c0_115] : memref<200x384xf32, #tpu.memory_space<vmem>>, vector<8x384xf32>
    tpu.vector_store %arg7[%c72_114, %c0_115], %90 {strides = array<i32>} : memref<200x384xf32, #tpu.memory_space<vmem>>, vector<8x384xf32>,
    %c0_116 = arith.constant 0 : index
    %c126_117 = arith.constant 126 : index
    %92 = vector.load %arg6[%c0_116, %c126_117] : memref<8x640xf32, #tpu.memory_space<vmem>>, vector<8x384xf32>
    %c80_118 = arith.constant 80 : index
    %c0_119 = arith.constant 0 : index
    %93 = vector.load %arg7[%c80_118, %c0_119] : memref<200x384xf32, #tpu.memory_space<vmem>>, vector<8x384xf32>
    tpu.vector_store %arg7[%c80_118, %c0_119], %92 {strides = array<i32>} : memref<200x384xf32, #tpu.memory_space<vmem>>, vector<8x384xf32>,
    %c0_120 = arith.constant 0 : index
    %c127_121 = arith.constant 127 : index
    %94 = vector.load %arg6[%c0_120, %c127_121] : memref<8x640xf32, #tpu.memory_space<vmem>>, vector<8x384xf32>
    %c88_122 = arith.constant 88 : index
    %c0_123 = arith.constant 0 : index
    %95 = vector.load %arg7[%c88_122, %c0_123] : memref<200x384xf32, #tpu.memory_space<vmem>>, vector<8x384xf32>
    tpu.vector_store %arg7[%c88_122, %c0_123], %94 {strides = array<i32>} : memref<200x384xf32, #tpu.memory_space<vmem>>, vector<8x384xf32>,
    %c0_124 = arith.constant 0 : index
    %c128_125 = arith.constant 128 : index
    %96 = vector.load %arg6[%c0_124, %c128_125] : memref<8x640xf32, #tpu.memory_space<vmem>>, vector<8x384xf32>
    %c96_126 = arith.constant 96 : index
    %c0_127 = arith.constant 0 : index
    %97 = vector.load %arg7[%c96_126, %c0_127] : memref<200x384xf32, #tpu.memory_space<vmem>>, vector<8x384xf32>
    tpu.vector_store %arg7[%c96_126, %c0_127], %96 {strides = array<i32>} : memref<200x384xf32, #tpu.memory_space<vmem>>, vector<8x384xf32>,
    %c0_128 = arith.constant 0 : index
    %c129_129 = arith.constant 129 : index
    %98 = vector.load %arg6[%c0_128, %c129_129] : memref<8x640xf32, #tpu.memory_space<vmem>>, vector<8x384xf32>
    %c104_130 = arith.constant 104 : index
    %c0_131 = arith.constant 0 : index
    %99 = vector.load %arg7[%c104_130, %c0_131] : memref<200x384xf32, #tpu.memory_space<vmem>>, vector<8x384xf32>
    tpu.vector_store %arg7[%c104_130, %c0_131], %98 {strides = array<i32>} : memref<200x384xf32, #tpu.memory_space<vmem>>, vector<8x384xf32>,
    %c0_132 = arith.constant 0 : index
    %c130_133 = arith.constant 130 : index
    %100 = vector.load %arg6[%c0_132, %c130_133] : memref<8x640xf32, #tpu.memory_space<vmem>>, vector<8x384xf32>
    %c112_134 = arith.constant 112 : index
    %c0_135 = arith.constant 0 : index
    %101 = vector.load %arg7[%c112_134, %c0_135] : memref<200x384xf32, #tpu.memory_space<vmem>>, vector<8x384xf32>
    tpu.vector_store %arg7[%c112_134, %c0_135], %100 {strides = array<i32>} : memref<200x384xf32, #tpu.memory_space<vmem>>, vector<8x384xf32>,
    %c0_136 = arith.constant 0 : index
    %c146_137 = arith.constant 146 : index
    %102 = vector.load %arg6[%c0_136, %c146_137] : memref<8x640xf32, #tpu.memory_space<vmem>>, vector<8x384xf32>
    %c120_138 = arith.constant 120 : index
    %c0_139 = arith.constant 0 : index
    %103 = vector.load %arg7[%c120_138, %c0_139] : memref<200x384xf32, #tpu.memory_space<vmem>>, vector<8x384xf32>
    tpu.vector_store %arg7[%c120_138, %c0_139], %102 {strides = array<i32>} : memref<200x384xf32, #tpu.memory_space<vmem>>, vector<8x384xf32>,
    %c0_140 = arith.constant 0 : index
    %c147_141 = arith.constant 147 : index
    %104 = vector.load %arg6[%c0_140, %c147_141] : memref<8x640xf32, #tpu.memory_space<vmem>>, vector<8x384xf32>
    %c128_142 = arith.constant 128 : index
    %c0_143 = arith.constant 0 : index
    %105 = vector.load %arg7[%c128_142, %c0_143] : memref<200x384xf32, #tpu.memory_space<vmem>>, vector<8x384xf32>
    tpu.vector_store %arg7[%c128_142, %c0_143], %104 {strides = array<i32>} : memref<200x384xf32, #tpu.memory_space<vmem>>, vector<8x384xf32>,
    %c0_144 = arith.constant 0 : index
    %c148_145 = arith.constant 148 : index
    %106 = vector.load %arg6[%c0_144, %c148_145] : memref<8x640xf32, #tpu.memory_space<vmem>>, vector<8x384xf32>
    %c136_146 = arith.constant 136 : index
    %c0_147 = arith.constant 0 : index
    %107 = vector.load %arg7[%c136_146, %c0_147] : memref<200x384xf32, #tpu.memory_space<vmem>>, vector<8x384xf32>
    tpu.vector_store %arg7[%c136_146, %c0_147], %106 {strides = array<i32>} : memref<200x384xf32, #tpu.memory_space<vmem>>, vector<8x384xf32>,
    %c0_148 = arith.constant 0 : index
    %c149_149 = arith.constant 149 : index
    %108 = vector.load %arg6[%c0_148, %c149_149] : memref<8x640xf32, #tpu.memory_space<vmem>>, vector<8x384xf32>
    %c144_150 = arith.constant 144 : index
    %c0_151 = arith.constant 0 : index
    %109 = vector.load %arg7[%c144_150, %c0_151] : memref<200x384xf32, #tpu.memory_space<vmem>>, vector<8x384xf32>
    tpu.vector_store %arg7[%c144_150, %c0_151], %108 {strides = array<i32>} : memref<200x384xf32, #tpu.memory_space<vmem>>, vector<8x384xf32>,
    %c0_152 = arith.constant 0 : index
    %c150_153 = arith.constant 150 : index
    %110 = vector.load %arg6[%c0_152, %c150_153] : memref<8x640xf32, #tpu.memory_space<vmem>>, vector<8x384xf32>
    %c152_154 = arith.constant 152 : index
    %c0_155 = arith.constant 0 : index
    %111 = vector.load %arg7[%c152_154, %c0_155] : memref<200x384xf32, #tpu.memory_space<vmem>>, vector<8x384xf32>
    tpu.vector_store %arg7[%c152_154, %c0_155], %110 {strides = array<i32>} : memref<200x384xf32, #tpu.memory_space<vmem>>, vector<8x384xf32>,
    %c0_156 = arith.constant 0 : index
    %c166_157 = arith.constant 166 : index
    %112 = vector.load %arg6[%c0_156, %c166_157] : memref<8x640xf32, #tpu.memory_space<vmem>>, vector<8x384xf32>
    %c160_158 = arith.constant 160 : index
    %c0_159 = arith.constant 0 : index
    %113 = vector.load %arg7[%c160_158, %c0_159] : memref<200x384xf32, #tpu.memory_space<vmem>>, vector<8x384xf32>
    tpu.vector_store %arg7[%c160_158, %c0_159], %112 {strides = array<i32>} : memref<200x384xf32, #tpu.memory_space<vmem>>, vector<8x384xf32>,
    %c0_160 = arith.constant 0 : index
    %c167_161 = arith.constant 167 : index
    %114 = vector.load %arg6[%c0_160, %c167_161] : memref<8x640xf32, #tpu.memory_space<vmem>>, vector<8x384xf32>
    %c168_162 = arith.constant 168 : index
    %c0_163 = arith.constant 0 : index
    %115 = vector.load %arg7[%c168_162, %c0_163] : memref<200x384xf32, #tpu.memory_space<vmem>>, vector<8x384xf32>
    tpu.vector_store %arg7[%c168_162, %c0_163], %114 {strides = array<i32>} : memref<200x384xf32, #tpu.memory_space<vmem>>, vector<8x384xf32>,
    %c0_164 = arith.constant 0 : index
    %c168_165 = arith.constant 168 : index
    %116 = vector.load %arg6[%c0_164, %c168_165] : memref<8x640xf32, #tpu.memory_space<vmem>>, vector<8x384xf32>
    %c176_166 = arith.constant 176 : index
    %c0_167 = arith.constant 0 : index
    %117 = vector.load %arg7[%c176_166, %c0_167] : memref<200x384xf32, #tpu.memory_space<vmem>>, vector<8x384xf32>
    tpu.vector_store %arg7[%c176_166, %c0_167], %116 {strides = array<i32>} : memref<200x384xf32, #tpu.memory_space<vmem>>, vector<8x384xf32>,
    %c0_168 = arith.constant 0 : index
    %c169_169 = arith.constant 169 : index
    %118 = vector.load %arg6[%c0_168, %c169_169] : memref<8x640xf32, #tpu.memory_space<vmem>>, vector<8x384xf32>
    %c184_170 = arith.constant 184 : index
    %c0_171 = arith.constant 0 : index
    %119 = vector.load %arg7[%c184_170, %c0_171] : memref<200x384xf32, #tpu.memory_space<vmem>>, vector<8x384xf32>
    tpu.vector_store %arg7[%c184_170, %c0_171], %118 {strides = array<i32>} : memref<200x384xf32, #tpu.memory_space<vmem>>, vector<8x384xf32>,
    %c0_172 = arith.constant 0 : index
    %c170_173 = arith.constant 170 : index
    %120 = vector.load %arg6[%c0_172, %c170_173] : memref<8x640xf32, #tpu.memory_space<vmem>>, vector<8x384xf32>
    %c192_174 = arith.constant 192 : index
    %c0_175 = arith.constant 0 : index
    %121 = vector.load %arg7[%c192_174, %c0_175] : memref<200x384xf32, #tpu.memory_space<vmem>>, vector<8x384xf32>
    tpu.vector_store %arg7[%c192_174, %c0_175], %120 {strides = array<i32>} : memref<200x384xf32, #tpu.memory_space<vmem>>, vector<8x384xf32>,
    %c1 = arith.constant 1 : index
    %c0_176 = arith.constant 0 : index
    %c0_177 = arith.constant 0 : index
    %122 = vector.load %arg2[%c1, %c0_176, %c0_177] : memref<5x8x200xf32, #tpu.memory_space<vmem>>, vector<1x8x200xf32>
    %123 = vector.shape_cast %122 : vector<1x8x200xf32> to vector<8x200xf32>
    %c0_178 = arith.constant 0 : index
    %c0_179 = arith.constant 0 : index
    %124 = vector.load %arg7[%c0_178, %c0_179] : memref<200x384xf32, #tpu.memory_space<vmem>>, vector<200x384xf32>
    %cst_180 = arith.constant dense<0.000000e+00> : vector<8x384xf32>
    %125 = tpu.matmul %123, %124, %cst_180 {dimension_numbers = #tpu.dot_dimension_numbers<[1], [0], [0], [1], [0, 0, 1, 1], [], []>} : vector<8x200xf32>, vector<200x384xf32>, vector<8x384xf32> -> vector<8x384xf32>
    %c1_181 = arith.constant 1 : index
    %c0_182 = arith.constant 0 : index
    %c0_183 = arith.constant 0 : index
    %126 = vector.load %arg3[%c1_181, %c0_182, %c0_183] : memref<5x8x1xf32, #tpu.memory_space<vmem>>, vector<1x8x1xf32>
    %127 = vector.shape_cast %126 : vector<1x8x1xf32> to vector<8x1xf32>
    %128 = vector.broadcast %127 : vector<8x1xf32> to vector<8x384xf32>
    %129 = arith.addf %125, %128 : vector<8x384xf32>
    %cst_184 = arith.constant 0.000000e+00 : f32
    %130 = vector.broadcast %cst_184 : f32 to vector<8x384xf32>
    %131 = arith.cmpf ogt, %129, %130 : vector<8x384xf32>
    %cst_185 = arith.constant 0.00999999977 : f32
    %132 = vector.broadcast %cst_185 : f32 to vector<8x384xf32>
    %133 = arith.mulf %132, %129 : vector<8x384xf32>
    %134 = arith.select %131, %129, %133 : vector<8x384xi1>, vector<8x384xf32>
    %c0_186 = arith.constant 0 : index
    %c0_187 = arith.constant 0 : index
    %135 = vector.load %arg4[%c0_186, %c0_187] : memref<1x384xf32, #tpu.memory_space<vmem>>, vector<1x384xf32>
    %136 = vector.broadcast %135 : vector<1x384xf32> to vector<8x384xf32>
    %137 = arith.mulf %134, %136 : vector<8x384xf32>
    %c0_188 = arith.constant 0 : index
    %c0_189 = arith.constant 0 : index
    %138 = vector.load %arg8[%c0_188, %c0_189] : memref<8x384xf32, #tpu.memory_space<vmem>>, vector<8x384xf32>
    tpu.vector_store %arg8[%c0_188, %c0_189], %137 {strides = array<i32>} : memref<8x384xf32, #tpu.memory_space<vmem>>, vector<8x384xf32>,
    %c0_190 = arith.constant 0 : index
    %c0_191 = arith.constant 0 : index
    %139 = vector.load %arg8[%c0_190, %c0_191] : memref<8x384xf32, #tpu.memory_space<vmem>>, vector<8x384xf32>
    %c0_192 = arith.constant 0 : index
    %c128_193 = arith.constant 128 : index
    %140 = vector.load %arg6[%c0_192, %c128_193] : memref<8x640xf32, #tpu.memory_space<vmem>>, vector<8x384xf32>
    tpu.vector_store %arg6[%c0_192, %c128_193], %139 {strides = array<i32>} : memref<8x640xf32, #tpu.memory_space<vmem>>, vector<8x384xf32>,
    %c0_194 = arith.constant 0 : index
    %c86_195 = arith.constant 86 : index
    %141 = vector.load %arg6[%c0_194, %c86_195] : memref<8x640xf32, #tpu.memory_space<vmem>>, vector<8x384xf32>
    %c0_196 = arith.constant 0 : index
    %c0_197 = arith.constant 0 : index
    %142 = vector.load %arg7[%c0_196, %c0_197] : memref<200x384xf32, #tpu.memory_space<vmem>>, vector<8x384xf32>
    tpu.vector_store %arg7[%c0_196, %c0_197], %141 {strides = array<i32>} : memref<200x384xf32, #tpu.memory_space<vmem>>, vector<8x384xf32>,
    %c0_198 = arith.constant 0 : index
    %c87_199 = arith.constant 87 : index
    %143 = vector.load %arg6[%c0_198, %c87_199] : memref<8x640xf32, #tpu.memory_space<vmem>>, vector<8x384xf32>
    %c8_200 = arith.constant 8 : index
    %c0_201 = arith.constant 0 : index
    %144 = vector.load %arg7[%c8_200, %c0_201] : memref<200x384xf32, #tpu.memory_space<vmem>>, vector<8x384xf32>
    tpu.vector_store %arg7[%c8_200, %c0_201], %143 {strides = array<i32>} : memref<200x384xf32, #tpu.memory_space<vmem>>, vector<8x384xf32>,
    %c0_202 = arith.constant 0 : index
    %c88_203 = arith.constant 88 : index
    %145 = vector.load %arg6[%c0_202, %c88_203] : memref<8x640xf32, #tpu.memory_space<vmem>>, vector<8x384xf32>
    %c16_204 = arith.constant 16 : index
    %c0_205 = arith.constant 0 : index
    %146 = vector.load %arg7[%c16_204, %c0_205] : memref<200x384xf32, #tpu.memory_space<vmem>>, vector<8x384xf32>
    tpu.vector_store %arg7[%c16_204, %c0_205], %145 {strides = array<i32>} : memref<200x384xf32, #tpu.memory_space<vmem>>, vector<8x384xf32>,
    %c0_206 = arith.constant 0 : index
    %c89_207 = arith.constant 89 : index
    %147 = vector.load %arg6[%c0_206, %c89_207] : memref<8x640xf32, #tpu.memory_space<vmem>>, vector<8x384xf32>
    %c24_208 = arith.constant 24 : index
    %c0_209 = arith.constant 0 : index
    %148 = vector.load %arg7[%c24_208, %c0_209] : memref<200x384xf32, #tpu.memory_space<vmem>>, vector<8x384xf32>
    tpu.vector_store %arg7[%c24_208, %c0_209], %147 {strides = array<i32>} : memref<200x384xf32, #tpu.memory_space<vmem>>, vector<8x384xf32>,
    %c0_210 = arith.constant 0 : index
    %c90_211 = arith.constant 90 : index
    %149 = vector.load %arg6[%c0_210, %c90_211] : memref<8x640xf32, #tpu.memory_space<vmem>>, vector<8x384xf32>
    %c32_212 = arith.constant 32 : index
    %c0_213 = arith.constant 0 : index
    %150 = vector.load %arg7[%c32_212, %c0_213] : memref<200x384xf32, #tpu.memory_space<vmem>>, vector<8x384xf32>
    tpu.vector_store %arg7[%c32_212, %c0_213], %149 {strides = array<i32>} : memref<200x384xf32, #tpu.memory_space<vmem>>, vector<8x384xf32>,
    %c0_214 = arith.constant 0 : index
    %c106_215 = arith.constant 106 : index
    %151 = vector.load %arg6[%c0_214, %c106_215] : memref<8x640xf32, #tpu.memory_space<vmem>>, vector<8x384xf32>
    %c40_216 = arith.constant 40 : index
    %c0_217 = arith.constant 0 : index
    %152 = vector.load %arg7[%c40_216, %c0_217] : memref<200x384xf32, #tpu.memory_space<vmem>>, vector<8x384xf32>
    tpu.vector_store %arg7[%c40_216, %c0_217], %151 {strides = array<i32>} : memref<200x384xf32, #tpu.memory_space<vmem>>, vector<8x384xf32>,
    %c0_218 = arith.constant 0 : index
    %c107_219 = arith.constant 107 : index
    %153 = vector.load %arg6[%c0_218, %c107_219] : memref<8x640xf32, #tpu.memory_space<vmem>>, vector<8x384xf32>
    %c48_220 = arith.constant 48 : index
    %c0_221 = arith.constant 0 : index
    %154 = vector.load %arg7[%c48_220, %c0_221] : memref<200x384xf32, #tpu.memory_space<vmem>>, vector<8x384xf32>
    tpu.vector_store %arg7[%c48_220, %c0_221], %153 {strides = array<i32>} : memref<200x384xf32, #tpu.memory_space<vmem>>, vector<8x384xf32>,
    %c0_222 = arith.constant 0 : index
    %c108_223 = arith.constant 108 : index
    %155 = vector.load %arg6[%c0_222, %c108_223] : memref<8x640xf32, #tpu.memory_space<vmem>>, vector<8x384xf32>
    %c56_224 = arith.constant 56 : index
    %c0_225 = arith.constant 0 : index
    %156 = vector.load %arg7[%c56_224, %c0_225] : memref<200x384xf32, #tpu.memory_space<vmem>>, vector<8x384xf32>
    tpu.vector_store %arg7[%c56_224, %c0_225], %155 {strides = array<i32>} : memref<200x384xf32, #tpu.memory_space<vmem>>, vector<8x384xf32>,
    %c0_226 = arith.constant 0 : index
    %c109_227 = arith.constant 109 : index
    %157 = vector.load %arg6[%c0_226, %c109_227] : memref<8x640xf32, #tpu.memory_space<vmem>>, vector<8x384xf32>
    %c64_228 = arith.constant 64 : index
    %c0_229 = arith.constant 0 : index
    %158 = vector.load %arg7[%c64_228, %c0_229] : memref<200x384xf32, #tpu.memory_space<vmem>>, vector<8x384xf32>
    tpu.vector_store %arg7[%c64_228, %c0_229], %157 {strides = array<i32>} : memref<200x384xf32, #tpu.memory_space<vmem>>, vector<8x384xf32>,
    %c0_230 = arith.constant 0 : index
    %c110_231 = arith.constant 110 : index
    %159 = vector.load %arg6[%c0_230, %c110_231] : memref<8x640xf32, #tpu.memory_space<vmem>>, vector<8x384xf32>
    %c72_232 = arith.constant 72 : index
    %c0_233 = arith.constant 0 : index
    %160 = vector.load %arg7[%c72_232, %c0_233] : memref<200x384xf32, #tpu.memory_space<vmem>>, vector<8x384xf32>
    tpu.vector_store %arg7[%c72_232, %c0_233], %159 {strides = array<i32>} : memref<200x384xf32, #tpu.memory_space<vmem>>, vector<8x384xf32>,
    %c0_234 = arith.constant 0 : index
    %c126_235 = arith.constant 126 : index
    %161 = vector.load %arg6[%c0_234, %c126_235] : memref<8x640xf32, #tpu.memory_space<vmem>>, vector<8x384xf32>
    %c80_236 = arith.constant 80 : index
    %c0_237 = arith.constant 0 : index
    %162 = vector.load %arg7[%c80_236, %c0_237] : memref<200x384xf32, #tpu.memory_space<vmem>>, vector<8x384xf32>
    tpu.vector_store %arg7[%c80_236, %c0_237], %161 {strides = array<i32>} : memref<200x384xf32, #tpu.memory_space<vmem>>, vector<8x384xf32>,
    %c0_238 = arith.constant 0 : index
    %c127_239 = arith.constant 127 : index
    %163 = vector.load %arg6[%c0_238, %c127_239] : memref<8x640xf32, #tpu.memory_space<vmem>>, vector<8x384xf32>
    %c88_240 = arith.constant 88 : index
    %c0_241 = arith.constant 0 : index
    %164 = vector.load %arg7[%c88_240, %c0_241] : memref<200x384xf32, #tpu.memory_space<vmem>>, vector<8x384xf32>
    tpu.vector_store %arg7[%c88_240, %c0_241], %163 {strides = array<i32>} : memref<200x384xf32, #tpu.memory_space<vmem>>, vector<8x384xf32>,
    %c0_242 = arith.constant 0 : index
    %c128_243 = arith.constant 128 : index
    %165 = vector.load %arg6[%c0_242, %c128_243] : memref<8x640xf32, #tpu.memory_space<vmem>>, vector<8x384xf32>
    %c96_244 = arith.constant 96 : index
    %c0_245 = arith.constant 0 : index
    %166 = vector.load %arg7[%c96_244, %c0_245] : memref<200x384xf32, #tpu.memory_space<vmem>>, vector<8x384xf32>
    tpu.vector_store %arg7[%c96_244, %c0_245], %165 {strides = array<i32>} : memref<200x384xf32, #tpu.memory_space<vmem>>, vector<8x384xf32>,
    %c0_246 = arith.constant 0 : index
    %c129_247 = arith.constant 129 : index
    %167 = vector.load %arg6[%c0_246, %c129_247] : memref<8x640xf32, #tpu.memory_space<vmem>>, vector<8x384xf32>
    %c104_248 = arith.constant 104 : index
    %c0_249 = arith.constant 0 : index
    %168 = vector.load %arg7[%c104_248, %c0_249] : memref<200x384xf32, #tpu.memory_space<vmem>>, vector<8x384xf32>
    tpu.vector_store %arg7[%c104_248, %c0_249], %167 {strides = array<i32>} : memref<200x384xf32, #tpu.memory_space<vmem>>, vector<8x384xf32>,
    %c0_250 = arith.constant 0 : index
    %c130_251 = arith.constant 130 : index
    %169 = vector.load %arg6[%c0_250, %c130_251] : memref<8x640xf32, #tpu.memory_space<vmem>>, vector<8x384xf32>
    %c112_252 = arith.constant 112 : index
    %c0_253 = arith.constant 0 : index
    %170 = vector.load %arg7[%c112_252, %c0_253] : memref<200x384xf32, #tpu.memory_space<vmem>>, vector<8x384xf32>
    tpu.vector_store %arg7[%c112_252, %c0_253], %169 {strides = array<i32>} : memref<200x384xf32, #tpu.memory_space<vmem>>, vector<8x384xf32>,
    %c0_254 = arith.constant 0 : index
    %c146_255 = arith.constant 146 : index
    %171 = vector.load %arg6[%c0_254, %c146_255] : memref<8x640xf32, #tpu.memory_space<vmem>>, vector<8x384xf32>
    %c120_256 = arith.constant 120 : index
    %c0_257 = arith.constant 0 : index
    %172 = vector.load %arg7[%c120_256, %c0_257] : memref<200x384xf32, #tpu.memory_space<vmem>>, vector<8x384xf32>
    tpu.vector_store %arg7[%c120_256, %c0_257], %171 {strides = array<i32>} : memref<200x384xf32, #tpu.memory_space<vmem>>, vector<8x384xf32>,
    %c0_258 = arith.constant 0 : index
    %c147_259 = arith.constant 147 : index
    %173 = vector.load %arg6[%c0_258, %c147_259] : memref<8x640xf32, #tpu.memory_space<vmem>>, vector<8x384xf32>
    %c128_260 = arith.constant 128 : index
    %c0_261 = arith.constant 0 : index
    %174 = vector.load %arg7[%c128_260, %c0_261] : memref<200x384xf32, #tpu.memory_space<vmem>>, vector<8x384xf32>
    tpu.vector_store %arg7[%c128_260, %c0_261], %173 {strides = array<i32>} : memref<200x384xf32, #tpu.memory_space<vmem>>, vector<8x384xf32>,
    %c0_262 = arith.constant 0 : index
    %c148_263 = arith.constant 148 : index
    %175 = vector.load %arg6[%c0_262, %c148_263] : memref<8x640xf32, #tpu.memory_space<vmem>>, vector<8x384xf32>
    %c136_264 = arith.constant 136 : index
    %c0_265 = arith.constant 0 : index
    %176 = vector.load %arg7[%c136_264, %c0_265] : memref<200x384xf32, #tpu.memory_space<vmem>>, vector<8x384xf32>
    tpu.vector_store %arg7[%c136_264, %c0_265], %175 {strides = array<i32>} : memref<200x384xf32, #tpu.memory_space<vmem>>, vector<8x384xf32>,
    %c0_266 = arith.constant 0 : index
    %c149_267 = arith.constant 149 : index
    %177 = vector.load %arg6[%c0_266, %c149_267] : memref<8x640xf32, #tpu.memory_space<vmem>>, vector<8x384xf32>
    %c144_268 = arith.constant 144 : index
    %c0_269 = arith.constant 0 : index
    %178 = vector.load %arg7[%c144_268, %c0_269] : memref<200x384xf32, #tpu.memory_space<vmem>>, vector<8x384xf32>
    tpu.vector_store %arg7[%c144_268, %c0_269], %177 {strides = array<i32>} : memref<200x384xf32, #tpu.memory_space<vmem>>, vector<8x384xf32>,
    %c0_270 = arith.constant 0 : index
    %c150_271 = arith.constant 150 : index
    %179 = vector.load %arg6[%c0_270, %c150_271] : memref<8x640xf32, #tpu.memory_space<vmem>>, vector<8x384xf32>
    %c152_272 = arith.constant 152 : index
    %c0_273 = arith.constant 0 : index
    %180 = vector.load %arg7[%c152_272, %c0_273] : memref<200x384xf32, #tpu.memory_space<vmem>>, vector<8x384xf32>
    tpu.vector_store %arg7[%c152_272, %c0_273], %179 {strides = array<i32>} : memref<200x384xf32, #tpu.memory_space<vmem>>, vector<8x384xf32>,
    %c0_274 = arith.constant 0 : index
    %c166_275 = arith.constant 166 : index
    %181 = vector.load %arg6[%c0_274, %c166_275] : memref<8x640xf32, #tpu.memory_space<vmem>>, vector<8x384xf32>
    %c160_276 = arith.constant 160 : index
    %c0_277 = arith.constant 0 : index
    %182 = vector.load %arg7[%c160_276, %c0_277] : memref<200x384xf32, #tpu.memory_space<vmem>>, vector<8x384xf32>
    tpu.vector_store %arg7[%c160_276, %c0_277], %181 {strides = array<i32>} : memref<200x384xf32, #tpu.memory_space<vmem>>, vector<8x384xf32>,
    %c0_278 = arith.constant 0 : index
    %c167_279 = arith.constant 167 : index
    %183 = vector.load %arg6[%c0_278, %c167_279] : memref<8x640xf32, #tpu.memory_space<vmem>>, vector<8x384xf32>
    %c168_280 = arith.constant 168 : index
    %c0_281 = arith.constant 0 : index
    %184 = vector.load %arg7[%c168_280, %c0_281] : memref<200x384xf32, #tpu.memory_space<vmem>>, vector<8x384xf32>
    tpu.vector_store %arg7[%c168_280, %c0_281], %183 {strides = array<i32>} : memref<200x384xf32, #tpu.memory_space<vmem>>, vector<8x384xf32>,
    %c0_282 = arith.constant 0 : index
    %c168_283 = arith.constant 168 : index
    %185 = vector.load %arg6[%c0_282, %c168_283] : memref<8x640xf32, #tpu.memory_space<vmem>>, vector<8x384xf32>
    %c176_284 = arith.constant 176 : index
    %c0_285 = arith.constant 0 : index
    %186 = vector.load %arg7[%c176_284, %c0_285] : memref<200x384xf32, #tpu.memory_space<vmem>>, vector<8x384xf32>
    tpu.vector_store %arg7[%c176_284, %c0_285], %185 {strides = array<i32>} : memref<200x384xf32, #tpu.memory_space<vmem>>, vector<8x384xf32>,
    %c0_286 = arith.constant 0 : index
    %c169_287 = arith.constant 169 : index
    %187 = vector.load %arg6[%c0_286, %c169_287] : memref<8x640xf32, #tpu.memory_space<vmem>>, vector<8x384xf32>
    %c184_288 = arith.constant 184 : index
    %c0_289 = arith.constant 0 : index
    %188 = vector.load %arg7[%c184_288, %c0_289] : memref<200x384xf32, #tpu.memory_space<vmem>>, vector<8x384xf32>
    tpu.vector_store %arg7[%c184_288, %c0_289], %187 {strides = array<i32>} : memref<200x384xf32, #tpu.memory_space<vmem>>, vector<8x384xf32>,
    %c0_290 = arith.constant 0 : index
    %c170_291 = arith.constant 170 : index
    %189 = vector.load %arg6[%c0_290, %c170_291] : memref<8x640xf32, #tpu.memory_space<vmem>>, vector<8x384xf32>
    %c192_292 = arith.constant 192 : index
    %c0_293 = arith.constant 0 : index
    %190 = vector.load %arg7[%c192_292, %c0_293] : memref<200x384xf32, #tpu.memory_space<vmem>>, vector<8x384xf32>
    tpu.vector_store %arg7[%c192_292, %c0_293], %189 {strides = array<i32>} : memref<200x384xf32, #tpu.memory_space<vmem>>, vector<8x384xf32>,
    %c2 = arith.constant 2 : index
    %c0_294 = arith.constant 0 : index
    %c0_295 = arith.constant 0 : index
    %191 = vector.load %arg2[%c2, %c0_294, %c0_295] : memref<5x8x200xf32, #tpu.memory_space<vmem>>, vector<1x8x200xf32>
    %192 = vector.shape_cast %191 : vector<1x8x200xf32> to vector<8x200xf32>
    %c0_296 = arith.constant 0 : index
    %c0_297 = arith.constant 0 : index
    %193 = vector.load %arg7[%c0_296, %c0_297] : memref<200x384xf32, #tpu.memory_space<vmem>>, vector<200x384xf32>
    %cst_298 = arith.constant dense<0.000000e+00> : vector<8x384xf32>
    %194 = tpu.matmul %192, %193, %cst_298 {dimension_numbers = #tpu.dot_dimension_numbers<[1], [0], [0], [1], [0, 0, 1, 1], [], []>} : vector<8x200xf32>, vector<200x384xf32>, vector<8x384xf32> -> vector<8x384xf32>
    %c2_299 = arith.constant 2 : index
    %c0_300 = arith.constant 0 : index
    %c0_301 = arith.constant 0 : index
    %195 = vector.load %arg3[%c2_299, %c0_300, %c0_301] : memref<5x8x1xf32, #tpu.memory_space<vmem>>, vector<1x8x1xf32>
    %196 = vector.shape_cast %195 : vector<1x8x1xf32> to vector<8x1xf32>
    %197 = vector.broadcast %196 : vector<8x1xf32> to vector<8x384xf32>
    %198 = arith.addf %194, %197 : vector<8x384xf32>
    %cst_302 = arith.constant 0.000000e+00 : f32
    %199 = vector.broadcast %cst_302 : f32 to vector<8x384xf32>
    %200 = arith.cmpf ogt, %198, %199 : vector<8x384xf32>
    %cst_303 = arith.constant 0.00999999977 : f32
    %201 = vector.broadcast %cst_303 : f32 to vector<8x384xf32>
    %202 = arith.mulf %201, %198 : vector<8x384xf32>
    %203 = arith.select %200, %198, %202 : vector<8x384xi1>, vector<8x384xf32>
    %c0_304 = arith.constant 0 : index
    %c0_305 = arith.constant 0 : index
    %204 = vector.load %arg4[%c0_304, %c0_305] : memref<1x384xf32, #tpu.memory_space<vmem>>, vector<1x384xf32>
    %205 = vector.broadcast %204 : vector<1x384xf32> to vector<8x384xf32>
    %206 = arith.mulf %203, %205 : vector<8x384xf32>
    %c0_306 = arith.constant 0 : index
    %c0_307 = arith.constant 0 : index
    %207 = vector.load %arg8[%c0_306, %c0_307] : memref<8x384xf32, #tpu.memory_space<vmem>>, vector<8x384xf32>
    tpu.vector_store %arg8[%c0_306, %c0_307], %206 {strides = array<i32>} : memref<8x384xf32, #tpu.memory_space<vmem>>, vector<8x384xf32>,
    %c0_308 = arith.constant 0 : index
    %c0_309 = arith.constant 0 : index
    %208 = vector.load %arg8[%c0_308, %c0_309] : memref<8x384xf32, #tpu.memory_space<vmem>>, vector<8x384xf32>
    %c0_310 = arith.constant 0 : index
    %c128_311 = arith.constant 128 : index
    %209 = vector.load %arg6[%c0_310, %c128_311] : memref<8x640xf32, #tpu.memory_space<vmem>>, vector<8x384xf32>
    tpu.vector_store %arg6[%c0_310, %c128_311], %208 {strides = array<i32>} : memref<8x640xf32, #tpu.memory_space<vmem>>, vector<8x384xf32>,
    %c0_312 = arith.constant 0 : index
    %c86_313 = arith.constant 86 : index
    %210 = vector.load %arg6[%c0_312, %c86_313] : memref<8x640xf32, #tpu.memory_space<vmem>>, vector<8x384xf32>
    %c0_314 = arith.constant 0 : index
    %c0_315 = arith.constant 0 : index
    %211 = vector.load %arg7[%c0_314, %c0_315] : memref<200x384xf32, #tpu.memory_space<vmem>>, vector<8x384xf32>
    tpu.vector_store %arg7[%c0_314, %c0_315], %210 {strides = array<i32>} : memref<200x384xf32, #tpu.memory_space<vmem>>, vector<8x384xf32>,
    %c0_316 = arith.constant 0 : index
    %c87_317 = arith.constant 87 : index
    %212 = vector.load %arg6[%c0_316, %c87_317] : memref<8x640xf32, #tpu.memory_space<vmem>>, vector<8x384xf32>
    %c8_318 = arith.constant 8 : index
    %c0_319 = arith.constant 0 : index
    %213 = vector.load %arg7[%c8_318, %c0_319] : memref<200x384xf32, #tpu.memory_space<vmem>>, vector<8x384xf32>
    tpu.vector_store %arg7[%c8_318, %c0_319], %212 {strides = array<i32>} : memref<200x384xf32, #tpu.memory_space<vmem>>, vector<8x384xf32>,
    %c0_320 = arith.constant 0 : index
    %c88_321 = arith.constant 88 : index
    %214 = vector.load %arg6[%c0_320, %c88_321] : memref<8x640xf32, #tpu.memory_space<vmem>>, vector<8x384xf32>
    %c16_322 = arith.constant 16 : index
    %c0_323 = arith.constant 0 : index
    %215 = vector.load %arg7[%c16_322, %c0_323] : memref<200x384xf32, #tpu.memory_space<vmem>>, vector<8x384xf32>
    tpu.vector_store %arg7[%c16_322, %c0_323], %214 {strides = array<i32>} : memref<200x384xf32, #tpu.memory_space<vmem>>, vector<8x384xf32>,
    %c0_324 = arith.constant 0 : index
    %c89_325 = arith.constant 89 : index
    %216 = vector.load %arg6[%c0_324, %c89_325] : memref<8x640xf32, #tpu.memory_space<vmem>>, vector<8x384xf32>
    %c24_326 = arith.constant 24 : index
    %c0_327 = arith.constant 0 : index
    %217 = vector.load %arg7[%c24_326, %c0_327] : memref<200x384xf32, #tpu.memory_space<vmem>>, vector<8x384xf32>
    tpu.vector_store %arg7[%c24_326, %c0_327], %216 {strides = array<i32>} : memref<200x384xf32, #tpu.memory_space<vmem>>, vector<8x384xf32>,
    %c0_328 = arith.constant 0 : index
    %c90_329 = arith.constant 90 : index
    %218 = vector.load %arg6[%c0_328, %c90_329] : memref<8x640xf32, #tpu.memory_space<vmem>>, vector<8x384xf32>
    %c32_330 = arith.constant 32 : index
    %c0_331 = arith.constant 0 : index
    %219 = vector.load %arg7[%c32_330, %c0_331] : memref<200x384xf32, #tpu.memory_space<vmem>>, vector<8x384xf32>
    tpu.vector_store %arg7[%c32_330, %c0_331], %218 {strides = array<i32>} : memref<200x384xf32, #tpu.memory_space<vmem>>, vector<8x384xf32>,
    %c0_332 = arith.constant 0 : index
    %c106_333 = arith.constant 106 : index
    %220 = vector.load %arg6[%c0_332, %c106_333] : memref<8x640xf32, #tpu.memory_space<vmem>>, vector<8x384xf32>
    %c40_334 = arith.constant 40 : index
    %c0_335 = arith.constant 0 : index
    %221 = vector.load %arg7[%c40_334, %c0_335] : memref<200x384xf32, #tpu.memory_space<vmem>>, vector<8x384xf32>
    tpu.vector_store %arg7[%c40_334, %c0_335], %220 {strides = array<i32>} : memref<200x384xf32, #tpu.memory_space<vmem>>, vector<8x384xf32>,
    %c0_336 = arith.constant 0 : index
    %c107_337 = arith.constant 107 : index
    %222 = vector.load %arg6[%c0_336, %c107_337] : memref<8x640xf32, #tpu.memory_space<vmem>>, vector<8x384xf32>
    %c48_338 = arith.constant 48 : index
    %c0_339 = arith.constant 0 : index
    %223 = vector.load %arg7[%c48_338, %c0_339] : memref<200x384xf32, #tpu.memory_space<vmem>>, vector<8x384xf32>
    tpu.vector_store %arg7[%c48_338, %c0_339], %222 {strides = array<i32>} : memref<200x384xf32, #tpu.memory_space<vmem>>, vector<8x384xf32>,
    %c0_340 = arith.constant 0 : index
    %c108_341 = arith.constant 108 : index
    %224 = vector.load %arg6[%c0_340, %c108_341] : memref<8x640xf32, #tpu.memory_space<vmem>>, vector<8x384xf32>
    %c56_342 = arith.constant 56 : index
    %c0_343 = arith.constant 0 : index
    %225 = vector.load %arg7[%c56_342, %c0_343] : memref<200x384xf32, #tpu.memory_space<vmem>>, vector<8x384xf32>
    tpu.vector_store %arg7[%c56_342, %c0_343], %224 {strides = array<i32>} : memref<200x384xf32, #tpu.memory_space<vmem>>, vector<8x384xf32>,
    %c0_344 = arith.constant 0 : index
    %c109_345 = arith.constant 109 : index
    %226 = vector.load %arg6[%c0_344, %c109_345] : memref<8x640xf32, #tpu.memory_space<vmem>>, vector<8x384xf32>
    %c64_346 = arith.constant 64 : index
    %c0_347 = arith.constant 0 : index
    %227 = vector.load %arg7[%c64_346, %c0_347] : memref<200x384xf32, #tpu.memory_space<vmem>>, vector<8x384xf32>
    tpu.vector_store %arg7[%c64_346, %c0_347], %226 {strides = array<i32>} : memref<200x384xf32, #tpu.memory_space<vmem>>, vector<8x384xf32>,
    %c0_348 = arith.constant 0 : index
    %c110_349 = arith.constant 110 : index
    %228 = vector.load %arg6[%c0_348, %c110_349] : memref<8x640xf32, #tpu.memory_space<vmem>>, vector<8x384xf32>
    %c72_350 = arith.constant 72 : index
    %c0_351 = arith.constant 0 : index
    %229 = vector.load %arg7[%c72_350, %c0_351] : memref<200x384xf32, #tpu.memory_space<vmem>>, vector<8x384xf32>
    tpu.vector_store %arg7[%c72_350, %c0_351], %228 {strides = array<i32>} : memref<200x384xf32, #tpu.memory_space<vmem>>, vector<8x384xf32>,
    %c0_352 = arith.constant 0 : index
    %c126_353 = arith.constant 126 : index
    %230 = vector.load %arg6[%c0_352, %c126_353] : memref<8x640xf32, #tpu.memory_space<vmem>>, vector<8x384xf32>
    %c80_354 = arith.constant 80 : index
    %c0_355 = arith.constant 0 : index
    %231 = vector.load %arg7[%c80_354, %c0_355] : memref<200x384xf32, #tpu.memory_space<vmem>>, vector<8x384xf32>
    tpu.vector_store %arg7[%c80_354, %c0_355], %230 {strides = array<i32>} : memref<200x384xf32, #tpu.memory_space<vmem>>, vector<8x384xf32>,
    %c0_356 = arith.constant 0 : index
    %c127_357 = arith.constant 127 : index
    %232 = vector.load %arg6[%c0_356, %c127_357] : memref<8x640xf32, #tpu.memory_space<vmem>>, vector<8x384xf32>
    %c88_358 = arith.constant 88 : index
    %c0_359 = arith.constant 0 : index
    %233 = vector.load %arg7[%c88_358, %c0_359] : memref<200x384xf32, #tpu.memory_space<vmem>>, vector<8x384xf32>
    tpu.vector_store %arg7[%c88_358, %c0_359], %232 {strides = array<i32>} : memref<200x384xf32, #tpu.memory_space<vmem>>, vector<8x384xf32>,
    %c0_360 = arith.constant 0 : index
    %c128_361 = arith.constant 128 : index
    %234 = vector.load %arg6[%c0_360, %c128_361] : memref<8x640xf32, #tpu.memory_space<vmem>>, vector<8x384xf32>
    %c96_362 = arith.constant 96 : index
    %c0_363 = arith.constant 0 : index
    %235 = vector.load %arg7[%c96_362, %c0_363] : memref<200x384xf32, #tpu.memory_space<vmem>>, vector<8x384xf32>
    tpu.vector_store %arg7[%c96_362, %c0_363], %234 {strides = array<i32>} : memref<200x384xf32, #tpu.memory_space<vmem>>, vector<8x384xf32>,
    %c0_364 = arith.constant 0 : index
    %c129_365 = arith.constant 129 : index
    %236 = vector.load %arg6[%c0_364, %c129_365] : memref<8x640xf32, #tpu.memory_space<vmem>>, vector<8x384xf32>
    %c104_366 = arith.constant 104 : index
    %c0_367 = arith.constant 0 : index
    %237 = vector.load %arg7[%c104_366, %c0_367] : memref<200x384xf32, #tpu.memory_space<vmem>>, vector<8x384xf32>
    tpu.vector_store %arg7[%c104_366, %c0_367], %236 {strides = array<i32>} : memref<200x384xf32, #tpu.memory_space<vmem>>, vector<8x384xf32>,
    %c0_368 = arith.constant 0 : index
    %c130_369 = arith.constant 130 : index
    %238 = vector.load %arg6[%c0_368, %c130_369] : memref<8x640xf32, #tpu.memory_space<vmem>>, vector<8x384xf32>
    %c112_370 = arith.constant 112 : index
    %c0_371 = arith.constant 0 : index
    %239 = vector.load %arg7[%c112_370, %c0_371] : memref<200x384xf32, #tpu.memory_space<vmem>>, vector<8x384xf32>
    tpu.vector_store %arg7[%c112_370, %c0_371], %238 {strides = array<i32>} : memref<200x384xf32, #tpu.memory_space<vmem>>, vector<8x384xf32>,
    %c0_372 = arith.constant 0 : index
    %c146_373 = arith.constant 146 : index
    %240 = vector.load %arg6[%c0_372, %c146_373] : memref<8x640xf32, #tpu.memory_space<vmem>>, vector<8x384xf32>
    %c120_374 = arith.constant 120 : index
    %c0_375 = arith.constant 0 : index
    %241 = vector.load %arg7[%c120_374, %c0_375] : memref<200x384xf32, #tpu.memory_space<vmem>>, vector<8x384xf32>
    tpu.vector_store %arg7[%c120_374, %c0_375], %240 {strides = array<i32>} : memref<200x384xf32, #tpu.memory_space<vmem>>, vector<8x384xf32>,
    %c0_376 = arith.constant 0 : index
    %c147_377 = arith.constant 147 : index
    %242 = vector.load %arg6[%c0_376, %c147_377] : memref<8x640xf32, #tpu.memory_space<vmem>>, vector<8x384xf32>
    %c128_378 = arith.constant 128 : index
    %c0_379 = arith.constant 0 : index
    %243 = vector.load %arg7[%c128_378, %c0_379] : memref<200x384xf32, #tpu.memory_space<vmem>>, vector<8x384xf32>
    tpu.vector_store %arg7[%c128_378, %c0_379], %242 {strides = array<i32>} : memref<200x384xf32, #tpu.memory_space<vmem>>, vector<8x384xf32>,
    %c0_380 = arith.constant 0 : index
    %c148_381 = arith.constant 148 : index
    %244 = vector.load %arg6[%c0_380, %c148_381] : memref<8x640xf32, #tpu.memory_space<vmem>>, vector<8x384xf32>
    %c136_382 = arith.constant 136 : index
    %c0_383 = arith.constant 0 : index
    %245 = vector.load %arg7[%c136_382, %c0_383] : memref<200x384xf32, #tpu.memory_space<vmem>>, vector<8x384xf32>
    tpu.vector_store %arg7[%c136_382, %c0_383], %244 {strides = array<i32>} : memref<200x384xf32, #tpu.memory_space<vmem>>, vector<8x384xf32>,
    %c0_384 = arith.constant 0 : index
    %c149_385 = arith.constant 149 : index
    %246 = vector.load %arg6[%c0_384, %c149_385] : memref<8x640xf32, #tpu.memory_space<vmem>>, vector<8x384xf32>
    %c144_386 = arith.constant 144 : index
    %c0_387 = arith.constant 0 : index
    %247 = vector.load %arg7[%c144_386, %c0_387] : memref<200x384xf32, #tpu.memory_space<vmem>>, vector<8x384xf32>
    tpu.vector_store %arg7[%c144_386, %c0_387], %246 {strides = array<i32>} : memref<200x384xf32, #tpu.memory_space<vmem>>, vector<8x384xf32>,
    %c0_388 = arith.constant 0 : index
    %c150_389 = arith.constant 150 : index
    %248 = vector.load %arg6[%c0_388, %c150_389] : memref<8x640xf32, #tpu.memory_space<vmem>>, vector<8x384xf32>
    %c152_390 = arith.constant 152 : index
    %c0_391 = arith.constant 0 : index
    %249 = vector.load %arg7[%c152_390, %c0_391] : memref<200x384xf32, #tpu.memory_space<vmem>>, vector<8x384xf32>
    tpu.vector_store %arg7[%c152_390, %c0_391], %248 {strides = array<i32>} : memref<200x384xf32, #tpu.memory_space<vmem>>, vector<8x384xf32>,
    %c0_392 = arith.constant 0 : index
    %c166_393 = arith.constant 166 : index
    %250 = vector.load %arg6[%c0_392, %c166_393] : memref<8x640xf32, #tpu.memory_space<vmem>>, vector<8x384xf32>
    %c160_394 = arith.constant 160 : index
    %c0_395 = arith.constant 0 : index
    %251 = vector.load %arg7[%c160_394, %c0_395] : memref<200x384xf32, #tpu.memory_space<vmem>>, vector<8x384xf32>
    tpu.vector_store %arg7[%c160_394, %c0_395], %250 {strides = array<i32>} : memref<200x384xf32, #tpu.memory_space<vmem>>, vector<8x384xf32>,
    %c0_396 = arith.constant 0 : index
    %c167_397 = arith.constant 167 : index
    %252 = vector.load %arg6[%c0_396, %c167_397] : memref<8x640xf32, #tpu.memory_space<vmem>>, vector<8x384xf32>
    %c168_398 = arith.constant 168 : index
    %c0_399 = arith.constant 0 : index
    %253 = vector.load %arg7[%c168_398, %c0_399] : memref<200x384xf32, #tpu.memory_space<vmem>>, vector<8x384xf32>
    tpu.vector_store %arg7[%c168_398, %c0_399], %252 {strides = array<i32>} : memref<200x384xf32, #tpu.memory_space<vmem>>, vector<8x384xf32>,
    %c0_400 = arith.constant 0 : index
    %c168_401 = arith.constant 168 : index
    %254 = vector.load %arg6[%c0_400, %c168_401] : memref<8x640xf32, #tpu.memory_space<vmem>>, vector<8x384xf32>
    %c176_402 = arith.constant 176 : index
    %c0_403 = arith.constant 0 : index
    %255 = vector.load %arg7[%c176_402, %c0_403] : memref<200x384xf32, #tpu.memory_space<vmem>>, vector<8x384xf32>
    tpu.vector_store %arg7[%c176_402, %c0_403], %254 {strides = array<i32>} : memref<200x384xf32, #tpu.memory_space<vmem>>, vector<8x384xf32>,
    %c0_404 = arith.constant 0 : index
    %c169_405 = arith.constant 169 : index
    %256 = vector.load %arg6[%c0_404, %c169_405] : memref<8x640xf32, #tpu.memory_space<vmem>>, vector<8x384xf32>
    %c184_406 = arith.constant 184 : index
    %c0_407 = arith.constant 0 : index
    %257 = vector.load %arg7[%c184_406, %c0_407] : memref<200x384xf32, #tpu.memory_space<vmem>>, vector<8x384xf32>
    tpu.vector_store %arg7[%c184_406, %c0_407], %256 {strides = array<i32>} : memref<200x384xf32, #tpu.memory_space<vmem>>, vector<8x384xf32>,
    %c0_408 = arith.constant 0 : index
    %c170_409 = arith.constant 170 : index
    %258 = vector.load %arg6[%c0_408, %c170_409] : memref<8x640xf32, #tpu.memory_space<vmem>>, vector<8x384xf32>
    %c192_410 = arith.constant 192 : index
    %c0_411 = arith.constant 0 : index
    %259 = vector.load %arg7[%c192_410, %c0_411] : memref<200x384xf32, #tpu.memory_space<vmem>>, vector<8x384xf32>
    tpu.vector_store %arg7[%c192_410, %c0_411], %258 {strides = array<i32>} : memref<200x384xf32, #tpu.memory_space<vmem>>, vector<8x384xf32>,
    %c3 = arith.constant 3 : index
    %c0_412 = arith.constant 0 : index
    %c0_413 = arith.constant 0 : index
    %260 = vector.load %arg2[%c3, %c0_412, %c0_413] : memref<5x8x200xf32, #tpu.memory_space<vmem>>, vector<1x8x200xf32>
    %261 = vector.shape_cast %260 : vector<1x8x200xf32> to vector<8x200xf32>
    %c0_414 = arith.constant 0 : index
    %c0_415 = arith.constant 0 : index
    %262 = vector.load %arg7[%c0_414, %c0_415] : memref<200x384xf32, #tpu.memory_space<vmem>>, vector<200x384xf32>
    %cst_416 = arith.constant dense<0.000000e+00> : vector<8x384xf32>
    %263 = tpu.matmul %261, %262, %cst_416 {dimension_numbers = #tpu.dot_dimension_numbers<[1], [0], [0], [1], [0, 0, 1, 1], [], []>} : vector<8x200xf32>, vector<200x384xf32>, vector<8x384xf32> -> vector<8x384xf32>
    %c3_417 = arith.constant 3 : index
    %c0_418 = arith.constant 0 : index
    %c0_419 = arith.constant 0 : index
    %264 = vector.load %arg3[%c3_417, %c0_418, %c0_419] : memref<5x8x1xf32, #tpu.memory_space<vmem>>, vector<1x8x1xf32>
    %265 = vector.shape_cast %264 : vector<1x8x1xf32> to vector<8x1xf32>
    %266 = vector.broadcast %265 : vector<8x1xf32> to vector<8x384xf32>
    %267 = arith.addf %263, %266 : vector<8x384xf32>
    %cst_420 = arith.constant 0.000000e+00 : f32
    %268 = vector.broadcast %cst_420 : f32 to vector<8x384xf32>
    %269 = arith.cmpf ogt, %267, %268 : vector<8x384xf32>
    %cst_421 = arith.constant 0.00999999977 : f32
    %270 = vector.broadcast %cst_421 : f32 to vector<8x384xf32>
    %271 = arith.mulf %270, %267 : vector<8x384xf32>
    %272 = arith.select %269, %267, %271 : vector<8x384xi1>, vector<8x384xf32>
    %c0_422 = arith.constant 0 : index
    %c0_423 = arith.constant 0 : index
    %273 = vector.load %arg4[%c0_422, %c0_423] : memref<1x384xf32, #tpu.memory_space<vmem>>, vector<1x384xf32>
    %274 = vector.broadcast %273 : vector<1x384xf32> to vector<8x384xf32>
    %275 = arith.mulf %272, %274 : vector<8x384xf32>
    %c0_424 = arith.constant 0 : index
    %c0_425 = arith.constant 0 : index
    %276 = vector.load %arg8[%c0_424, %c0_425] : memref<8x384xf32, #tpu.memory_space<vmem>>, vector<8x384xf32>
    tpu.vector_store %arg8[%c0_424, %c0_425], %275 {strides = array<i32>} : memref<8x384xf32, #tpu.memory_space<vmem>>, vector<8x384xf32>,
    %c0_426 = arith.constant 0 : index
    %c0_427 = arith.constant 0 : index
    %277 = vector.load %arg8[%c0_426, %c0_427] : memref<8x384xf32, #tpu.memory_space<vmem>>, vector<8x384xf32>
    %c0_428 = arith.constant 0 : index
    %c128_429 = arith.constant 128 : index
    %278 = vector.load %arg6[%c0_428, %c128_429] : memref<8x640xf32, #tpu.memory_space<vmem>>, vector<8x384xf32>
    tpu.vector_store %arg6[%c0_428, %c128_429], %277 {strides = array<i32>} : memref<8x640xf32, #tpu.memory_space<vmem>>, vector<8x384xf32>,
    %c0_430 = arith.constant 0 : index
    %c86_431 = arith.constant 86 : index
    %279 = vector.load %arg6[%c0_430, %c86_431] : memref<8x640xf32, #tpu.memory_space<vmem>>, vector<8x384xf32>
    %c0_432 = arith.constant 0 : index
    %c0_433 = arith.constant 0 : index
    %280 = vector.load %arg7[%c0_432, %c0_433] : memref<200x384xf32, #tpu.memory_space<vmem>>, vector<8x384xf32>
    tpu.vector_store %arg7[%c0_432, %c0_433], %279 {strides = array<i32>} : memref<200x384xf32, #tpu.memory_space<vmem>>, vector<8x384xf32>,
    %c0_434 = arith.constant 0 : index
    %c87_435 = arith.constant 87 : index
    %281 = vector.load %arg6[%c0_434, %c87_435] : memref<8x640xf32, #tpu.memory_space<vmem>>, vector<8x384xf32>
    %c8_436 = arith.constant 8 : index
    %c0_437 = arith.constant 0 : index
    %282 = vector.load %arg7[%c8_436, %c0_437] : memref<200x384xf32, #tpu.memory_space<vmem>>, vector<8x384xf32>
    tpu.vector_store %arg7[%c8_436, %c0_437], %281 {strides = array<i32>} : memref<200x384xf32, #tpu.memory_space<vmem>>, vector<8x384xf32>,
    %c0_438 = arith.constant 0 : index
    %c88_439 = arith.constant 88 : index
    %283 = vector.load %arg6[%c0_438, %c88_439] : memref<8x640xf32, #tpu.memory_space<vmem>>, vector<8x384xf32>
    %c16_440 = arith.constant 16 : index
    %c0_441 = arith.constant 0 : index
    %284 = vector.load %arg7[%c16_440, %c0_441] : memref<200x384xf32, #tpu.memory_space<vmem>>, vector<8x384xf32>
    tpu.vector_store %arg7[%c16_440, %c0_441], %283 {strides = array<i32>} : memref<200x384xf32, #tpu.memory_space<vmem>>, vector<8x384xf32>,
    %c0_442 = arith.constant 0 : index
    %c89_443 = arith.constant 89 : index
    %285 = vector.load %arg6[%c0_442, %c89_443] : memref<8x640xf32, #tpu.memory_space<vmem>>, vector<8x384xf32>
    %c24_444 = arith.constant 24 : index
    %c0_445 = arith.constant 0 : index
    %286 = vector.load %arg7[%c24_444, %c0_445] : memref<200x384xf32, #tpu.memory_space<vmem>>, vector<8x384xf32>
    tpu.vector_store %arg7[%c24_444, %c0_445], %285 {strides = array<i32>} : memref<200x384xf32, #tpu.memory_space<vmem>>, vector<8x384xf32>,
    %c0_446 = arith.constant 0 : index
    %c90_447 = arith.constant 90 : index
    %287 = vector.load %arg6[%c0_446, %c90_447] : memref<8x640xf32, #tpu.memory_space<vmem>>, vector<8x384xf32>
    %c32_448 = arith.constant 32 : index
    %c0_449 = arith.constant 0 : index
    %288 = vector.load %arg7[%c32_448, %c0_449] : memref<200x384xf32, #tpu.memory_space<vmem>>, vector<8x384xf32>
    tpu.vector_store %arg7[%c32_448, %c0_449], %287 {strides = array<i32>} : memref<200x384xf32, #tpu.memory_space<vmem>>, vector<8x384xf32>,
    %c0_450 = arith.constant 0 : index
    %c106_451 = arith.constant 106 : index
    %289 = vector.load %arg6[%c0_450, %c106_451] : memref<8x640xf32, #tpu.memory_space<vmem>>, vector<8x384xf32>
    %c40_452 = arith.constant 40 : index
    %c0_453 = arith.constant 0 : index
    %290 = vector.load %arg7[%c40_452, %c0_453] : memref<200x384xf32, #tpu.memory_space<vmem>>, vector<8x384xf32>
    tpu.vector_store %arg7[%c40_452, %c0_453], %289 {strides = array<i32>} : memref<200x384xf32, #tpu.memory_space<vmem>>, vector<8x384xf32>,
    %c0_454 = arith.constant 0 : index
    %c107_455 = arith.constant 107 : index
    %291 = vector.load %arg6[%c0_454, %c107_455] : memref<8x640xf32, #tpu.memory_space<vmem>>, vector<8x384xf32>
    %c48_456 = arith.constant 48 : index
    %c0_457 = arith.constant 0 : index
    %292 = vector.load %arg7[%c48_456, %c0_457] : memref<200x384xf32, #tpu.memory_space<vmem>>, vector<8x384xf32>
    tpu.vector_store %arg7[%c48_456, %c0_457], %291 {strides = array<i32>} : memref<200x384xf32, #tpu.memory_space<vmem>>, vector<8x384xf32>,
    %c0_458 = arith.constant 0 : index
    %c108_459 = arith.constant 108 : index
    %293 = vector.load %arg6[%c0_458, %c108_459] : memref<8x640xf32, #tpu.memory_space<vmem>>, vector<8x384xf32>
    %c56_460 = arith.constant 56 : index
    %c0_461 = arith.constant 0 : index
    %294 = vector.load %arg7[%c56_460, %c0_461] : memref<200x384xf32, #tpu.memory_space<vmem>>, vector<8x384xf32>
    tpu.vector_store %arg7[%c56_460, %c0_461], %293 {strides = array<i32>} : memref<200x384xf32, #tpu.memory_space<vmem>>, vector<8x384xf32>,
    %c0_462 = arith.constant 0 : index
    %c109_463 = arith.constant 109 : index
    %295 = vector.load %arg6[%c0_462, %c109_463] : memref<8x640xf32, #tpu.memory_space<vmem>>, vector<8x384xf32>
    %c64_464 = arith.constant 64 : index
    %c0_465 = arith.constant 0 : index
    %296 = vector.load %arg7[%c64_464, %c0_465] : memref<200x384xf32, #tpu.memory_space<vmem>>, vector<8x384xf32>
    tpu.vector_store %arg7[%c64_464, %c0_465], %295 {strides = array<i32>} : memref<200x384xf32, #tpu.memory_space<vmem>>, vector<8x384xf32>,
    %c0_466 = arith.constant 0 : index
    %c110_467 = arith.constant 110 : index
    %297 = vector.load %arg6[%c0_466, %c110_467] : memref<8x640xf32, #tpu.memory_space<vmem>>, vector<8x384xf32>
    %c72_468 = arith.constant 72 : index
    %c0_469 = arith.constant 0 : index
    %298 = vector.load %arg7[%c72_468, %c0_469] : memref<200x384xf32, #tpu.memory_space<vmem>>, vector<8x384xf32>
    tpu.vector_store %arg7[%c72_468, %c0_469], %297 {strides = array<i32>} : memref<200x384xf32, #tpu.memory_space<vmem>>, vector<8x384xf32>,
    %c0_470 = arith.constant 0 : index
    %c126_471 = arith.constant 126 : index
    %299 = vector.load %arg6[%c0_470, %c126_471] : memref<8x640xf32, #tpu.memory_space<vmem>>, vector<8x384xf32>
    %c80_472 = arith.constant 80 : index
    %c0_473 = arith.constant 0 : index
    %300 = vector.load %arg7[%c80_472, %c0_473] : memref<200x384xf32, #tpu.memory_space<vmem>>, vector<8x384xf32>
    tpu.vector_store %arg7[%c80_472, %c0_473], %299 {strides = array<i32>} : memref<200x384xf32, #tpu.memory_space<vmem>>, vector<8x384xf32>,
    %c0_474 = arith.constant 0 : index
    %c127_475 = arith.constant 127 : index
    %301 = vector.load %arg6[%c0_474, %c127_475] : memref<8x640xf32, #tpu.memory_space<vmem>>, vector<8x384xf32>
    %c88_476 = arith.constant 88 : index
    %c0_477 = arith.constant 0 : index
    %302 = vector.load %arg7[%c88_476, %c0_477] : memref<200x384xf32, #tpu.memory_space<vmem>>, vector<8x384xf32>
    tpu.vector_store %arg7[%c88_476, %c0_477], %301 {strides = array<i32>} : memref<200x384xf32, #tpu.memory_space<vmem>>, vector<8x384xf32>,
    %c0_478 = arith.constant 0 : index
    %c128_479 = arith.constant 128 : index
    %303 = vector.load %arg6[%c0_478, %c128_479] : memref<8x640xf32, #tpu.memory_space<vmem>>, vector<8x384xf32>
    %c96_480 = arith.constant 96 : index
    %c0_481 = arith.constant 0 : index
    %304 = vector.load %arg7[%c96_480, %c0_481] : memref<200x384xf32, #tpu.memory_space<vmem>>, vector<8x384xf32>
    tpu.vector_store %arg7[%c96_480, %c0_481], %303 {strides = array<i32>} : memref<200x384xf32, #tpu.memory_space<vmem>>, vector<8x384xf32>,
    %c0_482 = arith.constant 0 : index
    %c129_483 = arith.constant 129 : index
    %305 = vector.load %arg6[%c0_482, %c129_483] : memref<8x640xf32, #tpu.memory_space<vmem>>, vector<8x384xf32>
    %c104_484 = arith.constant 104 : index
    %c0_485 = arith.constant 0 : index
    %306 = vector.load %arg7[%c104_484, %c0_485] : memref<200x384xf32, #tpu.memory_space<vmem>>, vector<8x384xf32>
    tpu.vector_store %arg7[%c104_484, %c0_485], %305 {strides = array<i32>} : memref<200x384xf32, #tpu.memory_space<vmem>>, vector<8x384xf32>,
    %c0_486 = arith.constant 0 : index
    %c130_487 = arith.constant 130 : index
    %307 = vector.load %arg6[%c0_486, %c130_487] : memref<8x640xf32, #tpu.memory_space<vmem>>, vector<8x384xf32>
    %c112_488 = arith.constant 112 : index
    %c0_489 = arith.constant 0 : index
    %308 = vector.load %arg7[%c112_488, %c0_489] : memref<200x384xf32, #tpu.memory_space<vmem>>, vector<8x384xf32>
    tpu.vector_store %arg7[%c112_488, %c0_489], %307 {strides = array<i32>} : memref<200x384xf32, #tpu.memory_space<vmem>>, vector<8x384xf32>,
    %c0_490 = arith.constant 0 : index
    %c146_491 = arith.constant 146 : index
    %309 = vector.load %arg6[%c0_490, %c146_491] : memref<8x640xf32, #tpu.memory_space<vmem>>, vector<8x384xf32>
    %c120_492 = arith.constant 120 : index
    %c0_493 = arith.constant 0 : index
    %310 = vector.load %arg7[%c120_492, %c0_493] : memref<200x384xf32, #tpu.memory_space<vmem>>, vector<8x384xf32>
    tpu.vector_store %arg7[%c120_492, %c0_493], %309 {strides = array<i32>} : memref<200x384xf32, #tpu.memory_space<vmem>>, vector<8x384xf32>,
    %c0_494 = arith.constant 0 : index
    %c147_495 = arith.constant 147 : index
    %311 = vector.load %arg6[%c0_494, %c147_495] : memref<8x640xf32, #tpu.memory_space<vmem>>, vector<8x384xf32>
    %c128_496 = arith.constant 128 : index
    %c0_497 = arith.constant 0 : index
    %312 = vector.load %arg7[%c128_496, %c0_497] : memref<200x384xf32, #tpu.memory_space<vmem>>, vector<8x384xf32>
    tpu.vector_store %arg7[%c128_496, %c0_497], %311 {strides = array<i32>} : memref<200x384xf32, #tpu.memory_space<vmem>>, vector<8x384xf32>,
    %c0_498 = arith.constant 0 : index
    %c148_499 = arith.constant 148 : index
    %313 = vector.load %arg6[%c0_498, %c148_499] : memref<8x640xf32, #tpu.memory_space<vmem>>, vector<8x384xf32>
    %c136_500 = arith.constant 136 : index
    %c0_501 = arith.constant 0 : index
    %314 = vector.load %arg7[%c136_500, %c0_501] : memref<200x384xf32, #tpu.memory_space<vmem>>, vector<8x384xf32>
    tpu.vector_store %arg7[%c136_500, %c0_501], %313 {strides = array<i32>} : memref<200x384xf32, #tpu.memory_space<vmem>>, vector<8x384xf32>,
    %c0_502 = arith.constant 0 : index
    %c149_503 = arith.constant 149 : index
    %315 = vector.load %arg6[%c0_502, %c149_503] : memref<8x640xf32, #tpu.memory_space<vmem>>, vector<8x384xf32>
    %c144_504 = arith.constant 144 : index
    %c0_505 = arith.constant 0 : index
    %316 = vector.load %arg7[%c144_504, %c0_505] : memref<200x384xf32, #tpu.memory_space<vmem>>, vector<8x384xf32>
    tpu.vector_store %arg7[%c144_504, %c0_505], %315 {strides = array<i32>} : memref<200x384xf32, #tpu.memory_space<vmem>>, vector<8x384xf32>,
    %c0_506 = arith.constant 0 : index
    %c150_507 = arith.constant 150 : index
    %317 = vector.load %arg6[%c0_506, %c150_507] : memref<8x640xf32, #tpu.memory_space<vmem>>, vector<8x384xf32>
    %c152_508 = arith.constant 152 : index
    %c0_509 = arith.constant 0 : index
    %318 = vector.load %arg7[%c152_508, %c0_509] : memref<200x384xf32, #tpu.memory_space<vmem>>, vector<8x384xf32>
    tpu.vector_store %arg7[%c152_508, %c0_509], %317 {strides = array<i32>} : memref<200x384xf32, #tpu.memory_space<vmem>>, vector<8x384xf32>,
    %c0_510 = arith.constant 0 : index
    %c166_511 = arith.constant 166 : index
    %319 = vector.load %arg6[%c0_510, %c166_511] : memref<8x640xf32, #tpu.memory_space<vmem>>, vector<8x384xf32>
    %c160_512 = arith.constant 160 : index
    %c0_513 = arith.constant 0 : index
    %320 = vector.load %arg7[%c160_512, %c0_513] : memref<200x384xf32, #tpu.memory_space<vmem>>, vector<8x384xf32>
    tpu.vector_store %arg7[%c160_512, %c0_513], %319 {strides = array<i32>} : memref<200x384xf32, #tpu.memory_space<vmem>>, vector<8x384xf32>,
    %c0_514 = arith.constant 0 : index
    %c167_515 = arith.constant 167 : index
    %321 = vector.load %arg6[%c0_514, %c167_515] : memref<8x640xf32, #tpu.memory_space<vmem>>, vector<8x384xf32>
    %c168_516 = arith.constant 168 : index
    %c0_517 = arith.constant 0 : index
    %322 = vector.load %arg7[%c168_516, %c0_517] : memref<200x384xf32, #tpu.memory_space<vmem>>, vector<8x384xf32>
    tpu.vector_store %arg7[%c168_516, %c0_517], %321 {strides = array<i32>} : memref<200x384xf32, #tpu.memory_space<vmem>>, vector<8x384xf32>,
    %c0_518 = arith.constant 0 : index
    %c168_519 = arith.constant 168 : index
    %323 = vector.load %arg6[%c0_518, %c168_519] : memref<8x640xf32, #tpu.memory_space<vmem>>, vector<8x384xf32>
    %c176_520 = arith.constant 176 : index
    %c0_521 = arith.constant 0 : index
    %324 = vector.load %arg7[%c176_520, %c0_521] : memref<200x384xf32, #tpu.memory_space<vmem>>, vector<8x384xf32>
    tpu.vector_store %arg7[%c176_520, %c0_521], %323 {strides = array<i32>} : memref<200x384xf32, #tpu.memory_space<vmem>>, vector<8x384xf32>,
    %c0_522 = arith.constant 0 : index
    %c169_523 = arith.constant 169 : index
    %325 = vector.load %arg6[%c0_522, %c169_523] : memref<8x640xf32, #tpu.memory_space<vmem>>, vector<8x384xf32>
    %c184_524 = arith.constant 184 : index
    %c0_525 = arith.constant 0 : index
    %326 = vector.load %arg7[%c184_524, %c0_525] : memref<200x384xf32, #tpu.memory_space<vmem>>, vector<8x384xf32>
    tpu.vector_store %arg7[%c184_524, %c0_525], %325 {strides = array<i32>} : memref<200x384xf32, #tpu.memory_space<vmem>>, vector<8x384xf32>,
    %c0_526 = arith.constant 0 : index
    %c170_527 = arith.constant 170 : index
    %327 = vector.load %arg6[%c0_526, %c170_527] : memref<8x640xf32, #tpu.memory_space<vmem>>, vector<8x384xf32>
    %c192_528 = arith.constant 192 : index
    %c0_529 = arith.constant 0 : index
    %328 = vector.load %arg7[%c192_528, %c0_529] : memref<200x384xf32, #tpu.memory_space<vmem>>, vector<8x384xf32>
    tpu.vector_store %arg7[%c192_528, %c0_529], %327 {strides = array<i32>} : memref<200x384xf32, #tpu.memory_space<vmem>>, vector<8x384xf32>,
    %c4 = arith.constant 4 : index
    %c0_530 = arith.constant 0 : index
    %c0_531 = arith.constant 0 : index
    %329 = vector.load %arg2[%c4, %c0_530, %c0_531] : memref<5x8x200xf32, #tpu.memory_space<vmem>>, vector<1x8x200xf32>
    %330 = vector.shape_cast %329 : vector<1x8x200xf32> to vector<8x200xf32>
    %c0_532 = arith.constant 0 : index
    %c0_533 = arith.constant 0 : index
    %331 = vector.load %arg7[%c0_532, %c0_533] : memref<200x384xf32, #tpu.memory_space<vmem>>, vector<200x384xf32>
    %cst_534 = arith.constant dense<0.000000e+00> : vector<8x384xf32>
    %332 = tpu.matmul %330, %331, %cst_534 {dimension_numbers = #tpu.dot_dimension_numbers<[1], [0], [0], [1], [0, 0, 1, 1], [], []>} : vector<8x200xf32>, vector<200x384xf32>, vector<8x384xf32> -> vector<8x384xf32>
    %c4_535 = arith.constant 4 : index
    %c0_536 = arith.constant 0 : index
    %c0_537 = arith.constant 0 : index
    %333 = vector.load %arg3[%c4_535, %c0_536, %c0_537] : memref<5x8x1xf32, #tpu.memory_space<vmem>>, vector<1x8x1xf32>
    %334 = vector.shape_cast %333 : vector<1x8x1xf32> to vector<8x1xf32>
    %335 = vector.broadcast %334 : vector<8x1xf32> to vector<8x384xf32>
    %336 = arith.addf %332, %335 : vector<8x384xf32>
    %337 = arith.negf %336 : vector<8x384xf32>
    %338 = math.exp %337 : vector<8x384xf32>
    %cst_538 = arith.constant 1.000000e+00 : f32
    %339 = vector.broadcast %cst_538 : f32 to vector<8x384xf32>
    %340 = arith.addf %339, %338 : vector<8x384xf32>
    %341 = arith.divf %339, %340 : vector<8x384xf32>
    %c0_539 = arith.constant 0 : index
    %c0_540 = arith.constant 0 : index
    %c0_541 = arith.constant 0 : index
    %342 = vector.load %arg5[%c0_539, %c0_540, %c0_541] : memref<1x8x384xf32, #tpu.memory_space<vmem>>, vector<1x8x384xf32>
    %343 = vector.shape_cast %342 : vector<1x8x384xf32> to vector<8x384xf32>
    %344 = vector.shape_cast %341 : vector<8x384xf32> to vector<1x8x384xf32>
    tpu.vector_store %arg5[%c0_539, %c0_540, %c0_541], %344 {strides = array<i32>} : memref<1x8x384xf32, #tpu.memory_space<vmem>>, vector<1x8x384xf32>,
    return
  }
  func.func @transform_0(%arg0: i32) -> (i32, i32, i32) {
    %c0_i32 = arith.constant 0 : i32
    %c0_i32_0 = arith.constant 0 : i32
    %c0_i32_1 = arith.constant 0 : i32
    return %arg0, %c0_i32, %c0_i32_0 : i32, i32, i32
  }
  func.func @transform_1(%arg0: i32) -> (i32, i32, i32) {
    %c0_i32 = arith.constant 0 : i32
    %c0_i32_0 = arith.constant 0 : i32
    %c0_i32_1 = arith.constant 0 : i32
    %c0_i32_2 = arith.constant 0 : i32
    return %c0_i32, %c0_i32_0, %c0_i32_1 : i32, i32, i32
  }
  func.func @transform_2(%arg0: i32) -> (i32, i32, i32) {
    %c0_i32 = arith.constant 0 : i32
    %c0_i32_0 = arith.constant 0 : i32
    %c0_i32_1 = arith.constant 0 : i32
    %c0_i32_2 = arith.constant 0 : i32
    return %c0_i32, %c0_i32_0, %c0_i32_1 : i32, i32, i32
  }
  func.func @transform_3(%arg0: i32) -> (i32, i32) {
    %c0_i32 = arith.constant 0 : i32
    %c0_i32_0 = arith.constant 0 : i32
    %c0_i32_1 = arith.constant 0 : i32
    return %c0_i32, %c0_i32_0 : i32, i32
  }
  func.func @transform_4(%arg0: i32) -> (i32, i32, i32) {
    %c0_i32 = arith.constant 0 : i32
    %c0_i32_0 = arith.constant 0 : i32
    %c0_i32_1 = arith.constant 0 : i32
    return %arg0, %c0_i32, %c0_i32_0 : i32, i32, i32
  }
}

</mosaic_0001>

<bundles_post_ra>
// kernel: _lambda_.1
= control target key start
LH: loop header
LB: loop body
LE: loop exit
PB: predicated region body
PF: predicated region fallthrough
CT: control target
= control target key end

     0   :  { %s6323_s15 = smov 0   ;;  %s7611_s0 = inlined_call_operand.vmem [shape: f32[2,8,640], index: 0, kind: input, shape index: {}]   ;;  %s7612_s1 = inlined_call_operand.vmem [shape: f32[5,8,200], index: 1, kind: input, shape index: {}]   ;;  %s7613_s2 = inlined_call_operand.vmem [shape: f32[5,8,1], index: 2, kind: input, shape index: {}]   ;;  %s7614_s3 = inlined_call_operand.vmem [shape: f32[1,384], index: 3, kind: input, shape index: {}]   ;;  %s7615_s4 = inlined_call_operand.vmem [shape: f32[2,8,384], index: 4, kind: output, shape index: {}]  }
   0x1 LB: > { %s4634_s16 = sadd.s32 4294967295, %s6269_s15   ;;  %p4638_p0 = scmp.ge.s32.totalorder %s6269_s15, 1  ;;  %s6269_s15 = sphi %s6323_s15, %s14_s15  }
   0x2   : > { %p162_p1 = scmp.lt.s32.totalorder %s6269_s15, 3 }
   0x4   : > { %p163_p2 = pnand %p4638_p0, %p162_p1 }
   0x5   : > { %p188_p3 = scmp.lt.s32.totalorder (!%p163_p2), %s4634_s16, 1  ;;  %v6271_v0 = vmov (!%p163_p2), 0.0|0.0   ;;  %s6272_s21 = smov (!%p163_p2), 42   ;;  %v839_v10 = vld [vmem:[%s7612_s1 + $0x8] sm:$0xff] (!%p163_p2)  ;;  %vm921_vm0 = vcmask (!%p163_p2), 588800   ;;  %v6296_v11 = vmov (!%p163_p2), 0  }
   0x6   : > { %166 = sbr.rel (%p163_p2) target bundleno = 2242 (0x8c2), region = 36  ;;  %4716 = vmatprep.subr.bf16.mxu1 (!%p163_p2), %v6271_v0  ;;  %s6273_s22 = smov (!%p163_p2), 41   ;;  %4641 = vmatprep.mubr.msk.f32.mxu0 (!%p163_p2), %vm921_vm0, %v839_v10  ;;  %v915_v12 = vld [vmem:[%s7613_s2] sm:$0xff] (!%p163_p2)  ;;  %vm224_vm1 = vcmask (!%p163_p2), 343040   ;;  %vm250_vm2 = vcmask (!%p163_p2), 334848   ;;  %vm7647_vm3 = vcmask (!%p163_p2), 326656  }
   0x7   : > { %s7648_s23 = smov (!%p163_p2), 40   ;;  %s6275_s24 = smov (!%p163_p2), 39   ;;  %4642 = vmatprep.mubr.msk.f32.mxu1 (!%p163_p2), %vm921_vm0, %v839_v10  ;;  %5786 = vset.pattern.permute.xlu1 (!%p163_p2), %v6296_v11  ;;  %vm7645_vm4 = vcmask (!%p163_p2), 318464   ;;  %vm7643_vm5 = vcmask (!%p163_p2), 310272   ;;  %vm7642_vm6 = vcmask (!%p163_p2), 179200   ;;  %vm7646_vm7 = vcmask (!%p163_p2), 171008  }
   0x8   : > { %s6276_s25 = smov (!%p163_p2), 38   ;;  %s6277_s26 = smov (!%p163_p2), 22   ;;  %5335 = vset.pattern.permute.xlu0 (!%p163_p2), %v6296_v11  ;;  %vm7644_vm8 = vcmask (!%p163_p2), 162816   ;;  %vm7630_vm9 = vcmask (!%p163_p2), 154624   ;;  %vm7629_vm10 = vcmask (!%p163_p2), 146432   ;;  %vm7628_vm11 = vcmask (!%p163_p2), 15360  }
   0x9   : > { %s7662_s27 = smov (!%p163_p2), 21   ;;  %s6279_s28 = smov (!%p163_p2), 20   ;;  %vm7623_vm12 = vcmask (!%p163_p2), 7168   ;;  %vm7622_vm13 = vcmask (!%p163_p2), 1039360   ;;  %vm7625_vm14 = vcmask (!%p163_p2), 1031168   ;;  %vm7624_vm15 = vcmask (!%p163_p2), 900096  }
   0xa   : > { %s7658_s29 = smov (!%p163_p2), 19   ;;  %s7660_s30 = smov (!%p163_p2), 18  }
   0xb   : > { %s7650_s5 = smov (!%p163_p2), 2   ;;  %s7652_s6 = smov (!%p163_p2), 1  }
   0xc   : > { %s7634_s7 = smov (!%p163_p2), 127   ;;  %s7638_s8 = smov (!%p163_p2), 126  }
   0xd   : > { %s7861_s16 = smov (!%p188_p3, %s4634_s16), 1  ;;  %s7666_s9 = smov 110  }
   0xe   : > { %s5088_s17 = smul.u32 40, %s7861_s16  ;;  %s7636_s10 = smov 109  }
   0xf   : > { %s7618_s11 = smov 108   ;;  %s7620_s12 = smov 107  }
  0x10   : > { %s6337_s20 = scalar_lea.vmem %s7611_s0, %s5088_s17  ;;  %s7664_s13 = smov 106  }
  0x11   : > { %v6341_v1 = vld [vmem:[%s6337_s20 + $0x8] sm:$0xff]  ;;  %v6344_v2 = vld [vmem:[%s6337_s20 + $0x10] sm:$0xff]  ;;  %v6349_v4 = vld [vmem:[%s6337_s20] sm:$0xff]  ;;  %s7616_s14 = smov 90   ;;  %s7640_s17 = smov 89  }
  0x12   : > { %v5125_v3 = vpack.i.bf16 %v6344_v2, %v6341_v1  ;;  %v6352_v5 = vld [vmem:[%s6337_s20 + $0x18] sm:$0xff]  ;;  %v6379_v7 = vld [vmem:[%s6337_s20 + $0x20] sm:$0xff]  ;;  %s7656_s18 = smov 88   ;;  %s7654_s19 = smov 87  }
  0x13   : > { %v5135_v6 = vpack.i.bf16 %v6352_v5, %v6349_v4  ;;  %v5245_v8 = vpack.i.bf16 %v6352_v5, %v6344_v2  ;;  %v5250_v9 = vpack.i.bf16 %v6379_v7, %v6341_v1 }
  0x14   : > { %5126 = vrot.lane.b32.xlu0 %v5125_v3, %s6272_s21 }
  0x15   : > { %5136 = vrot.lane.b32.xlu1 %v5135_v6, %s6272_s21 }
  0x18   : > { %5131 = vrot.lane.b32.xlu0 %v5125_v3, %s6273_s22 }
  0x19   : > { %5141 = vrot.lane.b32.xlu1 %v5135_v6, %s6273_s22 }
  0x1c   : > { %5146 = vrot.lane.b32.xlu0 %v5125_v3, %s7648_s23 }
  0x1d   : > { %5151 = vrot.lane.b32.xlu1 %v5125_v3, %s6275_s24 }
  0x20   : > { %5156 = vrot.lane.b32.xlu0 %v5135_v6, %s7648_s23 }
  0x21   : > { %5161 = vrot.lane.b32.xlu1 %v5135_v6, %s6275_s24 }
  0x24   : > { %5166 = vrot.lane.b32.xlu0 %v5125_v3, %s6276_s25 }
  0x25   : > { %5171 = vrot.lane.b32.xlu1 %v5125_v3, %s6277_s26 }
  0x28   : > { %5176 = vrot.lane.b32.xlu0 %v5135_v6, %s6276_s25 }
  0x29   : > { %5181 = vrot.lane.b32.xlu1 %v5135_v6, %s6277_s26 }
  0x2c   : > { %5186 = vrot.lane.b32.xlu0 %v5125_v3, %s7662_s27 }
  0x2d   : > { %5191 = vrot.lane.b32.xlu1 %v5125_v3, %s6279_s28 }
  0x30   : > { %5196 = vrot.lane.b32.xlu0 %v5135_v6, %s7662_s27 }
  0x31   : > { %5201 = vrot.lane.b32.xlu1 %v5135_v6, %s6279_s28 }
  0x34   : > { %5206 = vrot.lane.b32.xlu0 %v5125_v3, %s7658_s29 }
  0x35   : > { %5211 = vrot.lane.b32.xlu1 %v5125_v3, %s7660_s30 }
  0x38   : > { %5216 = vrot.lane.b32.xlu0 %v5135_v6, %s7658_s29 }
  0x39   : > { %5221 = vrot.lane.b32.xlu1 %v5135_v6, %s7660_s30 }
  0x3c   : > { %5226 = vrot.lane.b32.xlu0 %v5125_v3, %s7650_s5 }
  0x3d   : > { %5231 = vrot.lane.b32.xlu1 %v5125_v3, %s7652_s6 }
  0x40   : > { %5236 = vrot.lane.b32.xlu0 %v5135_v6, %s7650_s5 }
  0x41   : > { %5241 = vrot.lane.b32.xlu1 %v5135_v6, %s7652_s6 }
  0x44   : > { %5246 = vrot.lane.b32.xlu0 %v5245_v8, %s7634_s7 }
  0x45   : > { %5251 = vrot.lane.b32.xlu1 %v5250_v9, %s7634_s7 }
  0x48   : > { %5256 = vrot.lane.b32.xlu0 %v5245_v8, %s7638_s8 }
  0x49   : > { %5261 = vrot.lane.b32.xlu1 %v5245_v8, %s7666_s9 }
  0x4c   : > { %5266 = vrot.lane.b32.xlu0 %v5250_v9, %s7638_s8 }
  0x4d   : > { %5271 = vrot.lane.b32.xlu1 %v5250_v9, %s7666_s9 }
  0x50   : > { %5276 = vrot.lane.b32.xlu0 %v5245_v8, %s7636_s10 }
  0x51   : > { %5281 = vrot.lane.b32.xlu1 %v5245_v8, %s7618_s11 }
  0x54   : > { %5286 = vrot.lane.b32.xlu0 %v5250_v9, %s7636_s10 }
  0x55   : > { %5291 = vrot.lane.b32.xlu1 %v5250_v9, %s7618_s11  ;;  %s7668_s11 = smov 107  }
  0x58   : > { %5296 = vrot.lane.b32.xlu0 %v5245_v8, %s7620_s12 }
  0x59   : > { %5301 = vrot.lane.b32.xlu1 %v5245_v8, %s7664_s13 }
  0x5c   : > { %5306 = vrot.lane.b32.xlu0 %v5250_v9, %s7620_s12  ;;  %s7632_s12 = smov 86  }
  0x5d   : > { %690 = vrot.lane.b32.xlu1 %v6341_v1, %s7664_s13 }
  0x60   : > { %5311 = vrot.lane.b32.xlu0 %v5245_v8, %s7616_s14 }
  0x61   : > { %5316 = vrot.lane.b32.xlu1 %v5245_v8, %s7640_s17 }
  0x64   : > { %5321 = vrot.lane.b32.xlu0 %v5250_v9, %s7616_s14  ;;  %s7669_s14 = smov 108  }
  0x65   : > { %742 = vrot.lane.b32.xlu1 %v6341_v1, %s7640_s17 }
  0x68   : > { %5326 = vrot.lane.b32.xlu0 %v5245_v8, %s7656_s18 }
  0x69   : > { %5331 = vrot.lane.b32.xlu1 %v5245_v8, %s7654_s19 }
  0x6c   : > { %768 = vrot.lane.b32.xlu0 %v6341_v1, %s7656_s18 }
  0x6d   : > { %794 = vrot.lane.b32.xlu1 %v6341_v1, %s7654_s19 }
  0x70   : > { %696 = vrot.lane.b32.xlu0 %v6379_v7, %s7664_s13 }
  0x71   : > { %748 = vrot.lane.b32.xlu1 %v6379_v7, %s7640_s17 }
  0x74   : > { %822 = vrot.lane.b32.xlu0 %v6344_v2, %s7632_s12 }
  0x75   : > { %824 = vrot.lane.b32.xlu1 %v6352_v5, %s7632_s12 }
  0x78   : > { %820 = vrot.lane.b32.xlu0 %v6341_v1, %s7632_s12 }
  0x79   : > { %774 = vrot.lane.b32.xlu1 %v6379_v7, %s7656_s18 }
  0x7c   : > { %800 = vrot.lane.b32.xlu0 %v6379_v7, %s7654_s19 }
  0x7d   : > { %826 = vrot.lane.b32.xlu1 %v6379_v7, %s7632_s12  ;;  %s7670_s12 = smov 90  }
  0x80   : > { %918 = vperm.xlu0 %5335, %v915_v12  }
  0x86   : > { %v5127_v13 = vpop.permute.xlu0 %5126 }
  0x87   : > { %v5137_v14 = vpop.permute.xlu1 %5136  ;;  %v5129_v15 = vunpack.i.h.bf16 %v5127_v13  ;;  %v5128_v16 = vunpack.i.l.bf16 %v5127_v13 }
  0x88   : > { %v5139_v17 = vunpack.i.h.bf16 %v5137_v14  ;;  %v5138_v18 = vunpack.i.l.bf16 %v5137_v14 }
  0x89   : > { %v226_v25 = vsel %vm224_vm1, %v5128_v16, %v5129_v15 }
  0x8a   : > { %v5132_v19 = vpop.permute.xlu0 %5131  ;;  %v227_v27 = vsel %vm224_vm1, %v5129_v15, %v5139_v17  ;;  %v225_v31 = vsel %vm224_vm1, %v5138_v18, %v5128_v16 }
  0x8b   : > { %v5134_v20 = vunpack.i.h.bf16 %v5132_v19  ;;  %v5133_v21 = vunpack.i.l.bf16 %v5132_v19  ;;  %v5142_v22 = vpop.permute.xlu1 %5141 }
  0x8c   : > { %v5144_v23 = vunpack.i.h.bf16 %v5142_v22  ;;  %v5143_v24 = vunpack.i.l.bf16 %v5142_v22 }
  0x8d   : > { %v252_v26 = vsel %vm250_vm2, %v5133_v21, %v5134_v20 }
  0x8e   : > { %v5147_v28 = vpop.permute.xlu0 %5146  ;;  %v4668_v29 = vpack.c.bf16 %v252_v26, %v226_v25  ;;  %v253_v30 = vsel %vm250_vm2, %v5134_v20, %v5144_v23  ;;  %v251_v32 = vsel %vm250_vm2, %v5143_v24, %v5133_v21 }
  0x8f   : > { %v5149_v33 = vunpack.i.h.bf16 %v5147_v28  ;;  %v5148_v34 = vunpack.i.l.bf16 %v5147_v28  ;;  %v5152_v35 = vpop.permute.xlu1 %5151  ;;  %v4717_v36 = vpack.c.bf16 %v253_v30, %v227_v27  ;;  %v4670_v37 = vpack.c.bf16 %v251_v32, %v225_v31 }
  0x90   : > { %v5154_v38 = vunpack.i.h.bf16 %v5152_v35  ;;  %v5153_v39 = vunpack.i.l.bf16 %v5152_v35  ;;  %4669 = vmatprep.subr.bf16.mxu0 %v4668_v29 }
  0x91   : > { %4718 = vmatpush1.bf16.msra.mxu1 %v4717_v36  ;;  %4671 = vmatpush1.bf16.msra.mxu0 %v4670_v37  ;;  %v278_v40 = vsel %vm7647_vm3, %v5148_v34, %v5149_v33 }
  0x92   : > { %v5157_v41 = vpop.permute.xlu0 %5156  ;;  %v304_v42 = vsel %vm7645_vm4, %v5153_v39, %v5154_v38  ;;  %4719 = vmatprep.subr.bf16.mxu1 %v6271_v0 }
  0x93   : > { %v5159_v43 = vunpack.i.h.bf16 %v5157_v41  ;;  %v5158_v44 = vunpack.i.l.bf16 %v5157_v41  ;;  %v5162_v45 = vpop.permute.xlu1 %5161  ;;  %v4672_v46 = vpack.c.bf16 %v304_v42, %v278_v40 }
  0x94   : > { %v5164_v47 = vunpack.i.h.bf16 %v5162_v45  ;;  %v5163_v48 = vunpack.i.l.bf16 %v5162_v45 }
  0x95   : > { %4673 = vmatprep.subr.bf16.mxu0 %v4672_v46  ;;  %v277_v49 = vsel %vm7647_vm3, %v5158_v44, %v5148_v34  ;;  %v279_v50 = vsel %vm7647_vm3, %v5149_v33, %v5159_v43 }
  0x96   : > { %v5167_v51 = vpop.permute.xlu0 %5166  ;;  %v303_v52 = vsel %vm7645_vm4, %v5163_v48, %v5153_v39  ;;  %v305_v53 = vsel %vm7645_vm4, %v5154_v38, %v5164_v47 }
  0x97   : > { %v5169_v54 = vunpack.i.h.bf16 %v5167_v51  ;;  %v5168_v55 = vunpack.i.l.bf16 %v5167_v51  ;;  %v5172_v56 = vpop.permute.xlu1 %5171  ;;  %v4674_v57 = vpack.c.bf16 %v303_v52, %v277_v49  ;;  %v4720_v58 = vpack.c.bf16 %v305_v53, %v279_v50 }
  0x98   : > { %v5174_v59 = vunpack.i.h.bf16 %v5172_v56  ;;  %v5173_v60 = vunpack.i.l.bf16 %v5172_v56 }
  0x99   : > { %4675 = vmatpush1.bf16.msra.mxu0 %v4674_v57  ;;  %4721 = vmatpush1.bf16.msra.mxu1 %v4720_v58  ;;  %v330_v61 = vsel %vm7643_vm5, %v5168_v55, %v5169_v54 }
  0x9a   : > { %v5177_v62 = vpop.permute.xlu0 %5176  ;;  %v356_v63 = vsel %vm7642_vm6, %v5173_v60, %v5174_v59  ;;  %4722 = vmatprep.subr.bf16.mxu1 %v6271_v0 }
  0x9b   : > { %v5179_v3 = vunpack.i.h.bf16 %v5177_v62  ;;  %v5178_v6 = vunpack.i.l.bf16 %v5177_v62  ;;  %v5182_v8 = vpop.permute.xlu1 %5181  ;;  %v4676_v9 = vpack.c.bf16 %v356_v63, %v330_v61 }
  0x9c   : > { %v5184_v10 = vunpack.i.h.bf16 %v5182_v8  ;;  %v5183_v11 = vunpack.i.l.bf16 %v5182_v8 }
  0x9d   : > { %4677 = vmatprep.subr.bf16.mxu0 %v4676_v9  ;;  %v329_v12 = vsel %vm7643_vm5, %v5178_v6, %v5168_v55  ;;  %v331_v13 = vsel %vm7643_vm5, %v5169_v54, %v5179_v3 }
  0x9e   : > { %v5187_v14 = vpop.permute.xlu0 %5186  ;;  %v355_v15 = vsel %vm7642_vm6, %v5183_v11, %v5173_v60  ;;  %v357_v16 = vsel %vm7642_vm6, %v5174_v59, %v5184_v10 }
  0x9f   : > { %v5189_v17 = vunpack.i.h.bf16 %v5187_v14  ;;  %v5188_v18 = vunpack.i.l.bf16 %v5187_v14  ;;  %v5192_v19 = vpop.permute.xlu1 %5191  ;;  %v4678_v20 = vpack.c.bf16 %v355_v15, %v329_v12  ;;  %v4723_v21 = vpack.c.bf16 %v357_v16, %v331_v13 }
  0xa0   : > { %v5194_v22 = vunpack.i.h.bf16 %v5192_v19  ;;  %v5193_v23 = vunpack.i.l.bf16 %v5192_v19 }
  0xa1   : > { %4679 = vmatpush1.bf16.msra.mxu0 %v4678_v20  ;;  %4724 = vmatpush1.bf16.msra.mxu1 %v4723_v21  ;;  %v382_v24 = vsel %vm7646_vm7, %v5188_v18, %v5189_v17 }
  0xa2   : > { %v5197_v25 = vpop.permute.xlu0 %5196  ;;  %v408_v26 = vsel %vm7644_vm8, %v5193_v23, %v5194_v22  ;;  %4725 = vmatprep.subr.bf16.mxu1 %v6271_v0 }
  0xa3   : > { %v5199_v27 = vunpack.i.h.bf16 %v5197_v25  ;;  %v5198_v28 = vunpack.i.l.bf16 %v5197_v25  ;;  %v5202_v29 = vpop.permute.xlu1 %5201  ;;  %v4680_v30 = vpack.c.bf16 %v408_v26, %v382_v24 }
  0xa4   : > { %v5204_v31 = vunpack.i.h.bf16 %v5202_v29  ;;  %v5203_v32 = vunpack.i.l.bf16 %v5202_v29 }
  0xa5   : > { %4681 = vmatprep.subr.bf16.mxu0 %v4680_v30  ;;  %v381_v33 = vsel %vm7646_vm7, %v5198_v28, %v5188_v18  ;;  %v383_v34 = vsel %vm7646_vm7, %v5189_v17, %v5199_v27 }
  0xa6   : > { %v5207_v35 = vpop.permute.xlu0 %5206  ;;  %v407_v36 = vsel %vm7644_vm8, %v5203_v32, %v5193_v23  ;;  %v409_v37 = vsel %vm7644_vm8, %v5194_v22, %v5204_v31 }
  0xa7   : > { %v5209_v38 = vunpack.i.h.bf16 %v5207_v35  ;;  %v5208_v39 = vunpack.i.l.bf16 %v5207_v35  ;;  %v5212_v40 = vpop.permute.xlu1 %5211  ;;  %v4682_v41 = vpack.c.bf16 %v407_v36, %v381_v33  ;;  %v4726_v42 = vpack.c.bf16 %v409_v37, %v383_v34 }
  0xa8   : > { %v5214_v43 = vunpack.i.h.bf16 %v5212_v40  ;;  %v5213_v44 = vunpack.i.l.bf16 %v5212_v40 }
  0xa9   : > { %4683 = vmatpush1.bf16.msra.mxu0 %v4682_v41  ;;  %4727 = vmatpush1.bf16.msra.mxu1 %v4726_v42  ;;  %v434_v45 = vsel %vm7630_vm9, %v5208_v39, %v5209_v38 }
  0xaa   : > { %v5217_v46 = vpop.permute.xlu0 %5216  ;;  %v460_v47 = vsel %vm7629_vm10, %v5213_v44, %v5214_v43  ;;  %4728 = vmatprep.subr.bf16.mxu1 %v6271_v0 }
  0xab   : > { %v5219_v48 = vunpack.i.h.bf16 %v5217_v46  ;;  %v5218_v49 = vunpack.i.l.bf16 %v5217_v46  ;;  %v5222_v50 = vpop.permute.xlu1 %5221  ;;  %v4684_v51 = vpack.c.bf16 %v460_v47, %v434_v45 }
  0xac   : > { %v5224_v52 = vunpack.i.h.bf16 %v5222_v50  ;;  %v5223_v53 = vunpack.i.l.bf16 %v5222_v50 }
  0xad   : > { %4685 = vmatprep.subr.bf16.mxu0 %v4684_v51  ;;  %v433_v54 = vsel %vm7630_vm9, %v5218_v49, %v5208_v39  ;;  %v435_v55 = vsel %vm7630_vm9, %v5209_v38, %v5219_v48  ;;  %vm7631_vm9 = vcmask 703488  }
  0xae   : > { %v5227_v56 = vpop.permute.xlu0 %5226  ;;  %v459_v57 = vsel %vm7629_vm10, %v5223_v53, %v5213_v44  ;;  %v461_v58 = vsel %vm7629_vm10, %v5214_v43, %v5224_v52  ;;  %vm802_vm10 = vcmask 711680  }
  0xaf   : > { %v5229_v59 = vunpack.i.h.bf16 %v5227_v56  ;;  %v5228_v60 = vunpack.i.l.bf16 %v5227_v56  ;;  %v5232_v61 = vpop.permute.xlu1 %5231  ;;  %v4686_v62 = vpack.c.bf16 %v459_v57, %v433_v54  ;;  %v4729_v63 = vpack.c.bf16 %v461_v58, %v435_v55 }
  0xb0   : > { %v5234_v3 = vunpack.i.h.bf16 %v5232_v61  ;;  %v5233_v6 = vunpack.i.l.bf16 %v5232_v61 }
  0xb1   : > { %4687 = vmatpush1.bf16.msra.mxu0 %v4686_v62  ;;  %4730 = vmatpush1.bf16.msra.mxu1 %v4729_v63  ;;  %v486_v8 = vsel %vm7628_vm11, %v5228_v60, %v5229_v59 }
  0xb2   : > { %v5237_v9 = vpop.permute.xlu0 %5236  ;;  %v512_v10 = vsel %vm7623_vm12, %v5233_v6, %v5234_v3  ;;  %4731 = vmatprep.subr.bf16.mxu1 %v6271_v0 }
  0xb3   : > { %v5239_v11 = vunpack.i.h.bf16 %v5237_v9  ;;  %v5238_v12 = vunpack.i.l.bf16 %v5237_v9  ;;  %v5242_v13 = vpop.permute.xlu1 %5241  ;;  %v4688_v14 = vpack.c.bf16 %v512_v10, %v486_v8 }
  0xb4   : > { %v5244_v15 = vunpack.i.h.bf16 %v5242_v13  ;;  %v5243_v16 = vunpack.i.l.bf16 %v5242_v13 }
  0xb5   : > { %4689 = vmatprep.subr.bf16.mxu0 %v4688_v14  ;;  %v485_v17 = vsel %vm7628_vm11, %v5238_v12, %v5228_v60  ;;  %v487_v18 = vsel %vm7628_vm11, %v5229_v59, %v5239_v11  ;;  %vm776_vm11 = vcmask 719872  }
  0xb6   : > { %v5247_v19 = vpop.permute.xlu0 %5246  ;;  %v511_v20 = vsel %vm7623_vm12, %v5243_v16, %v5233_v6  ;;  %v513_v21 = vsel %vm7623_vm12, %v5234_v3, %v5244_v15  ;;  %vm7626_vm12 = vcmask 883712  }
  0xb7   : > { %v5249_v22 = vunpack.i.h.bf16 %v5247_v19  ;;  %v5248_v23 = vunpack.i.l.bf16 %v5247_v19  ;;  %v5252_v24 = vpop.permute.xlu1 %5251  ;;  %v4690_v25 = vpack.c.bf16 %v511_v20, %v485_v17  ;;  %v4732_v26 = vpack.c.bf16 %v513_v21, %v487_v18 }
  0xb8   : > { %v5254_v27 = vunpack.i.h.bf16 %v5252_v24  ;;  %v5253_v28 = vunpack.i.l.bf16 %v5252_v24 }
  0xb9   : > { %4691 = vmatpush1.bf16.msra.mxu0 %v4690_v25  ;;  %4733 = vmatpush1.bf16.msra.mxu1 %v4732_v26  ;;  %v544_v29 = vsel %vm7622_vm13, %v5248_v23, %v5249_v22 }
  0xba   : > { %v5257_v30 = vpop.permute.xlu0 %5256  ;;  %4734 = vmatprep.subr.bf16.mxu1 %v6271_v0  ;;  %v4692_v31 = vpack.c.bf16 %v544_v29, %v6344_v2  ;;  %v545_v32 = vsel %vm7622_vm13, %v5249_v22, %v5254_v27  ;;  %v543_v33 = vsel %vm7622_vm13, %v5253_v28, %v5248_v23  ;;  %vm7627_vm13 = vcmask 891904  }
  0xbb   : > { %v5259_v34 = vunpack.i.h.bf16 %v5257_v30  ;;  %v5258_v35 = vunpack.i.l.bf16 %v5257_v30  ;;  %v5262_v36 = vpop.permute.xlu1 %5261  ;;  %v4735_v37 = vpack.c.bf16 %v545_v32, %v6352_v5  ;;  %v4694_v38 = vpack.c.bf16 %v543_v33, %v6341_v1 }
  0xbc   : > { %v5264_v39 = vunpack.i.h.bf16 %v5262_v36  ;;  %v5263_v40 = vunpack.i.l.bf16 %v5262_v36  ;;  %4693 = vmatprep.subr.bf16.mxu0 %v4692_v31 }
  0xbd   : > { %4736 = vmatpush1.bf16.msra.mxu1 %v4735_v37  ;;  %4695 = vmatpush1.bf16.msra.mxu0 %v4694_v38  ;;  %v570_v41 = vsel %vm7625_vm14, %v5258_v35, %v5259_v34 }
  0xbe   : > { %v5267_v2 = vpop.permute.xlu0 %5266  ;;  %v596_v42 = vsel %vm7624_vm15, %v5263_v40, %v5264_v39  ;;  %4737 = vmatprep.subr.bf16.mxu1 %v6271_v0 }
  0xbf   : > { %v5269_v43 = vunpack.i.h.bf16 %v5267_v2  ;;  %v5268_v44 = vunpack.i.l.bf16 %v5267_v2  ;;  %v5272_v45 = vpop.permute.xlu1 %5271  ;;  %v4696_v46 = vpack.c.bf16 %v596_v42, %v570_v41 }
  0xc0   : > { %v5274_v47 = vunpack.i.h.bf16 %v5272_v45  ;;  %v5273_v5 = vunpack.i.l.bf16 %v5272_v45 }
  0xc1   : > { %4697 = vmatprep.subr.bf16.mxu0 %v4696_v46  ;;  %v569_v1 = vsel %vm7625_vm14, %v5268_v44, %v5258_v35  ;;  %v571_v48 = vsel %vm7625_vm14, %v5259_v34, %v5269_v43  ;;  %vm698_vm14 = vcmask 867328  }
  0xc2   : > { %v5277_v49 = vpop.permute.xlu0 %5276  ;;  %v595_v50 = vsel %vm7624_vm15, %v5273_v5, %v5263_v40  ;;  %v597_v51 = vsel %vm7624_vm15, %v5264_v39, %v5274_v47  ;;  %vm672_vm15 = vcmask 875520  }
  0xc3   : > { %v5279_v52 = vunpack.i.h.bf16 %v5277_v49  ;;  %v5278_v53 = vunpack.i.l.bf16 %v5277_v49  ;;  %v5282_v54 = vpop.permute.xlu1 %5281  ;;  %v4698_v55 = vpack.c.bf16 %v595_v50, %v569_v1  ;;  %v4738_v56 = vpack.c.bf16 %v597_v51, %v571_v48 }
  0xc4   : > { %v5284_v57 = vunpack.i.h.bf16 %v5282_v54  ;;  %v5283_v58 = vunpack.i.l.bf16 %v5282_v54 }
  0xc5   : > { %4699 = vmatpush1.bf16.msra.mxu0 %v4698_v55  ;;  %4739 = vmatpush1.bf16.msra.mxu1 %v4738_v56  ;;  %v622_v59 = vsel %vm7627_vm13, %v5278_v53, %v5279_v52 }
  0xc6   : > { %v5287_v60 = vpop.permute.xlu0 %5286  ;;  %v648_v61 = vsel %vm7626_vm12, %v5283_v58, %v5284_v57  ;;  %4740 = vmatprep.subr.bf16.mxu1 %v6271_v0 }
  0xc7   : > { %v5289_v62 = vunpack.i.h.bf16 %v5287_v60  ;;  %v5288_v63 = vunpack.i.l.bf16 %v5287_v60  ;;  %v5292_v3 = vpop.permute.xlu1 %5291  ;;  %v4700_v6 = vpack.c.bf16 %v648_v61, %v622_v59 }
  0xc8   : > { %v5294_v8 = vunpack.i.h.bf16 %v5292_v3  ;;  %v5293_v9 = vunpack.i.l.bf16 %v5292_v3 }
  0xc9   : > { %4701 = vmatprep.subr.bf16.mxu0 %v4700_v6  ;;  %v621_v10 = vsel %vm7627_vm13, %v5288_v63, %v5278_v53  ;;  %v623_v11 = vsel %vm7627_vm13, %v5279_v52, %v5289_v62  ;;  %vm750_vm13 = vcmask 728064  }
  0xca   : > { %v6497_v12 = vpop.permute.xlu0 %5296  ;;  %v647_v13 = vsel %vm7626_vm12, %v5293_v9, %v5283_v58  ;;  %v649_v14 = vsel %vm7626_vm12, %v5284_v57, %v5294_v8  ;;  %vm724_vm12 = vcmask 736256  }
  0xcb   : > { %v5299_v15 = vunpack.i.h.bf16 %v6497_v12  ;;  %v5298_v16 = vunpack.i.l.bf16 %v6497_v12  ;;  %v5302_v17 = vpop.permute.xlu1 %5301  ;;  %v4702_v18 = vpack.c.bf16 %v647_v13, %v621_v10  ;;  %v4741_v19 = vpack.c.bf16 %v649_v14, %v623_v11  ;;  %v838_v13 = vld [vmem:[%s7612_s1] sm:$0xff] }
  0xcc   : > { %v5304_v20 = vunpack.i.h.bf16 %v5302_v17  ;;  %v5303_v21 = vunpack.i.l.bf16 %v5302_v17 }
  0xcd   : > { %4703 = vmatpush1.bf16.msra.mxu0 %v4702_v18  ;;  %4742 = vmatpush1.bf16.msra.mxu1 %v4741_v19  ;;  %v674_v22 = vsel %vm672_vm15, %v5298_v16, %v5299_v15 }
  0xce   : > { %v5307_v23 = vpop.permute.xlu0 %5306  ;;  %v700_v24 = vsel %vm698_vm14, %v5303_v21, %v5304_v20  ;;  %4743 = vmatprep.subr.bf16.mxu1 %v6271_v0 }
  0xcf   : > { %v5308_v25 = vunpack.i.l.bf16 %v5307_v23  ;;  %v691_v26 = vpop.permute.xlu1 %690  ;;  %v4704_v27 = vpack.c.bf16 %v700_v24, %v674_v22  ;;  %v5309_v52 = vunpack.i.h.bf16 %v5307_v23 }
  0xd0   : > { %v699_v28 = vsel %vm698_vm14, %v691_v26, %v5303_v21  ;;  %v6297_v21 = vmov 0.0  }
  0xd1   : > { %v673_v29 = vsel %vm672_vm15, %v5308_v25, %v5298_v16  ;;  %4705 = vmatprep.subr.bf16.mxu0 %v4704_v27  ;;  %v675_v60 = vsel %vm672_vm15, %v5299_v15, %v5309_v52  ;;  %v1077_v25 = vlaneseq }
  0xd2   : > { %v4706_v30 = vpack.c.bf16 %v699_v28, %v673_v29  ;;  %v5312_v31 = vpop.permute.xlu0 %5311 }
  0xd3   : > { %v5314_v32 = vunpack.i.h.bf16 %v5312_v31  ;;  %v5313_v33 = vunpack.i.l.bf16 %v5312_v31  ;;  %v5317_v34 = vpop.permute.xlu1 %5316  ;;  %v1078_v26 = vshrl.u32 %v1077_v25, 7 }
  0xd4   : > { %v5319_v35 = vunpack.i.h.bf16 %v5317_v34  ;;  %v5318_v36 = vunpack.i.l.bf16 %v5317_v34  ;;  %4707 = vmatpush1.bf16.msra.mxu0 %v4706_v30  ;;  %v1075_v30 = vld [vmem:[%s7614_s3] sm:$0x7] }
  0xd5   : > { %v726_v37 = vsel %vm724_vm12, %v5313_v33, %v5314_v32  ;;  %v6532_v27 = vsub.s32 2, %v1078_v26 }
  0xd6   : > { %v5322_v38 = vpop.permute.xlu0 %5321  ;;  %v752_v39 = vsel %vm750_vm13, %v5318_v36, %v5319_v35 }
  0xd7   : > { %v5323_v40 = vunpack.i.l.bf16 %v5322_v38  ;;  %v743_v41 = vpop.permute.xlu1 %742  ;;  %v4708_v2 = vpack.c.bf16 %v752_v39, %v726_v37  ;;  %v5324_v59 = vunpack.i.h.bf16 %v5322_v38  ;;  %v6548_v39 = vsub.s32 0, %v1078_v26 }
  0xd8   : > { %v751_v42 = vsel %vm750_vm13, %v743_v41, %v5318_v36 }
  0xd9   : > { %v725_v43 = vsel %vm724_vm12, %v5323_v40, %v5313_v33  ;;  %4709 = vmatprep.subr.bf16.mxu0 %v4708_v2  ;;  %v727_v8 = vsel %vm724_vm12, %v5314_v32, %v5324_v59  ;;  %v1088_v33 = vrot.slane %v1075_v30, %v6532_v27 }
  0xda   : > { %v4710_v44 = vpack.c.bf16 %v751_v42, %v725_v43  ;;  %v5327_v45 = vpop.permute.xlu0 %5326 }
  0xdb   : > { %v5329_v46 = vunpack.i.h.bf16 %v5327_v45  ;;  %v5328_v47 = vunpack.i.l.bf16 %v5327_v45  ;;  %v5332_v5 = vpop.permute.xlu1 %5331 }
  0xdc   : > { %v5334_v1 = vunpack.i.h.bf16 %v5332_v5  ;;  %v5333_v48 = vunpack.i.l.bf16 %v5332_v5  ;;  %4711 = vmatpush1.bf16.msra.mxu0 %v4710_v44  ;;  %v6565_v44 = vsub.s32 1, %v1078_v26 }
  0xdd   : > { %v778_v49 = vsel %vm776_vm11, %v5328_v47, %v5329_v46 }
  0xde   : > { %v769_v50 = vpop.permute.xlu0 %768  ;;  %v804_v51 = vsel %vm802_vm10, %v5333_v48, %v5334_v1 }
  0xdf   : > { %v777_v53 = vsel %vm776_vm11, %v769_v50, %v5328_v47  ;;  %v795_v54 = vpop.permute.xlu1 %794  ;;  %v4712_v55 = vpack.c.bf16 %v804_v51, %v778_v49  ;;  %v6616_v49 = vld [vmem:[%s6337_s20 + $0x20] sm:$0xff]  ;;  %v4645_v50 = vld [vmem:[%s7613_s2 + $0x8] sm:$0xff] }
  0xe0   : > { %v803_v56 = vsel %vm802_vm10, %v795_v54, %v5333_v48  ;;  %v4644_v48 = vld [vmem:[%s7612_s1 + $0x18] sm:$0xff] }
  0xe1   : > { %v4714_v57 = vpack.c.bf16 %v803_v56, %v777_v53  ;;  %4713 = vmatprep.subr.bf16.mxu0 %v4712_v55 }
  0xe2   : > { %v697_v58 = vpop.permute.xlu0 %696 }
  0xe3   : > { %v701_v61 = vsel %vm698_vm14, %v5304_v20, %v697_v58  ;;  %v749_v62 = vpop.permute.xlu1 %748  ;;  %4715 = vmatpush1.bf16.msra.mxu0 %v4714_v57 }
  0xe4   : > { %v4744_v63 = vpack.c.bf16 %v701_v61, %v675_v60  ;;  %v753_v3 = vsel %vm750_vm13, %v5319_v35, %v749_v62 }
  0xe5   : > { %v4747_v10 = vpack.c.bf16 %v753_v3, %v727_v8 }
  0xe6   : > { %v823_v6 = vpop.permute.xlu0 %822  ;;  %4745 = vmatpush1.bf16.msra.mxu1 %v4744_v63 }
  0xe7   : > { %v825_v9 = vpop.permute.xlu1 %824  ;;  %4746 = vmatprep.subr.bf16.mxu1 %v6271_v0 }
  0xe8   : > { %v830_v11 = vsel %vm7631_vm9, %v823_v6, %v825_v9 }
  0xe9   : > { %973 = vmatprep.subr.mxu0 %v830_v11 }
  0xea   : > { %v821_v12 = vpop.permute.xlu0 %820  ;;  %4748 = vmatpush1.bf16.msra.mxu1 %v4747_v10 }
  0xeb   : > { %v829_v14 = vsel %vm7631_vm9, %v821_v12, %v823_v6  ;;  %4749 = vmatprep.subr.bf16.mxu1 %v6271_v0  ;;  %v775_v15 = vpop.permute.xlu1 %774 }
  0xec   : > { %974 = vmatpush1.msra.mxu0 %v829_v14  ;;  %v779_v17 = vsel %vm776_vm11, %v5329_v46, %v775_v15  ;;  %v1084_v46 = vrot.slane %v1075_v30, %v6565_v44 }
  0xed   : > { %990 = vmatmul.mubr.f32.vlgmr.msra.gmra.mrb[0].mxu0 %v838_v13 }
  0xee   : > { %v801_v16 = vpop.permute.xlu0 %800  ;;  %4646 = vmatprep.mubr.msk.f32.mxu0 %vm921_vm0, %v4644_v48 }
  0xef   : > { %v805_v18 = vsel %vm802_vm10, %v5334_v1, %v801_v16  ;;  %v827_v20 = vpop.permute.xlu1 %826 }
  0xf0   : > { %v4750_v19 = vpack.c.bf16 %v805_v18, %v779_v17  ;;  %v831_v22 = vsel %vm7631_vm9, %v825_v9, %v827_v20 }
  0xf2   : > { %4751 = vmatpush1.bf16.msra.mxu1 %v4750_v19 }
  0xf3   : > { %1044 = vmatprep.subr.mxu1 %v6297_v21 }
  0xf6   : > { %1045 = vmatpush1.msra.mxu1 %v831_v22 }
  0xf7   : > { %1061 = vmatmul.mubr.f32.vlgmr.msra.gmra.mrb[0].mxu1 %v838_v13  ;;  %4800 = vmatprep.subr.bf16.mxu1 %v6271_v0 }
  0xf8   : > { %4647 = vmatprep.mubr.msk.f32.mxu1 %vm921_vm0, %v4644_v48 }
  0xff   : > { %v919_v28 = vpop.permute.xlu0 %918 }
 0x1c0   : > { %v991_v23 = vpop.f32.mrb[0].mxu0 }
 0x1c1   : > { %v993_v24 = vpop.f32.mrb[1].mxu0  ;;  %v992_v38 = vadd.f32 %v991_v23, %v919_v28 }
 0x1c2   : > { %v994_v43 = vadd.f32 %v993_v24, %v919_v28 }
 0x1c3   : > { %v1069_v40 = vmul.f32 0.01, %v992_v38 }
 0x1c4   : > { %v1070_v45 = vmul.f32 0.01, %v994_v43 }
 0x1ca   : > { %v1062_v29 = vpop.f32.mrb[0].mxu1 }
 0x1cb   : > { %v1063_v31 = vadd.f32 %v1062_v29, %v919_v28  ;;  %v1064_v32 = vpop.f32.mrb[1].mxu1 }
 0x1cd   : > { %vm1068_vm9 = vcmp.gt.f32.partialorder %v1063_v31, 0.0  ;;  %v1071_v34 = vmul.f32 0.01, %v1063_v31 }
 0x1cf   : > { %v1074_v35 = vsel %vm1068_vm9, %v1063_v31, %v1071_v34  ;;  %vm1066_vm9 = vcmp.gt.f32.partialorder %v992_v38, 0.0 }
 0x1d0   : > { %v6538_v36 = vmul.f32 %v1088_v33, %v1074_v35  ;;  %v1072_v41 = vsel %vm1066_vm9, %v992_v38, %v1069_v40  ;;  %vm1067_vm9 = vcmp.gt.f32.partialorder %v994_v43, 0.0 }
 0x1d2   : > { %v5341_v37 = vpack.i.bf16 %v6538_v36, %v6349_v4  ;;  %v1080_v4 = vrot.slane %v1075_v30, %v6548_v39 }
 0x1d4   : > { %5342 = vrot.lane.b32.xlu1 %v5341_v37, %s6273_s22  ;;  %5337 = vrot.lane.b32.xlu0 %v5341_v37, %s6272_s21  ;;  %v6555_v2 = vmul.f32 %v1080_v4, %v1072_v41 }
 0x1d6   : > { %v5401_v42 = vpack.i.bf16 %v6379_v7, %v6555_v2  ;;  %v1073_v7 = vsel %vm1067_vm9, %v994_v43, %v1070_v45  ;;  %vm7672_vm9 = vcmask 154624  }
 0x1d7   : > { %v6572_v47 = vmul.f32 %v1084_v46, %v1073_v7 }
 0x1d8   : > { %5352 = vrot.lane.b32.xlu1 %v5341_v37, %s6275_s24  ;;  %5347 = vrot.lane.b32.xlu0 %v5341_v37, %s7648_s23 }
 0x1d9   : > { %v5451_v5 = vpack.i.bf16 %v6572_v47, %v6555_v2  ;;  %v5501_v1 = vpack.i.bf16 %v6538_v36, %v6572_v47 }
 0x1dc   : > { %5362 = vrot.lane.b32.xlu1 %v5341_v37, %s6277_s26  ;;  %5357 = vrot.lane.b32.xlu0 %v5341_v37, %s6276_s25 }
 0x1e0   : > { %5372 = vrot.lane.b32.xlu1 %v5341_v37, %s6279_s28  ;;  %5367 = vrot.lane.b32.xlu0 %v5341_v37, %s7662_s27 }
 0x1e4   : > { %5382 = vrot.lane.b32.xlu1 %v5341_v37, %s7660_s30  ;;  %5377 = vrot.lane.b32.xlu0 %v5341_v37, %s7658_s29 }
 0x1e8   : > { %5392 = vrot.lane.b32.xlu1 %v5341_v37, %s7652_s6  ;;  %5387 = vrot.lane.b32.xlu0 %v5341_v37, %s7650_s5 }
 0x1ec   : > { %5402 = vrot.lane.b32.xlu0 %v5401_v42, %s7638_s8  ;;  %5397 = vrot.lane.b32.xlu1 %v5401_v42, %s7634_s7 }
 0x1f0   : > { %5412 = vrot.lane.b32.xlu0 %v5401_v42, %s7636_s10  ;;  %5407 = vrot.lane.b32.xlu1 %v5401_v42, %s7666_s9 }
 0x1f4   : > { %5422 = vrot.lane.b32.xlu0 %v5401_v42, %s7668_s11  ;;  %5417 = vrot.lane.b32.xlu1 %v5401_v42, %s7669_s14 }
 0x1f8   : > { %5432 = vrot.lane.b32.xlu0 %v5401_v42, %s7670_s12  ;;  %5427 = vrot.lane.b32.xlu1 %v5401_v42, %s7664_s13 }
 0x1fc   : > { %1643 = vrot.lane.b32.xlu0 %v6555_v2, %s7656_s18  ;;  %5437 = vrot.lane.b32.xlu1 %v5401_v42, %s7640_s17 }
 0x200   : > { %5452 = vrot.lane.b32.xlu0 %v5451_v5, %s7648_s23  ;;  %5442 = vrot.lane.b32.xlu1 %v5451_v5, %s6272_s21 }
 0x204   : > { %5462 = vrot.lane.b32.xlu0 %v5451_v5, %s6276_s25  ;;  %5447 = vrot.lane.b32.xlu1 %v5451_v5, %s6273_s22 }
 0x208   : > { %5472 = vrot.lane.b32.xlu0 %v5451_v5, %s7662_s27  ;;  %5457 = vrot.lane.b32.xlu1 %v5451_v5, %s6275_s24 }
 0x20c   : > { %5482 = vrot.lane.b32.xlu0 %v5451_v5, %s7658_s29  ;;  %5467 = vrot.lane.b32.xlu1 %v5451_v5, %s6277_s26 }
 0x210   : > { %5492 = vrot.lane.b32.xlu0 %v5451_v5, %s7650_s5  ;;  %5477 = vrot.lane.b32.xlu1 %v5451_v5, %s6279_s28 }
 0x214   : > { %5502 = vrot.lane.b32.xlu0 %v5501_v1, %s7634_s7  ;;  %5487 = vrot.lane.b32.xlu1 %v5451_v5, %s7660_s30  ;;  %s7671_s7 = smov 86  }
 0x218   : > { %5507 = vrot.lane.b32.xlu0 %v5501_v1, %s7638_s8  ;;  %5497 = vrot.lane.b32.xlu1 %v5451_v5, %s7652_s6  ;;  %s7703_s8 = smov 127  }
 0x21c   : > { %5517 = vrot.lane.b32.xlu0 %v5501_v1, %s7636_s10  ;;  %1668 = vrot.lane.b32.xlu1 %v6555_v2, %s7654_s19  ;;  %s7704_s10 = smov 109  }
 0x220   : > { %5527 = vrot.lane.b32.xlu0 %v5501_v1, %s7668_s11  ;;  %5512 = vrot.lane.b32.xlu1 %v5501_v1, %s7666_s9 }
 0x224   : > { %5537 = vrot.lane.b32.xlu0 %v5501_v1, %s7670_s12  ;;  %5522 = vrot.lane.b32.xlu1 %v5501_v1, %s7669_s14 }
 0x228   : > { %5547 = vrot.lane.b32.xlu0 %v5501_v1, %s7656_s18  ;;  %5532 = vrot.lane.b32.xlu1 %v5501_v1, %s7664_s13 }
 0x22c   : > { %1693 = vrot.lane.b32.xlu0 %v6555_v2, %s7671_s7  ;;  %5542 = vrot.lane.b32.xlu1 %v5501_v1, %s7640_s17  ;;  %s7702_s17 = smov 126  }
 0x230   : > { %1695 = vrot.lane.b32.xlu0 %v6572_v47, %s7671_s7  ;;  %5552 = vrot.lane.b32.xlu1 %v5501_v1, %s7654_s19 }
 0x234   : > { %1674 = vrot.lane.b32.xlu0 %v6616_v49, %s7654_s19  ;;  %1697 = vrot.lane.b32.xlu1 %v6538_v36, %s7671_s7 }
 0x238   : > { %1792 = vperm.xlu0 %5335, %v4645_v50   ;;  %1649 = vrot.lane.b32.xlu1 %v6616_v49, %s7656_s18 }
 0x23c   : > { %1699 = vrot.lane.b32.xlu1 %v6616_v49, %s7671_s7 }
 0x246   : > { %v5343_v51 = vpop.permute.xlu1 %5342  ;;  %v5338_v52 = vpop.permute.xlu0 %5337 }
 0x247   : > { %v5345_v17 = vunpack.i.h.bf16 %v5343_v51  ;;  %v5344_v18 = vunpack.i.l.bf16 %v5343_v51  ;;  %v5340_v19 = vunpack.i.h.bf16 %v5338_v52  ;;  %v5339_v20 = vunpack.i.l.bf16 %v5338_v52 }
 0x24a   : > { %v6629_v53 = vpop.permute.xlu1 %5352  ;;  %v6631_v54 = vpop.permute.xlu0 %5347 }
 0x24b   : > { %v5355_v23 = vunpack.i.h.bf16 %v6629_v53  ;;  %v5354_v24 = vunpack.i.l.bf16 %v6629_v53  ;;  %v5350_v25 = vunpack.i.h.bf16 %v6631_v54  ;;  %v5349_v30 = vunpack.i.l.bf16 %v6631_v54 }
 0x24e   : > { %v6633_v55 = vpop.permute.xlu1 %5362  ;;  %v6635_v56 = vpop.permute.xlu0 %5357 }
 0x24f   : > { %v5365_v31 = vunpack.i.h.bf16 %v6633_v55  ;;  %v5364_v34 = vunpack.i.l.bf16 %v6633_v55  ;;  %v5360_v35 = vunpack.i.h.bf16 %v6635_v56  ;;  %v5359_v37 = vunpack.i.l.bf16 %v6635_v56 }
 0x252   : > { %v6637_v57 = vpop.permute.xlu1 %5372  ;;  %v6639_v58 = vpop.permute.xlu0 %5367 }
 0x253   : > { %v5375_v38 = vunpack.i.h.bf16 %v6637_v57  ;;  %v5374_v53 = vunpack.i.l.bf16 %v6637_v57  ;;  %v5370_v54 = vunpack.i.h.bf16 %v6639_v58  ;;  %v5369_v55 = vunpack.i.l.bf16 %v6639_v58 }
 0x256   : > { %v6641_v59 = vpop.permute.xlu1 %5382  ;;  %v6643_v60 = vpop.permute.xlu0 %5377 }
 0x25a   : > { %v6645_v61 = vpop.permute.xlu1 %5392  ;;  %v6647_v62 = vpop.permute.xlu0 %5387 }
 0x25e   : > { %v6649_v63 = vpop.permute.xlu0 %5402  ;;  %v6651_v3 = vpop.permute.xlu1 %5397 }
 0x262   : > { %v6653_v6 = vpop.permute.xlu0 %5412  ;;  %v6655_v8 = vpop.permute.xlu1 %5407 }
 0x266   : > { %v6657_v9 = vpop.permute.xlu0 %5422  ;;  %v6659_v10 = vpop.permute.xlu1 %5417 }
 0x26a   : > { %v6661_v11 = vpop.permute.xlu0 %5432  ;;  %v6663_v12 = vpop.permute.xlu1 %5427 }
 0x26e   : > { %v6665_v13 = vpop.permute.xlu0 %1643  ;;  %v6667_v14 = vpop.permute.xlu1 %5437 }
 0x272   : > { %v5453_v15 = vpop.permute.xlu0 %5452  ;;  %v5443_v16 = vpop.permute.xlu1 %5442 }
 0x273   : > { %v5445_v22 = vunpack.i.h.bf16 %v5443_v16  ;;  %v5444_v26 = vunpack.i.l.bf16 %v5443_v16  ;;  %v5455_v40 = vunpack.i.h.bf16 %v5453_v15  ;;  %v5454_v43 = vunpack.i.l.bf16 %v5453_v15 }
 0x275   : > { %v1122_v4 = vsel %vm224_vm1, %v5445_v22, %v5340_v19  ;;  %v1120_v45 = vsel %vm224_vm1, %v5339_v20, %v5444_v26  ;;  %v1121_v51 = vsel %vm224_vm1, %v5444_v26, %v5445_v22  ;;  %v1172_v15 = vsel %vm7647_vm3, %v5455_v40, %v5350_v25 }
 0x276   : > { %v6672_v28 = vpop.permute.xlu0 %5462  ;;  %v5448_v29 = vpop.permute.xlu1 %5447  ;;  %v1170_v19 = vsel %vm7647_vm3, %v5349_v30, %v5454_v43  ;;  %v5380_v30 = vunpack.i.h.bf16 %v6643_v60 }
 0x277   : > { %v5450_v32 = vunpack.i.h.bf16 %v5448_v29  ;;  %v5449_v33 = vunpack.i.l.bf16 %v5448_v29  ;;  %v5465_v16 = vunpack.i.h.bf16 %v6672_v28  ;;  %v5464_v20 = vunpack.i.l.bf16 %v6672_v28 }
 0x279   : > { %v1147_v41 = vsel %vm250_vm2, %v5450_v32, %v5345_v17  ;;  %v1145_v42 = vsel %vm250_vm2, %v5344_v18, %v5449_v33  ;;  %v1146_v5 = vsel %vm250_vm2, %v5449_v33, %v5450_v32 }
 0x27a   : > { %v6684_v46 = vpop.permute.xlu0 %5472  ;;  %v5458_v7 = vpop.permute.xlu1 %5457  ;;  %v4801_v1 = vpack.c.bf16 %v1147_v41, %v1122_v4  ;;  %v4754_v52 = vpack.c.bf16 %v1145_v42, %v1120_v45  ;;  %v4752_v56 = vpack.c.bf16 %v1146_v5, %v1121_v51  ;;  %v5384_v4 = vunpack.i.l.bf16 %v6641_v59 }
 0x27b   : > { %v5460_v48 = vunpack.i.h.bf16 %v5458_v7  ;;  %v5459_v50 = vunpack.i.l.bf16 %v5458_v7  ;;  %v1222_v41 = vsel %vm7643_vm5, %v5465_v16, %v5360_v35  ;;  %v5475_v42 = vunpack.i.h.bf16 %v6684_v46 }
 0x27c   : > { %4802 = vmatpush1.bf16.msra.mxu1 %v4801_v1  ;;  %4753 = vmatprep.subr.bf16.mxu0 %v4752_v56  ;;  %v5395_v56 = vunpack.i.h.bf16 %v6645_v61 }
 0x27d   : > { %v1197_v17 = vsel %vm7645_vm4, %v5460_v48, %v5355_v23  ;;  %v1195_v18 = vsel %vm7645_vm4, %v5354_v24, %v5459_v50  ;;  %4803 = vmatprep.subr.bf16.mxu1 %v6271_v0  ;;  %v1196_v26 = vsel %vm7645_vm4, %v5459_v50, %v5460_v48  ;;  %4755 = vmatpush1.bf16.msra.mxu0 %v4754_v52  ;;  %v5385_v24 = vunpack.i.h.bf16 %v6641_v59 }
 0x27e   : > { %v6698_v22 = vpop.permute.xlu0 %5482  ;;  %v5468_v58 = vpop.permute.xlu1 %5467  ;;  %v4804_v29 = vpack.c.bf16 %v1197_v17, %v1172_v15  ;;  %v1171_v23 = vsel %vm7647_vm3, %v5454_v43, %v5455_v40  ;;  %v4758_v33 = vpack.c.bf16 %v1195_v18, %v1170_v19  ;;  %v1220_v40 = vsel %vm7643_vm5, %v5359_v37, %v5464_v20 }
 0x27f   : > { %v5470_v25 = vunpack.i.h.bf16 %v5468_v58  ;;  %v5469_v32 = vunpack.i.l.bf16 %v5468_v58  ;;  %v4756_v28 = vpack.c.bf16 %v1196_v26, %v1171_v23  ;;  %v5474_v43 = vunpack.i.l.bf16 %v6684_v46 }
 0x280   : > { %4805 = vmatpush1.bf16.msra.mxu1 %v4804_v29  ;;  %v5485_v52 = vunpack.i.h.bf16 %v6698_v22  ;;  %v5484_v37 = vunpack.i.l.bf16 %v6698_v22  ;;  %v1272_v15 = vsel %vm7646_vm7, %v5475_v42, %v5370_v54  ;;  %vm7684_vm3 = vcmask 1039360  }
 0x281   : > { %v1247_v45 = vsel %vm7642_vm6, %v5470_v25, %v5365_v31  ;;  %v1245_v7 = vsel %vm7642_vm6, %v5364_v34, %v5469_v32  ;;  %4806 = vmatprep.subr.bf16.mxu1 %v6271_v0  ;;  %4757 = vmatprep.subr.bf16.mxu0 %v4756_v28  ;;  %v1246_v1 = vsel %vm7642_vm6, %v5469_v32, %v5470_v25  ;;  %v5379_v34 = vunpack.i.l.bf16 %v6643_v60  ;;  %vm7673_vm6 = vmmov %vm7672_vm9 }
 0x282   : > { %v6712_v59 = vpop.permute.xlu0 %5492  ;;  %v5478_v5 = vpop.permute.xlu1 %5477  ;;  %v4807_v48 = vpack.c.bf16 %v1247_v45, %v1222_v41  ;;  %4759 = vmatpush1.bf16.msra.mxu0 %v4758_v33  ;;  %v1221_v31 = vsel %vm7643_vm5, %v5464_v20, %v5465_v16  ;;  %v4762_v51 = vpack.c.bf16 %v1245_v7, %v1220_v40  ;;  %v5394_v60 = vunpack.i.l.bf16 %v6645_v61  ;;  %vm7676_vm4 = vmmov %vm7673_vm6 }
 0x283   : > { %v5480_v35 = vunpack.i.h.bf16 %v5478_v5  ;;  %v5479_v50 = vunpack.i.l.bf16 %v5478_v5  ;;  %v4760_v46 = vpack.c.bf16 %v1246_v1, %v1221_v31  ;;  %v1270_v16 = vsel %vm7646_vm7, %v5369_v55, %v5474_v43 }
 0x284   : > { %4808 = vmatpush1.bf16.msra.mxu1 %v4807_v48  ;;  %v1271_v57 = vsel %vm7646_vm7, %v5474_v43, %v5475_v42  ;;  %v1322_v29 = vsel %vm7672_vm9, %v5485_v52, %v5380_v30  ;;  %v1320_v61 = vsel %vm7673_vm6, %v5379_v34, %v5484_v37  ;;  %v5495_v55 = vunpack.i.h.bf16 %v6712_v59 }
 0x285   : > { %v1297_v17 = vsel %vm7644_vm8, %v5480_v35, %v5375_v38  ;;  %v1295_v18 = vsel %vm7644_vm8, %v5374_v53, %v5479_v50  ;;  %4809 = vmatprep.subr.bf16.mxu1 %v6271_v0  ;;  %4761 = vmatprep.subr.bf16.mxu0 %v4760_v46  ;;  %v1296_v22 = vsel %vm7644_vm8, %v5479_v50, %v5480_v35  ;;  %v5390_v53 = vunpack.i.h.bf16 %v6647_v62 }
 0x286   : > { %v5503_v19 = vpop.permute.xlu0 %5502  ;;  %v5488_v20 = vpop.permute.xlu1 %5487  ;;  %v4810_v58 = vpack.c.bf16 %v1297_v17, %v1272_v15  ;;  %4763 = vmatpush1.bf16.msra.mxu0 %v4762_v51  ;;  %v4766_v38 = vpack.c.bf16 %v1295_v18, %v1270_v16  ;;  %v4764_v25 = vpack.c.bf16 %v1296_v22, %v1271_v57  ;;  %vm7674_vm5 = vcmask 146432  }
 0x287   : > { %v5490_v54 = vunpack.i.h.bf16 %v5488_v20  ;;  %v5489_v26 = vunpack.i.l.bf16 %v5488_v20  ;;  %vm7675_vm8 = vmmov %vm7674_vm5  ;;  %v1321_v33 = vsel %vm7676_vm4, %v5484_v37, %v5485_v52  ;;  %v5494_v28 = vunpack.i.l.bf16 %v6712_v59 }
 0x288   : > { %4811 = vmatpush1.bf16.msra.mxu1 %v4810_v58  ;;  %v5505_v41 = vunpack.i.h.bf16 %v5503_v19  ;;  %4765 = vmatprep.subr.bf16.mxu0 %v4764_v25  ;;  %vm7677_vm6 = vmmov %vm7674_vm5  ;;  %v5504_v40 = vunpack.i.l.bf16 %v5503_v19  ;;  %v5400_v1 = vunpack.i.h.bf16 %v6651_v3  ;;  %v5399_v59 = vunpack.i.l.bf16 %v6651_v3 }
 0x289   : > { %v1347_v32 = vsel %vm7674_vm5, %v5490_v54, %v5385_v24  ;;  %v1345_v23 = vsel %vm7675_vm8, %v5384_v4, %v5489_v26  ;;  %4812 = vmatprep.subr.bf16.mxu1 %v6271_v0  ;;  %v1346_v45 = vsel %vm7677_vm6, %v5489_v26, %v5490_v54  ;;  %v5389_v4 = vunpack.i.l.bf16 %v6647_v62 }
 0x28a   : > { %v6739_v42 = vpop.permute.xlu0 %5507  ;;  %v5498_v30 = vpop.permute.xlu1 %5497  ;;  %v4813_v7 = vpack.c.bf16 %v1347_v32, %v1322_v29  ;;  %4767 = vmatpush1.bf16.msra.mxu0 %v4766_v38  ;;  %v4770_v5 = vpack.c.bf16 %v1345_v23, %v1320_v61  ;;  %v4768_v48 = vpack.c.bf16 %v1346_v45, %v1321_v33  ;;  %vm7678_vm4 = vcmask 15360  }
 0x28b   : > { %v5500_v43 = vunpack.i.h.bf16 %v5498_v30  ;;  %v5499_v24 = vunpack.i.l.bf16 %v5498_v30  ;;  %v1372_v35 = vsel %vm7678_vm4, %v5495_v55, %v5390_v53  ;;  %vm7679_vm5 = vcmask 7168   ;;  %vm7681_vm9 = vmmov %vm7678_vm4 }
 0x28c   : > { %4814 = vmatpush1.bf16.msra.mxu1 %v4813_v7  ;;  %vm7680_vm8 = vmmov %vm7679_vm5  ;;  %v1370_v51 = vsel %vm7681_vm9, %v5389_v4, %v5494_v28  ;;  %4769 = vmatprep.subr.bf16.mxu0 %v4768_v48  ;;  %v1428_v46 = vsel %vm7684_vm3, %v5505_v41, %v5400_v1  ;;  %v5405_v18 = vunpack.i.h.bf16 %v6649_v63  ;;  %v5415_v16 = vunpack.i.h.bf16 %v6653_v6 }
 0x28d   : > { %v1397_v50 = vsel %vm7679_vm5, %v5500_v43, %v5395_v56  ;;  %v1395_v31 = vsel %vm7680_vm8, %v5394_v60, %v5499_v24  ;;  %4815 = vmatprep.subr.bf16.mxu1 %v6271_v0  ;;  %vm7682_vm6 = vmmov %vm7678_vm4  ;;  %v5404_v60 = vunpack.i.l.bf16 %v6649_v63  ;;  %v5414_v19 = vunpack.i.l.bf16 %v6653_v6 }
 0x28e   : > { %v6750_v34 = vpop.permute.xlu0 %5517  ;;  %v6752_v62 = vpop.permute.xlu1 %1668  ;;  %v1371_v52 = vsel %vm7682_vm6, %v5494_v28, %v5495_v55  ;;  %vm7683_vm7 = vmmov %vm7679_vm5  ;;  %v4816_v3 = vpack.c.bf16 %v1397_v50, %v1372_v35  ;;  %4771 = vmatpush1.bf16.msra.mxu0 %v4770_v5  ;;  %v4774_v15 = vpack.c.bf16 %v1395_v31, %v1370_v51  ;;  %v5510_v22 = vunpack.i.h.bf16 %v6739_v42 }
 0x28f   : > { %v1396_v37 = vsel %vm7683_vm7, %v5499_v24, %v5500_v43  ;;  %vm7685_vm4 = vmmov %vm7684_vm3  ;;  %v5410_v58 = vunpack.i.h.bf16 %v6655_v8  ;;  %v5509_v54 = vunpack.i.l.bf16 %v6739_v42  ;;  %v4819_v38 = vpack.c.bf16 %v1428_v46, %v6538_v36 }
 0x290   : > { %v4772_v56 = vpack.c.bf16 %v1396_v37, %v1371_v52  ;;  %v1427_v17 = vsel %vm7685_vm4, %v5504_v40, %v5505_v41  ;;  %4817 = vmatpush1.bf16.msra.mxu1 %v4816_v3  ;;  %vm7686_vm5 = vmmov %vm7684_vm3  ;;  %v5409_v6 = vunpack.i.l.bf16 %v6655_v8  ;;  %v5425_v53 = vunpack.i.h.bf16 %v6657_v9 }
 0x291   : > { %v1426_v20 = vsel %vm7686_vm5, %v5399_v59, %v5504_v40  ;;  %4818 = vmatprep.subr.bf16.mxu1 %v6271_v0  ;;  %v4776_v63 = vpack.c.bf16 %v1427_v17, %v6572_v47  ;;  %v5424_v25 = vunpack.i.l.bf16 %v6657_v9  ;;  %v5420_v55 = vunpack.i.h.bf16 %v6659_v10 }
 0x292   : > { %4773 = vmatprep.subr.bf16.mxu0 %v4772_v56  ;;  %v6767_v26 = vpop.permute.xlu0 %5527  ;;  %v5513_v57 = vpop.permute.xlu1 %5512  ;;  %v5419_v32 = vunpack.i.l.bf16 %v6659_v10  ;;  %v4778_v23 = vpack.c.bf16 %v1426_v20, %v6555_v2  ;;  %vm7687_vm3 = vcmask 1031168   ;;  %v5520_v36 = vunpack.i.h.bf16 %v6750_v34 }
 0x293   : > { %4775 = vmatpush1.bf16.msra.mxu0 %v4774_v15  ;;  %v5515_v29 = vunpack.i.h.bf16 %v5513_v57  ;;  %v5514_v61 = vunpack.i.l.bf16 %v5513_v57  ;;  %v1453_v47 = vsel %vm7687_vm3, %v5510_v22, %v5405_v18  ;;  %vm7688_vm7 = vcmask 900096   ;;  %vm7690_vm9 = vmmov %vm7687_vm3 }
 0x294   : > { %4777 = vmatprep.subr.bf16.mxu0 %v4776_v63  ;;  %4820 = vmatpush1.bf16.msra.mxu1 %v4819_v38  ;;  %vm7689_vm8 = vmmov %vm7688_vm7  ;;  %v1451_v9 = vsel %vm7690_vm9, %v5404_v60, %v5509_v54  ;;  %v5519_v28 = vunpack.i.l.bf16 %v6750_v34  ;;  %v5435_v43 = vunpack.i.h.bf16 %v6661_v11  ;;  %v5430_v24 = vunpack.i.h.bf16 %v6663_v12 }
 0x295   : > { %v1476_v8 = vsel %vm7688_vm7, %v5409_v6, %v5514_v61  ;;  %v1478_v33 = vsel %vm7689_vm8, %v5515_v29, %v5410_v58  ;;  %4821 = vmatprep.subr.bf16.mxu1 %v6271_v0  ;;  %vm7691_vm6 = vmmov %vm7688_vm7  ;;  %v5530_v5 = vunpack.i.h.bf16 %v6767_v26  ;;  %vm7693_vm5 = vcmask 891904  }
 0x296   : > { %v6784_v41 = vpop.permute.xlu0 %5537  ;;  %v5523_v10 = vpop.permute.xlu1 %5522  ;;  %v1477_v42 = vsel %vm7691_vm6, %v5514_v61, %v5515_v29  ;;  %v4822_v2 = vpack.c.bf16 %v1478_v33, %v1453_v47  ;;  %vm7692_vm4 = vmmov %vm7687_vm3  ;;  %v4782_v40 = vpack.c.bf16 %v1476_v8, %v1451_v9  ;;  %v1503_v1 = vsel %vm7693_vm5, %v5520_v36, %v5415_v16 }
 0x297   : > { %4779 = vmatpush1.bf16.msra.mxu0 %v4778_v23  ;;  %v5525_v30 = vunpack.i.h.bf16 %v5523_v10  ;;  %v5524_v45 = vunpack.i.l.bf16 %v5523_v10  ;;  %v1452_v7 = vsel %vm7692_vm4, %v5509_v54, %v5510_v22  ;;  %v5529_v48 = vunpack.i.l.bf16 %v6767_v26  ;;  %vm7696_vm8 = vmmov %vm7693_vm5 }
 0x298   : > { %v4780_v4 = vpack.c.bf16 %v1477_v42, %v1452_v7  ;;  %4823 = vmatpush1.bf16.msra.mxu1 %v4822_v2  ;;  %vm7694_vm3 = vcmask 883712   ;;  %v5429_v50 = vunpack.i.l.bf16 %v6663_v12  ;;  %v1501_v31 = vsel %vm7696_vm8, %v5414_v19, %v5519_v28  ;;  %vm7698_vm6 = vmmov %vm7693_vm5 }
 0x299   : > { %v1526_v59 = vsel %vm7694_vm3, %v5419_v32, %v5524_v45  ;;  %vm7695_vm7 = vmmov %vm7694_vm3  ;;  %4824 = vmatprep.subr.bf16.mxu1 %v6271_v0  ;;  %v1502_v56 = vsel %vm7698_vm6, %v5519_v28, %v5520_v36  ;;  %v1553_v17 = vsel %vm672_vm15, %v5530_v5, %v5425_v53  ;;  %v5540_v18 = vunpack.i.h.bf16 %v6784_v41 }
 0x29a   : > { %v1528_v35 = vsel %vm7695_vm7, %v5525_v30, %v5420_v55  ;;  %4781 = vmatprep.subr.bf16.mxu0 %v4780_v4  ;;  %v6798_v51 = vpop.permute.xlu0 %5547  ;;  %v5533_v34 = vpop.permute.xlu1 %5532  ;;  %vm7697_vm9 = vmmov %vm7694_vm3  ;;  %v4786_v15 = vpack.c.bf16 %v1526_v59, %v1501_v31  ;;  %v5539_v12 = vunpack.i.l.bf16 %v6784_v41  ;;  %v1552_v20 = vsel %vm672_vm15, %v5529_v48, %v5530_v5 }
 0x29b   : > { %v1527_v52 = vsel %vm7697_vm9, %v5524_v45, %v5525_v30  ;;  %v4825_v37 = vpack.c.bf16 %v1528_v35, %v1503_v1  ;;  %4783 = vmatpush1.bf16.msra.mxu0 %v4782_v40  ;;  %v5535_v3 = vunpack.i.h.bf16 %v5533_v34  ;;  %v5534_v46 = vunpack.i.l.bf16 %v5533_v34 }
 0x29c   : > { %v4784_v60 = vpack.c.bf16 %v1527_v52, %v1502_v56  ;;  %v5440_v58 = vunpack.i.h.bf16 %v6667_v14  ;;  %v1551_v54 = vsel %vm672_vm15, %v5424_v25, %v5529_v48  ;;  %v5439_v6 = vunpack.i.l.bf16 %v6667_v14 }
 0x29d   : > { %4826 = vmatpush1.bf16.msra.mxu1 %v4825_v37  ;;  %v1576_v16 = vsel %vm698_vm14, %v5429_v50, %v5534_v46  ;;  %v1578_v19 = vsel %vm698_vm14, %v5535_v3, %v5430_v24  ;;  %v1577_v22 = vsel %vm698_vm14, %v5534_v46, %v5535_v3  ;;  %v5434_v55 = vunpack.i.l.bf16 %v6661_v11  ;;  %v1948_v46 = vld [vmem:[%s7614_s3] sm:$0x7] }
 0x29e   : > { %4827 = vmatprep.subr.bf16.mxu1 %v6271_v0  ;;  %4785 = vmatprep.subr.bf16.mxu0 %v4784_v60  ;;  %v1694_v26 = vpop.permute.xlu0 %1693  ;;  %v5543_v57 = vpop.permute.xlu1 %5542  ;;  %v4788_v63 = vpack.c.bf16 %v1577_v22, %v1552_v20  ;;  %v4828_v38 = vpack.c.bf16 %v1578_v19, %v1553_v17  ;;  %v4790_v61 = vpack.c.bf16 %v1576_v16, %v1551_v54  ;;  %v5550_v23 = vunpack.i.h.bf16 %v6798_v51  ;;  %v6847_v16 = vld [vmem:[%s6337_s20] sm:$0xff] }
 0x29f   : > { %4787 = vmatpush1.bf16.msra.mxu0 %v4786_v15  ;;  %v5545_v53 = vunpack.i.h.bf16 %v5543_v57  ;;  %v5544_v29 = vunpack.i.l.bf16 %v5543_v57  ;;  %v1603_v32 = vsel %vm724_vm12, %v5540_v18, %v5435_v43  ;;  %v1602_v25 = vsel %vm724_vm12, %v5539_v12, %v5540_v18 }
 0x2a0   : > { %4789 = vmatprep.subr.bf16.mxu0 %v4788_v63  ;;  %v5549_v47 = vunpack.i.l.bf16 %v6798_v51  ;;  %v1601_v11 = vsel %vm724_vm12, %v5434_v55, %v5539_v12  ;;  %vm7699_vm4 = vcmask 703488   ;;  %v1961_v17 = vrot.slane %v1948_v46, %v6532_v27 }
 0x2a1   : > { %4829 = vmatpush1.bf16.msra.mxu1 %v4828_v38  ;;  %v1626_v36 = vsel %vm750_vm13, %v5439_v6, %v5544_v29  ;;  %v1628_v14 = vsel %vm750_vm13, %v5545_v53, %v5440_v58  ;;  %v1627_v8 = vsel %vm750_vm13, %v5544_v29, %v5545_v53  ;;  %vm7700_vm5 = vmmov %vm7699_vm4  ;;  %v1953_v58 = vrot.slane %v1948_v46, %v6548_v39 }
 0x2a2   : > { %4830 = vmatprep.subr.bf16.mxu1 %v6271_v0  ;;  %v1696_v33 = vpop.permute.xlu0 %1695  ;;  %v5553_v9 = vpop.permute.xlu1 %5552  ;;  %v4792_v28 = vpack.c.bf16 %v1627_v8, %v1602_v25  ;;  %v4831_v41 = vpack.c.bf16 %v1628_v14, %v1603_v32  ;;  %v4794_v2 = vpack.c.bf16 %v1626_v36, %v1601_v11  ;;  %v1652_v45 = vsel %vm776_vm11, %v5549_v47, %v5550_v23  ;;  %vm7701_vm3 = vmmov %vm7699_vm4  ;;  %v4649_v32 = vld [vmem:[%s7612_s1 + $0x28] sm:$0xff] }
 0x2a3   : > { %4791 = vmatpush1.bf16.msra.mxu0 %v4790_v61  ;;  %v5555_v10 = vunpack.i.h.bf16 %v5553_v9  ;;  %v5554_v42 = vunpack.i.l.bf16 %v5553_v9  ;;  %v1651_v40 = vsel %vm776_vm11, %v6665_v13, %v5549_v47  ;;  %v4643_v13 = vld [vmem:[%s7612_s1 + $0x10] sm:$0xff]  ;;  %v1701_v50 = vsel %vm7700_vm5, %v1694_v26, %v1696_v33 }
 0x2a4   : > { %4793 = vmatprep.subr.bf16.mxu0 %v4792_v28  ;;  %v1957_v6 = vrot.slane %v1948_v46, %v6565_v44  ;;  %vm7706_vm6 = vcmask 326656   ;;  %vm7708_vm5 = vcmask 318464  }
 0x2a5   : > { %4832 = vmatpush1.bf16.msra.mxu1 %v4831_v41  ;;  %v1676_v30 = vsel %vm802_vm10, %v6752_v62, %v5554_v42  ;;  %v1677_v7 = vsel %vm802_vm10, %v5554_v42, %v5555_v10 }
 0x2a6   : > { %4833 = vmatprep.subr.bf16.mxu1 %v6271_v0  ;;  %v1698_v43 = vpop.permute.xlu1 %1697  ;;  %v4796_v24 = vpack.c.bf16 %v1677_v7, %v1652_v45  ;;  %v4798_v5 = vpack.c.bf16 %v1676_v30, %v1651_v40  ;;  %v1675_v4 = vpop.permute.xlu0 %1674 }
 0x2a7   : > { %4795 = vmatpush1.bf16.msra.mxu0 %v4794_v2  ;;  %v1678_v48 = vsel %vm802_vm10, %v5555_v10, %v1675_v4  ;;  %v1702_v59 = vsel %vm7699_vm4, %v1696_v33, %v1698_v43  ;;  %vm7707_vm4 = vmmov %vm7706_vm6 }
 0x2a8   : > { %4797 = vmatprep.subr.bf16.mxu0 %v4796_v24 }
 0x2aa   : > { %v1650_v1 = vpop.permute.xlu1 %1649 }
 0x2ab   : > { %4799 = vmatpush1.bf16.msra.mxu0 %v4798_v5  ;;  %v1653_v62 = vsel %vm776_vm11, %v5550_v23, %v1650_v1  ;;  %v4650_v23 = vld [vmem:[%s7613_s2 + $0x10] sm:$0xff] }
 0x2ac   : > { %v4834_v35 = vpack.c.bf16 %v1678_v48, %v1653_v62  ;;  %1846 = vmatprep.subr.mxu0 %v1702_v59 }
 0x2ae   : > { %v1700_v31 = vpop.permute.xlu1 %1699  ;;  %4835 = vmatpush1.bf16.msra.mxu1 %v4834_v35 }
 0x2af   : > { %1847 = vmatpush1.msra.mxu0 %v1701_v50  ;;  %1917 = vmatprep.subr.mxu1 %v6297_v21  ;;  %v1703_v51 = vsel %vm7701_vm3, %v1698_v43, %v1700_v31  ;;  %vm7709_vm3 = vmmov %vm7708_vm5 }
 0x2b0   : > { %1863 = vmatmul.mubr.f32.vlgmr.msra.gmra.mrb[2].mxu0 %v4643_v13 }
 0x2b1   : > { %4651 = vmatprep.mubr.msk.f32.mxu0 %vm921_vm0, %v4649_v32 }
 0x2b2   : > { %1918 = vmatpush1.msra.mxu1 %v1703_v51 }
 0x2b3   : > { %1934 = vmatmul.mubr.f32.vlgmr.msra.gmra.mrb[2].mxu1 %v4643_v13  ;;  %4884 = vmatprep.subr.bf16.mxu1 %v6271_v0 }
 0x2b4   : > { %4652 = vmatprep.mubr.msk.f32.mxu1 %vm921_vm0, %v4649_v32 }
 0x2b7   : > { %v1793_v37 = vpop.permute.xlu0 %1792 }
 0x383   : > { %v1864_v34 = vpop.f32.mrb[2].mxu0 }
 0x384   : > { %v1866_v52 = vpop.f32.mrb[3].mxu0  ;;  %v1865_v20 = vadd.f32 %v1864_v34, %v1793_v37 }
 0x385   : > { %v1867_v63 = vadd.f32 %v1866_v52, %v1793_v37 }
 0x386   : > { %v1935_v3 = vpop.f32.mrb[2].mxu1  ;;  %v1942_v22 = vmul.f32 0.01, %v1865_v20  ;;  %vm1939_vm8 = vcmp.gt.f32.partialorder %v1865_v20, 0.0 }
 0x387   : > { %v1936_v56 = vadd.f32 %v1935_v3, %v1793_v37  ;;  %v1937_v15 = vpop.f32.mrb[3].mxu1  ;;  %v1943_v38 = vmul.f32 0.01, %v1867_v63  ;;  %vm1940_vm9 = vcmp.gt.f32.partialorder %v1867_v63, 0.0 }
 0x388   : > { %v1945_v54 = vsel %vm1939_vm8, %v1865_v20, %v1942_v22  ;;  %vm7711_vm8 = vmmov %vm7709_vm3 }
 0x389   : > { %vm1941_vm7 = vcmp.gt.f32.partialorder %v1936_v56, 0.0  ;;  %v1944_v18 = vmul.f32 0.01, %v1936_v56  ;;  %v6862_v26 = vmul.f32 %v1953_v58, %v1945_v54  ;;  %v1946_v53 = vsel %vm1940_vm9, %v1867_v63, %v1943_v38 }
 0x38a   : > { %v6875_v29 = vmul.f32 %v1957_v6, %v1946_v53  ;;  %vm7712_vm9 = vcmask 310272  }
 0x38b   : > { %v1947_v12 = vsel %vm1941_vm7, %v1936_v56, %v1944_v18  ;;  %v5621_v57 = vpack.i.bf16 %v6616_v49, %v6862_v26  ;;  %vm7710_vm7 = vmmov %vm7707_vm4 }
 0x38c   : > { %v6844_v60 = vmul.f32 %v1961_v17, %v1947_v12  ;;  %v5656_v61 = vpack.i.bf16 %v6875_v29, %v6862_v26 }
 0x38e   : > { %v5561_v19 = vpack.i.bf16 %v6844_v60, %v6847_v16  ;;  %v5726_v55 = vpack.i.bf16 %v6844_v60, %v6875_v29 }
 0x390   : > { %5562 = vrot.lane.b32.xlu0 %v5561_v19, %s6273_s22  ;;  %5557 = vrot.lane.b32.xlu1 %v5561_v19, %s6272_s21 }
 0x394   : > { %5572 = vrot.lane.b32.xlu0 %v5561_v19, %s6275_s24  ;;  %5567 = vrot.lane.b32.xlu1 %v5561_v19, %s7648_s23 }
 0x398   : > { %5582 = vrot.lane.b32.xlu0 %v5561_v19, %s6277_s26  ;;  %5577 = vrot.lane.b32.xlu1 %v5561_v19, %s6276_s25 }
 0x39c   : > { %5592 = vrot.lane.b32.xlu0 %v5561_v19, %s6279_s28  ;;  %5587 = vrot.lane.b32.xlu1 %v5561_v19, %s7662_s27 }
 0x3a0   : > { %5602 = vrot.lane.b32.xlu0 %v5561_v19, %s7660_s30  ;;  %5597 = vrot.lane.b32.xlu1 %v5561_v19, %s7658_s29 }
 0x3a4   : > { %5612 = vrot.lane.b32.xlu0 %v5561_v19, %s7652_s6  ;;  %5607 = vrot.lane.b32.xlu1 %v5561_v19, %s7650_s5 }
 0x3a8   : > { %5622 = vrot.lane.b32.xlu1 %v5621_v57, %s7702_s17  ;;  %5617 = vrot.lane.b32.xlu0 %v5621_v57, %s7703_s8 }
 0x3ac   : > { %5632 = vrot.lane.b32.xlu1 %v5621_v57, %s7704_s10  ;;  %5627 = vrot.lane.b32.xlu0 %v5621_v57, %s7666_s9 }
 0x3b0   : > { %5642 = vrot.lane.b32.xlu1 %v5621_v57, %s7668_s11  ;;  %5637 = vrot.lane.b32.xlu0 %v5621_v57, %s7669_s14 }
 0x3b4   : > { %5652 = vrot.lane.b32.xlu1 %v5621_v57, %s7670_s12  ;;  %5647 = vrot.lane.b32.xlu0 %v5621_v57, %s7664_s13 }
 0x3b8   : > { %5657 = vrot.lane.b32.xlu1 %v5656_v61, %s6272_s21  ;;  %5662 = vrot.lane.b32.xlu0 %v5656_v61, %s6273_s22 }
 0x3bc   : > { %5667 = vrot.lane.b32.xlu1 %v5656_v61, %s7648_s23  ;;  %5672 = vrot.lane.b32.xlu0 %v5656_v61, %s6275_s24  ;;  %s7705_s23 = smov 89  }
 0x3c0   : > { %5677 = vrot.lane.b32.xlu1 %v5656_v61, %s6276_s25  ;;  %5682 = vrot.lane.b32.xlu0 %v5656_v61, %s6277_s26 }
 0x3c4   : > { %5687 = vrot.lane.b32.xlu1 %v5656_v61, %s7662_s27  ;;  %5692 = vrot.lane.b32.xlu0 %v5656_v61, %s6279_s28 }
 0x3c8   : > { %5697 = vrot.lane.b32.xlu1 %v5656_v61, %s7658_s29  ;;  %5702 = vrot.lane.b32.xlu0 %v5656_v61, %s7660_s30 }
 0x3cc   : > { %5707 = vrot.lane.b32.xlu1 %v5656_v61, %s7650_s5  ;;  %5712 = vrot.lane.b32.xlu0 %v5656_v61, %s7652_s6  ;;  %s7756_s5 = smov 2   ;;  %s7757_s6 = smov 88  }
 0x3d0   : > { %5722 = vrot.lane.b32.xlu1 %v5621_v57, %s7656_s18  ;;  %5717 = vrot.lane.b32.xlu0 %v5621_v57, %s7705_s23 }
 0x3d4   : > { %5727 = vrot.lane.b32.xlu1 %v5726_v55, %s7703_s8  ;;  %5737 = vrot.lane.b32.xlu0 %v5726_v55, %s7666_s9 }
 0x3d8   : > { %5732 = vrot.lane.b32.xlu1 %v5726_v55, %s7702_s17  ;;  %5747 = vrot.lane.b32.xlu0 %v5726_v55, %s7669_s14 }
 0x3dc   : > { %5742 = vrot.lane.b32.xlu1 %v5726_v55, %s7704_s10  ;;  %5757 = vrot.lane.b32.xlu0 %v5726_v55, %s7664_s13 }
 0x3e0   : > { %5752 = vrot.lane.b32.xlu1 %v5726_v55, %s7668_s11  ;;  %5767 = vrot.lane.b32.xlu0 %v5726_v55, %s7705_s23 }
 0x3e4   : > { %5762 = vrot.lane.b32.xlu1 %v5726_v55, %s7670_s12  ;;  %5777 = vrot.lane.b32.xlu0 %v5726_v55, %s7654_s19 }
 0x3e8   : > { %5772 = vrot.lane.b32.xlu1 %v5726_v55, %s7656_s18  ;;  %5782 = vrot.lane.b32.xlu0 %v5621_v57, %s7654_s19  ;;  %s7754_s18 = smov 40   ;;  %s7755_s19 = smov 1  }
 0x3ec   : > { %2568 = vrot.lane.b32.xlu1 %v6875_v29, %s7671_s7  ;;  %2570 = vrot.lane.b32.xlu0 %v6844_v60, %s7671_s7 }
 0x3f0   : > { %2566 = vrot.lane.b32.xlu1 %v6862_v26, %s7671_s7  ;;  %2572 = vrot.lane.b32.xlu0 %v6616_v49, %s7671_s7 }
 0x3f4   : > { %2665 = vperm.xlu1 %5786, %v4650_v23  }
 0x402   : > { %v5563_v25 = vpop.permute.xlu0 %5562  ;;  %v5558_v47 = vpop.permute.xlu1 %5557 }
 0x403   : > { %v5565_v5 = vunpack.i.h.bf16 %v5563_v25  ;;  %v5564_v4 = vunpack.i.l.bf16 %v5563_v25  ;;  %v5560_v1 = vunpack.i.h.bf16 %v5558_v47  ;;  %v5559_v48 = vunpack.i.l.bf16 %v5558_v47 }
 0x406   : > { %v5573_v36 = vpop.permute.xlu0 %5572  ;;  %v5568_v14 = vpop.permute.xlu1 %5567 }
 0x407   : > { %v5575_v62 = vunpack.i.h.bf16 %v5573_v36  ;;  %v5574_v59 = vunpack.i.l.bf16 %v5573_v36  ;;  %v5570_v35 = vunpack.i.h.bf16 %v5568_v14  ;;  %v5569_v13 = vunpack.i.l.bf16 %v5568_v14 }
 0x40a   : > { %v6925_v8 = vpop.permute.xlu0 %5582  ;;  %v6927_v11 = vpop.permute.xlu1 %5577 }
 0x40b   : > { %v5585_v3 = vunpack.i.h.bf16 %v6925_v8  ;;  %v5584_v46 = vunpack.i.l.bf16 %v6925_v8  ;;  %v5580_v56 = vunpack.i.h.bf16 %v6927_v11  ;;  %v5579_v15 = vunpack.i.l.bf16 %v6927_v11 }
 0x40e   : > { %v6929_v33 = vpop.permute.xlu0 %5592  ;;  %v6931_v9 = vpop.permute.xlu1 %5587 }
 0x40f   : > { %v5595_v55 = vunpack.i.h.bf16 %v6929_v33  ;;  %v5594_v32 = vunpack.i.l.bf16 %v6929_v33  ;;  %v5590_v23 = vunpack.i.h.bf16 %v6931_v9 }
 0x412   : > { %v6933_v28 = vpop.permute.xlu0 %5602  ;;  %v6935_v49 = vpop.permute.xlu1 %5597 }
 0x416   : > { %v6937_v41 = vpop.permute.xlu0 %5612  ;;  %v6939_v10 = vpop.permute.xlu1 %5607 }
 0x41a   : > { %v6941_v42 = vpop.permute.xlu1 %5622  ;;  %v6943_v2 = vpop.permute.xlu0 %5617 }
 0x41e   : > { %v6945_v30 = vpop.permute.xlu1 %5632  ;;  %v6947_v45 = vpop.permute.xlu0 %5627 }
 0x422   : > { %v6949_v7 = vpop.permute.xlu1 %5642  ;;  %v6951_v40 = vpop.permute.xlu0 %5637 }
 0x426   : > { %v6953_v43 = vpop.permute.xlu1 %5652  ;;  %v6955_v24 = vpop.permute.xlu0 %5647 }
 0x42a   : > { %v5658_v50 = vpop.permute.xlu1 %5657  ;;  %v5663_v31 = vpop.permute.xlu0 %5662 }
 0x42b   : > { %v5660_v51 = vunpack.i.h.bf16 %v5658_v50  ;;  %v5659_v34 = vunpack.i.l.bf16 %v5658_v50  ;;  %v5665_v52 = vunpack.i.h.bf16 %v5663_v31  ;;  %v5664_v37 = vunpack.i.l.bf16 %v5663_v31 }
 0x42d   : > { %v1995_v17 = vsel %vm224_vm1, %v5660_v51, %v5560_v1  ;;  %v1993_v18 = vsel %vm224_vm1, %v5559_v48, %v5659_v34  ;;  %v2020_v12 = vsel %vm250_vm2, %v5665_v52, %v5565_v5  ;;  %v2018_v19 = vsel %vm250_vm2, %v5564_v4, %v5664_v37 }
 0x42e   : > { %v5668_v20 = vpop.permute.xlu1 %5667  ;;  %v5673_v22 = vpop.permute.xlu0 %5672  ;;  %v1994_v58 = vsel %vm224_vm1, %v5659_v34, %v5660_v51  ;;  %v2019_v54 = vsel %vm250_vm2, %v5664_v37, %v5665_v52  ;;  %v4885_v57 = vpack.c.bf16 %v2020_v12, %v1995_v17  ;;  %v4838_v63 = vpack.c.bf16 %v2018_v19, %v1993_v18 }
 0x42f   : > { %v5670_v38 = vunpack.i.h.bf16 %v5668_v20  ;;  %v5669_v6 = vunpack.i.l.bf16 %v5668_v20  ;;  %v5675_v53 = vunpack.i.h.bf16 %v5673_v22  ;;  %v5674_v61 = vunpack.i.l.bf16 %v5673_v22 }
 0x430   : > { %v4836_v25 = vpack.c.bf16 %v2019_v54, %v1994_v58  ;;  %4886 = vmatpush1.bf16.msra.mxu1 %v4885_v57  ;;  %v5604_v51 = vunpack.i.l.bf16 %v6933_v28  ;;  %v5615_v57 = vunpack.i.h.bf16 %v6937_v41 }
 0x431   : > { %v2045_v47 = vsel %vm7706_vm6, %v5670_v38, %v5570_v35  ;;  %v2043_v36 = vsel %vm7707_vm4, %v5569_v13, %v5669_v6  ;;  %v2070_v14 = vsel %vm7708_vm5, %v5675_v53, %v5575_v62  ;;  %v2068_v8 = vsel %vm7709_vm3, %v5574_v59, %v5674_v61  ;;  %4887 = vmatprep.subr.bf16.mxu1 %v6271_v0  ;;  %vm7713_vm6 = vmmov %vm7712_vm9 }
 0x432   : > { %4837 = vmatprep.subr.bf16.mxu0 %v4836_v25  ;;  %v5678_v11 = vpop.permute.xlu1 %5677  ;;  %v5683_v5 = vpop.permute.xlu0 %5682  ;;  %v2044_v4 = vsel %vm7710_vm7, %v5669_v6, %v5670_v38  ;;  %v2069_v33 = vsel %vm7711_vm8, %v5674_v61, %v5675_v53  ;;  %v4888_v1 = vpack.c.bf16 %v2070_v14, %v2045_v47  ;;  %v4842_v48 = vpack.c.bf16 %v2068_v8, %v2043_v36  ;;  %vm7716_vm3 = vmmov %vm7713_vm6 }
 0x433   : > { %4839 = vmatpush1.bf16.msra.mxu0 %v4838_v63  ;;  %v5680_v50 = vunpack.i.h.bf16 %v5678_v11  ;;  %v5679_v35 = vunpack.i.l.bf16 %v5678_v11  ;;  %v5685_v31 = vunpack.i.h.bf16 %v5683_v5  ;;  %v5684_v13 = vunpack.i.l.bf16 %v5683_v5 }
 0x434   : > { %v5589_v62 = vunpack.i.l.bf16 %v6931_v9  ;;  %v5605_v59 = vunpack.i.h.bf16 %v6933_v28  ;;  %v4840_v34 = vpack.c.bf16 %v2069_v33, %v2044_v4  ;;  %4889 = vmatpush1.bf16.msra.mxu1 %v4888_v1  ;;  %vm7714_vm4 = vcmask 179200  }
 0x435   : > { %v2095_v52 = vsel %vm7712_vm9, %v5680_v50, %v5580_v56  ;;  %v2093_v37 = vsel %vm7713_vm6, %v5579_v15, %v5679_v35  ;;  %v2120_v17 = vsel %vm7714_vm4, %v5685_v31, %v5585_v3  ;;  %vm7715_vm5 = vmmov %vm7714_vm4  ;;  %4890 = vmatprep.subr.bf16.mxu1 %v6271_v0  ;;  %v2094_v9 = vsel %vm7716_vm3, %v5679_v35, %v5680_v50 }
 0x436   : > { %v2118_v18 = vsel %vm7715_vm5, %v5584_v46, %v5684_v13  ;;  %4841 = vmatprep.subr.bf16.mxu0 %v4840_v34  ;;  %v5688_v12 = vpop.permute.xlu1 %5687  ;;  %v5693_v19 = vpop.permute.xlu0 %5692  ;;  %vm7717_vm7 = vmmov %vm7714_vm4  ;;  %v4891_v28 = vpack.c.bf16 %v2120_v17, %v2095_v52  ;;  %v5600_v3 = vunpack.i.h.bf16 %v6935_v49  ;;  %v5599_v46 = vunpack.i.l.bf16 %v6935_v49 }
 0x437   : > { %v2119_v20 = vsel %vm7717_vm7, %v5684_v13, %v5685_v31  ;;  %v4846_v22 = vpack.c.bf16 %v2118_v18, %v2093_v37  ;;  %4843 = vmatpush1.bf16.msra.mxu0 %v4842_v48  ;;  %v5690_v58 = vunpack.i.h.bf16 %v5688_v12  ;;  %v5689_v56 = vunpack.i.l.bf16 %v5688_v12 }
 0x438   : > { %v5695_v54 = vunpack.i.h.bf16 %v5693_v19  ;;  %v5694_v15 = vunpack.i.l.bf16 %v5693_v19  ;;  %v4844_v63 = vpack.c.bf16 %v2119_v20, %v2094_v9  ;;  %4892 = vmatpush1.bf16.msra.mxu1 %v4891_v28  ;;  %vm7718_vm8 = vcmask 171008  }
 0x439   : > { %v2145_v38 = vsel %vm7718_vm8, %v5690_v58, %v5590_v23  ;;  %vm7719_vm9 = vmmov %vm7718_vm8  ;;  %vm7720_vm6 = vcmask 162816   ;;  %4893 = vmatprep.subr.bf16.mxu1 %v6271_v0  ;;  %v5609_v33 = vunpack.i.l.bf16 %v6939_v10  ;;  %vm7724_vm7 = vcmask 154624  }
 0x43a   : > { %v2143_v6 = vsel %vm7719_vm9, %v5589_v62, %v5689_v56  ;;  %v2170_v53 = vsel %vm7720_vm6, %v5695_v54, %v5595_v55  ;;  %vm7721_vm4 = vmmov %vm7720_vm6  ;;  %4845 = vmatprep.subr.bf16.mxu0 %v4844_v63  ;;  %v5698_v25 = vpop.permute.xlu1 %5697  ;;  %v5703_v47 = vpop.permute.xlu0 %5702  ;;  %v5614_v55 = vunpack.i.l.bf16 %v6937_v41  ;;  %vm7726_vm9 = vcmask 146432  }
 0x43b   : > { %v2168_v61 = vsel %vm7721_vm4, %v5594_v32, %v5694_v15  ;;  %vm7722_vm5 = vmmov %vm7718_vm8  ;;  %v4894_v14 = vpack.c.bf16 %v2170_v53, %v2145_v38  ;;  %4847 = vmatpush1.bf16.msra.mxu0 %v4846_v22  ;;  %v5700_v11 = vunpack.i.h.bf16 %v5698_v25  ;;  %v5699_v23 = vunpack.i.l.bf16 %v5698_v25 }
 0x43c   : > { %v2144_v36 = vsel %vm7722_vm5, %v5689_v56, %v5690_v58  ;;  %vm7723_vm3 = vmmov %vm7721_vm4  ;;  %v4850_v8 = vpack.c.bf16 %v2168_v61, %v2143_v6  ;;  %v5705_v5 = vunpack.i.h.bf16 %v5703_v47  ;;  %v5704_v4 = vunpack.i.l.bf16 %v5703_v47 }
 0x43d   : > { %v2169_v49 = vsel %vm7723_vm3, %v5694_v15, %v5695_v54  ;;  %v5610_v32 = vunpack.i.h.bf16 %v6939_v10  ;;  %4895 = vmatpush1.bf16.msra.mxu1 %v4894_v14  ;;  %v2195_v48 = vsel %vm7724_vm7, %v5700_v11, %v5600_v3  ;;  %vm7725_vm8 = vmmov %vm7724_vm7  ;;  %vm7730_vm3 = vcmask 15360  }
 0x43e   : > { %v4848_v1 = vpack.c.bf16 %v2169_v49, %v2144_v36  ;;  %v2193_v50 = vsel %vm7725_vm8, %v5599_v46, %v5699_v23  ;;  %v2220_v35 = vsel %vm7726_vm9, %v5705_v5, %v5605_v59  ;;  %vm7727_vm6 = vmmov %vm7726_vm9  ;;  %4896 = vmatprep.subr.bf16.mxu1 %v6271_v0  ;;  %v5708_v13 = vpop.permute.xlu1 %5707  ;;  %v5713_v62 = vpop.permute.xlu0 %5712  ;;  %vm7732_vm8 = vcmask 7168  }
 0x43f   : > { %v2218_v31 = vsel %vm7727_vm6, %v5604_v51, %v5704_v4  ;;  %vm7728_vm4 = vmmov %vm7724_vm7  ;;  %v4897_v10 = vpack.c.bf16 %v2220_v35, %v2195_v48  ;;  %v5710_v37 = vunpack.i.h.bf16 %v5708_v13  ;;  %v5709_v17 = vunpack.i.l.bf16 %v5708_v13 }
 0x440   : > { %4849 = vmatprep.subr.bf16.mxu0 %v4848_v1  ;;  %v2194_v41 = vsel %vm7728_vm4, %v5699_v23, %v5700_v11  ;;  %vm7729_vm5 = vmmov %vm7727_vm6  ;;  %v4854_v52 = vpack.c.bf16 %v2218_v31, %v2193_v50  ;;  %v5715_v18 = vunpack.i.h.bf16 %v5713_v62  ;;  %v5714_v12 = vunpack.i.l.bf16 %v5713_v62 }
 0x441   : > { %v2219_v34 = vsel %vm7729_vm5, %v5704_v4, %v5705_v5  ;;  %4851 = vmatpush1.bf16.msra.mxu0 %v4850_v8  ;;  %4898 = vmatpush1.bf16.msra.mxu1 %v4897_v10  ;;  %v2245_v59 = vsel %vm7730_vm3, %v5710_v37, %v5610_v32  ;;  %vm7731_vm7 = vmmov %vm7730_vm3  ;;  %v5625_v46 = vunpack.i.h.bf16 %v6941_v42  ;;  %v5620_v6 = vunpack.i.h.bf16 %v6943_v2 }
 0x442   : > { %v4852_v19 = vpack.c.bf16 %v2219_v34, %v2194_v41  ;;  %v2243_v51 = vsel %vm7731_vm7, %v5609_v33, %v5709_v17  ;;  %v2270_v9 = vsel %vm7732_vm8, %v5715_v18, %v5615_v57  ;;  %vm7733_vm9 = vmmov %vm7732_vm8  ;;  %4899 = vmatprep.subr.bf16.mxu1 %v6271_v0  ;;  %v7012_v28 = vpop.permute.xlu1 %5722  ;;  %v7014_v22 = vpop.permute.xlu0 %5717  ;;  %v5624_v57 = vunpack.i.l.bf16 %v6941_v42 }
 0x443   : > { %v2268_v20 = vsel %vm7733_vm9, %v5614_v55, %v5714_v12  ;;  %vm7734_vm6 = vmmov %vm7730_vm3  ;;  %v4900_v54 = vpack.c.bf16 %v2270_v9, %v2245_v59  ;;  %v5619_v53 = vunpack.i.l.bf16 %v6943_v2  ;;  %v5635_v47 = vunpack.i.h.bf16 %v6945_v30 }
 0x444   : > { %4853 = vmatprep.subr.bf16.mxu0 %v4852_v19  ;;  %v2244_v58 = vsel %vm7734_vm6, %v5709_v17, %v5710_v37  ;;  %vm7735_vm4 = vmmov %vm7732_vm8  ;;  %v4858_v15 = vpack.c.bf16 %v2268_v20, %v2243_v51  ;;  %v5634_v36 = vunpack.i.l.bf16 %v6945_v30  ;;  %v5630_v49 = vunpack.i.h.bf16 %v6947_v45 }
 0x445   : > { %v2269_v56 = vsel %vm7735_vm4, %v5714_v12, %v5715_v18  ;;  %4855 = vmatpush1.bf16.msra.mxu0 %v4854_v52  ;;  %4901 = vmatpush1.bf16.msra.mxu1 %v4900_v54  ;;  %v5629_v14 = vunpack.i.l.bf16 %v6947_v45  ;;  %v5645_v42 = vunpack.i.h.bf16 %v6949_v7  ;;  %vm7736_vm5 = vcmask 1039360  }
 0x446   : > { %v4856_v3 = vpack.c.bf16 %v2269_v56, %v2244_v58  ;;  %4902 = vmatprep.subr.bf16.mxu1 %v6271_v0  ;;  %v5728_v63 = vpop.permute.xlu1 %5727  ;;  %v5738_v38 = vpop.permute.xlu0 %5737  ;;  %vm7737_vm3 = vmmov %vm7736_vm5  ;;  %v5644_v2 = vunpack.i.l.bf16 %v6949_v7  ;;  %v5640_v33 = vunpack.i.h.bf16 %v6951_v40  ;;  %v5639_v50 = vunpack.i.l.bf16 %v6951_v40 }
 0x447   : > { %v5730_v61 = vunpack.i.h.bf16 %v5728_v63  ;;  %v5729_v25 = vunpack.i.l.bf16 %v5728_v63  ;;  %v5740_v23 = vunpack.i.h.bf16 %v5738_v38  ;;  %v5739_v5 = vunpack.i.l.bf16 %v5738_v38  ;;  %vm7738_vm7 = vmmov %vm7737_vm3 }
 0x448   : > { %4857 = vmatprep.subr.bf16.mxu0 %v4856_v3  ;;  %v5655_v35 = vunpack.i.h.bf16 %v6953_v43  ;;  %v5654_v31 = vunpack.i.l.bf16 %v6953_v43  ;;  %vm7739_vm8 = vcmask 900096   ;;  %vm7740_vm9 = vcmask 1031168  }
 0x449   : > { %4859 = vmatpush1.bf16.msra.mxu0 %v4858_v15  ;;  %v2299_v8 = vsel %vm7736_vm5, %v5619_v53, %v5729_v25  ;;  %v2301_v11 = vsel %vm7737_vm3, %v5730_v61, %v5620_v6  ;;  %v2300_v32 = vsel %vm7738_vm7, %v5729_v25, %v5730_v61  ;;  %v2351_v62 = vsel %vm7739_vm8, %v5740_v23, %v5630_v49  ;;  %vm7741_vm6 = vmmov %vm7740_vm9 }
 0x44a   : > { %v5733_v4 = vpop.permute.xlu1 %5732  ;;  %v5748_v55 = vpop.permute.xlu0 %5747  ;;  %v4903_v30 = vpack.c.bf16 %v2301_v11, %v6844_v60  ;;  %v4862_v48 = vpack.c.bf16 %v2299_v8, %v6862_v26  ;;  %v4860_v13 = vpack.c.bf16 %v2300_v32, %v6875_v29  ;;  %vm7742_vm4 = vmmov %vm7739_vm8  ;;  %v5650_v59 = vunpack.i.h.bf16 %v6955_v24 }
 0x44b   : > { %v5735_v1 = vunpack.i.h.bf16 %v5733_v4  ;;  %v5734_v45 = vunpack.i.l.bf16 %v5733_v4  ;;  %v5750_v34 = vunpack.i.h.bf16 %v5748_v55  ;;  %v2349_v26 = vsel %vm7742_vm4, %v5629_v14, %v5739_v5  ;;  %vm7743_vm5 = vmmov %vm7741_vm6 }
 0x44c   : > { %4904 = vmatpush1.bf16.msra.mxu1 %v4903_v30  ;;  %v5749_v10 = vunpack.i.l.bf16 %v5748_v55  ;;  %4861 = vmatprep.subr.bf16.mxu0 %v4860_v13  ;;  %vm7744_vm3 = vmmov %vm7742_vm4  ;;  %v5649_v51 = vunpack.i.l.bf16 %v6955_v24  ;;  %v5725_v9 = vunpack.i.h.bf16 %v7012_v28  ;;  %vm7745_vm7 = vcmask 883712  }
 0x44d   : > { %v2324_v41 = vsel %vm7740_vm9, %v5624_v57, %v5734_v45  ;;  %v2326_v60 = vsel %vm7741_vm6, %v5735_v1, %v5625_v46  ;;  %4905 = vmatprep.subr.bf16.mxu1 %v6271_v0  ;;  %v2325_v37 = vsel %vm7743_vm5, %v5734_v45, %v5735_v1  ;;  %4863 = vmatpush1.bf16.msra.mxu0 %v4862_v48  ;;  %vm7746_vm8 = vcmask 891904   ;;  %vm7748_vm6 = vmmov %vm7745_vm7 }
 0x44e   : > { %v5743_v40 = vpop.permute.xlu1 %5742  ;;  %v5758_v52 = vpop.permute.xlu0 %5757  ;;  %v4906_v17 = vpack.c.bf16 %v2351_v62, %v2326_v60  ;;  %v2350_v12 = vsel %vm7744_vm3, %v5739_v5, %v5740_v23  ;;  %v4866_v19 = vpack.c.bf16 %v2349_v26, %v2324_v41  ;;  %v2401_v58 = vsel %vm7745_vm7, %v5750_v34, %v5640_v33  ;;  %vm7747_vm9 = vmmov %vm7746_vm8 }
 0x44f   : > { %v5745_v29 = vunpack.i.h.bf16 %v5743_v40  ;;  %v5744_v18 = vunpack.i.l.bf16 %v5743_v40  ;;  %v4864_v20 = vpack.c.bf16 %v2350_v12, %v2325_v37  ;;  %v5760_v15 = vunpack.i.h.bf16 %v5758_v52  ;;  %vm7749_vm4 = vmmov %vm7746_vm8 }
 0x450   : > { %4907 = vmatpush1.bf16.msra.mxu1 %v4906_v17  ;;  %v2399_v3 = vsel %vm7748_vm6, %v5639_v50, %v5749_v10  ;;  %v5759_v46 = vunpack.i.l.bf16 %v5758_v52  ;;  %vm7750_vm5 = vmmov %vm7748_vm6  ;;  %v5720_v8 = vunpack.i.h.bf16 %v7014_v22  ;;  %v5719_v4 = vunpack.i.l.bf16 %v7014_v22 }
 0x451   : > { %v2374_v56 = vsel %vm7746_vm8, %v5634_v36, %v5744_v18  ;;  %v2376_v54 = vsel %vm7747_vm9, %v5745_v29, %v5635_v47  ;;  %4908 = vmatprep.subr.bf16.mxu1 %v6271_v0  ;;  %4865 = vmatprep.subr.bf16.mxu0 %v4864_v20  ;;  %v2375_v24 = vsel %vm7749_vm4, %v5744_v18, %v5745_v29  ;;  %v5724_v47 = vunpack.i.l.bf16 %v7012_v28 }
 0x452   : > { %v5753_v57 = vpop.permute.xlu1 %5752  ;;  %v5768_v63 = vpop.permute.xlu0 %5767  ;;  %v4909_v38 = vpack.c.bf16 %v2401_v58, %v2376_v54  ;;  %4867 = vmatpush1.bf16.msra.mxu0 %v4866_v19  ;;  %v2400_v61 = vsel %vm7750_vm5, %v5749_v10, %v5750_v34  ;;  %v4870_v25 = vpack.c.bf16 %v2399_v3, %v2374_v56  ;;  %v2451_v11 = vsel %vm698_vm14, %v5760_v15, %v5650_v59 }
 0x453   : > { %v5755_v6 = vunpack.i.h.bf16 %v5753_v57  ;;  %v5754_v53 = vunpack.i.l.bf16 %v5753_v57  ;;  %v5770_v36 = vunpack.i.h.bf16 %v5768_v63  ;;  %v5769_v49 = vunpack.i.l.bf16 %v5768_v63 }
 0x454   : > { %v4868_v14 = vpack.c.bf16 %v2400_v61, %v2375_v24  ;;  %4910 = vmatpush1.bf16.msra.mxu1 %v4909_v38  ;;  %v2449_v55 = vsel %vm698_vm14, %v5649_v51, %v5759_v46  ;;  %vm7751_vm3 = vcmask 703488   ;;  %vm7759_vm5 = vcmask 326656  }
 0x455   : > { %v2424_v23 = vsel %vm672_vm15, %v5644_v2, %v5754_v53  ;;  %v2426_v5 = vsel %vm672_vm15, %v5755_v6, %v5645_v42  ;;  %4911 = vmatprep.subr.bf16.mxu1 %v6271_v0  ;;  %v2425_v33 = vsel %vm672_vm15, %v5754_v53, %v5755_v6  ;;  %v2450_v2 = vsel %vm698_vm14, %v5759_v46, %v5760_v15  ;;  %v4648_v46 = vld [vmem:[%s7612_s1 + $0x20] sm:$0xff]  ;;  %vm7752_vm7 = vmmov %vm7751_vm3 }
 0x456   : > { %4869 = vmatprep.subr.bf16.mxu0 %v4868_v14  ;;  %v5763_v32 = vpop.permute.xlu1 %5762  ;;  %v5778_v30 = vpop.permute.xlu0 %5777  ;;  %v4912_v1 = vpack.c.bf16 %v2451_v11, %v2426_v5  ;;  %v4874_v7 = vpack.c.bf16 %v2449_v55, %v2424_v23  ;;  %v2499_v42 = vsel %vm750_vm13, %v5719_v4, %v5769_v49  ;;  %v2501_v50 = vsel %vm750_vm13, %v5770_v36, %v5720_v8  ;;  %vm7753_vm8 = vmmov %vm7751_vm3  ;;  %v2821_v6 = vld [vmem:[%s7614_s3] sm:$0x7] }
 0x457   : > { %4871 = vmatpush1.bf16.msra.mxu0 %v4870_v25  ;;  %v5765_v45 = vunpack.i.h.bf16 %v5763_v32  ;;  %v5764_v48 = vunpack.i.l.bf16 %v5763_v32  ;;  %v4872_v13 = vpack.c.bf16 %v2450_v2, %v2425_v33  ;;  %v2500_v22 = vsel %vm750_vm13, %v5769_v49, %v5770_v36 }
 0x458   : > { %4913 = vmatpush1.bf16.msra.mxu1 %v4912_v1  ;;  %v5780_v60 = vunpack.i.h.bf16 %v5778_v30  ;;  %v5779_v26 = vunpack.i.l.bf16 %v5778_v30  ;;  %v7120_v30 = vld [vmem:[%s6337_s20 + $0x20] sm:$0xff] }
 0x459   : > { %v2474_v62 = vsel %vm724_vm12, %v5654_v31, %v5764_v48  ;;  %v2476_v41 = vsel %vm724_vm12, %v5765_v45, %v5655_v35  ;;  %4914 = vmatprep.subr.bf16.mxu1 %v6271_v0  ;;  %v2475_v34 = vsel %vm724_vm12, %v5764_v48, %v5765_v45  ;;  %4873 = vmatprep.subr.bf16.mxu0 %v4872_v13  ;;  %v4654_v13 = vld [vmem:[%s7612_s1 + $0x38] sm:$0xff] }
 0x45a   : > { %v5773_v10 = vpop.permute.xlu1 %5772  ;;  %v5783_v40 = vpop.permute.xlu0 %5782  ;;  %v4876_v52 = vpack.c.bf16 %v2500_v22, %v2475_v34  ;;  %v4915_v37 = vpack.c.bf16 %v2501_v50, %v2476_v41  ;;  %v4878_v17 = vpack.c.bf16 %v2499_v42, %v2474_v62  ;;  %v2550_v56 = vsel %vm802_vm10, %v5779_v26, %v5780_v60  ;;  %v4655_v22 = vld [vmem:[%s7613_s2 + $0x18] sm:$0xff] }
 0x45b   : > { %4875 = vmatpush1.bf16.msra.mxu0 %v4874_v7  ;;  %v5775_v29 = vunpack.i.h.bf16 %v5773_v10  ;;  %v5774_v18 = vunpack.i.l.bf16 %v5773_v10  ;;  %v5785_v31 = vunpack.i.h.bf16 %v5783_v40  ;;  %v5784_v12 = vunpack.i.l.bf16 %v5783_v40 }
 0x45c   : > { %4877 = vmatprep.subr.bf16.mxu0 %v4876_v52  ;;  %4916 = vmatpush1.bf16.msra.mxu1 %v4915_v37  ;;  %v2830_v48 = vrot.slane %v2821_v6, %v6565_v44 }
 0x45d   : > { %v2524_v43 = vsel %vm776_vm11, %v5724_v47, %v5774_v18  ;;  %v2526_v35 = vsel %vm776_vm11, %v5775_v29, %v5725_v9  ;;  %v2549_v19 = vsel %vm802_vm10, %v5784_v12, %v5779_v26  ;;  %v2551_v59 = vsel %vm802_vm10, %v5780_v60, %v5785_v31  ;;  %4917 = vmatprep.subr.bf16.mxu1 %v6271_v0 }
 0x45e   : > { %v2569_v51 = vpop.permute.xlu1 %2568  ;;  %v2571_v20 = vpop.permute.xlu0 %2570  ;;  %v2525_v58 = vsel %vm776_vm11, %v5774_v18, %v5775_v29  ;;  %v4918_v54 = vpack.c.bf16 %v2551_v59, %v2526_v35  ;;  %v4882_v3 = vpack.c.bf16 %v2549_v19, %v2524_v43  ;;  %v2834_v47 = vrot.slane %v2821_v6, %v6532_v27 }
 0x45f   : > { %4879 = vmatpush1.bf16.msra.mxu0 %v4878_v17  ;;  %v4880_v15 = vpack.c.bf16 %v2550_v56, %v2525_v58  ;;  %v2575_v63 = vsel %vm7752_vm7, %v2569_v51, %v2571_v20  ;;  %vm7761_vm7 = vcmask 318464  }
 0x460   : > { %4919 = vmatpush1.bf16.msra.mxu1 %v4918_v54 }
 0x461   : > { %4881 = vmatprep.subr.bf16.mxu0 %v4880_v15  ;;  %2790 = vmatprep.subr.mxu1 %v6297_v21 }
 0x462   : > { %v2567_v28 = vpop.permute.xlu1 %2566  ;;  %v2573_v9 = vpop.permute.xlu0 %2572 }
 0x463   : > { %4883 = vmatpush1.bf16.msra.mxu0 %v4882_v3  ;;  %v2576_v57 = vsel %vm7751_vm3, %v2571_v20, %v2573_v9  ;;  %v2574_v24 = vsel %vm7753_vm8, %v2567_v28, %v2569_v51  ;;  %vm7760_vm3 = vmmov %vm7759_vm5 }
 0x464   : > { %2719 = vmatprep.subr.mxu0 %v2575_v63  ;;  %2791 = vmatpush1.msra.mxu1 %v2576_v57  ;;  %vm7762_vm8 = vmmov %vm7761_vm7 }
 0x465   : > { %2807 = vmatmul.mubr.f32.vlgmr.msra.gmra.mrb[4].mxu1 %v4648_v46  ;;  %4968 = vmatprep.subr.bf16.mxu1 %v6271_v0 }
 0x466   : > { %4657 = vmatprep.mubr.msk.f32.mxu1 %vm921_vm0, %v4654_v13 }
 0x467   : > { %2720 = vmatpush1.msra.mxu0 %v2574_v24 }
 0x468   : > { %2736 = vmatmul.mubr.f32.vlgmr.msra.gmra.mrb[4].mxu0 %v4648_v46 }
 0x469   : > { %4656 = vmatprep.mubr.msk.f32.mxu0 %vm921_vm0, %v4654_v13 }
 0x473   : > { %v2666_v38 = vpop.permute.xlu1 %2665 }
 0x538   : > { %v2808_v53 = vpop.f32.mrb[4].mxu1 }
 0x539   : > { %v2809_v61 = vadd.f32 %v2808_v53, %v2666_v38  ;;  %v2810_v25 = vpop.f32.mrb[5].mxu1 }
 0x53b   : > { %vm2814_vm9 = vcmp.gt.f32.partialorder %v2809_v61, 0.0  ;;  %v2817_v36 = vmul.f32 0.01, %v2809_v61  ;;  %v2737_v49 = vpop.f32.mrb[4].mxu0 }
 0x53c   : > { %v2739_v14 = vpop.f32.mrb[5].mxu0  ;;  %v2738_v5 = vadd.f32 %v2737_v49, %v2666_v38 }
 0x53d   : > { %v2820_v8 = vsel %vm2814_vm9, %v2809_v61, %v2817_v36  ;;  %v2740_v1 = vadd.f32 %v2739_v14, %v2666_v38  ;;  %vm7763_vm9 = vmmov %vm7760_vm3 }
 0x53e   : > { %v7100_v11 = vmul.f32 %v2834_v47, %v2820_v8  ;;  %v2815_v4 = vmul.f32 0.01, %v2738_v5  ;;  %vm2812_vm6 = vcmp.gt.f32.partialorder %v2738_v5, 0.0 }
 0x53f   : > { %v2816_v45 = vmul.f32 0.01, %v2740_v1  ;;  %vm2813_vm4 = vcmp.gt.f32.partialorder %v2740_v1, 0.0 }
 0x540   : > { %v5792_v23 = vpack.i.bf16 %v7100_v11, %v6847_v16  ;;  %v2826_v16 = vrot.slane %v2821_v6, %v6548_v39  ;;  %v2818_v55 = vsel %vm2812_vm6, %v2738_v5, %v2815_v4  ;;  %vm7764_vm6 = vmmov %vm7761_vm7 }
 0x541   : > { %v2819_v2 = vsel %vm2813_vm4, %v2740_v1, %v2816_v45  ;;  %vm7765_vm4 = vcmask 310272  }
 0x542   : > { %5793 = vrot.lane.b32.xlu1 %v5792_v23, %s6273_s22  ;;  %5788 = vrot.lane.b32.xlu0 %v5792_v23, %s6272_s21  ;;  %v7115_v32 = vmul.f32 %v2826_v16, %v2818_v55  ;;  %v7131_v7 = vmul.f32 %v2830_v48, %v2819_v2 }
 0x544   : > { %v5852_v33 = vpack.i.bf16 %v7120_v30, %v7115_v32  ;;  %v5887_v42 = vpack.i.bf16 %v7131_v7, %v7115_v32  ;;  %v5957_v50 = vpack.i.bf16 %v7100_v11, %v7131_v7 }
 0x546   : > { %5803 = vrot.lane.b32.xlu1 %v5792_v23, %s6275_s24  ;;  %5798 = vrot.lane.b32.xlu0 %v5792_v23, %s7754_s18 }
 0x54a   : > { %5813 = vrot.lane.b32.xlu1 %v5792_v23, %s6277_s26  ;;  %5808 = vrot.lane.b32.xlu0 %v5792_v23, %s6276_s25 }
 0x54e   : > { %5823 = vrot.lane.b32.xlu1 %v5792_v23, %s6279_s28  ;;  %5818 = vrot.lane.b32.xlu0 %v5792_v23, %s7662_s27 }
 0x552   : > { %5833 = vrot.lane.b32.xlu1 %v5792_v23, %s7660_s30  ;;  %5828 = vrot.lane.b32.xlu0 %v5792_v23, %s7658_s29 }
 0x556   : > { %5843 = vrot.lane.b32.xlu1 %v5792_v23, %s7755_s19  ;;  %5838 = vrot.lane.b32.xlu0 %v5792_v23, %s7756_s5 }
 0x55a   : > { %5853 = vrot.lane.b32.xlu0 %v5852_v33, %s7702_s17  ;;  %5848 = vrot.lane.b32.xlu1 %v5852_v33, %s7703_s8 }
 0x55e   : > { %5863 = vrot.lane.b32.xlu0 %v5852_v33, %s7704_s10  ;;  %5858 = vrot.lane.b32.xlu1 %v5852_v33, %s7666_s9 }
 0x562   : > { %5873 = vrot.lane.b32.xlu0 %v5852_v33, %s7668_s11  ;;  %5868 = vrot.lane.b32.xlu1 %v5852_v33, %s7669_s14 }
 0x566   : > { %5883 = vrot.lane.b32.xlu0 %v5852_v33, %s7670_s12  ;;  %5878 = vrot.lane.b32.xlu1 %v5852_v33, %s7664_s13 }
 0x56a   : > { %5888 = vrot.lane.b32.xlu0 %v5887_v42, %s6272_s21  ;;  %5893 = vrot.lane.b32.xlu1 %v5887_v42, %s6273_s22 }
 0x56e   : > { %5898 = vrot.lane.b32.xlu0 %v5887_v42, %s7754_s18  ;;  %5903 = vrot.lane.b32.xlu1 %v5887_v42, %s6275_s24 }
 0x572   : > { %5908 = vrot.lane.b32.xlu0 %v5887_v42, %s6276_s25  ;;  %5913 = vrot.lane.b32.xlu1 %v5887_v42, %s6277_s26 }
 0x576   : > { %5918 = vrot.lane.b32.xlu0 %v5887_v42, %s7662_s27  ;;  %5923 = vrot.lane.b32.xlu1 %v5887_v42, %s6279_s28  ;;  %s7810_s27 = smov 110  }
 0x57a   : > { %5928 = vrot.lane.b32.xlu0 %v5887_v42, %s7658_s29  ;;  %5933 = vrot.lane.b32.xlu1 %v5887_v42, %s7660_s30  ;;  %s7758_s29 = smov 87   ;;  %s7811_s30 = smov 106  }
 0x57e   : > { %5938 = vrot.lane.b32.xlu0 %v5887_v42, %s7756_s5  ;;  %5943 = vrot.lane.b32.xlu1 %v5887_v42, %s7755_s19 }
 0x582   : > { %5953 = vrot.lane.b32.xlu0 %v5852_v33, %s7757_s6  ;;  %5948 = vrot.lane.b32.xlu1 %v5852_v33, %s7705_s23 }
 0x586   : > { %5958 = vrot.lane.b32.xlu0 %v5957_v50, %s7703_s8  ;;  %5968 = vrot.lane.b32.xlu1 %v5957_v50, %s7666_s9  ;;  %s7808_s9 = smov 18  }
 0x58a   : > { %5963 = vrot.lane.b32.xlu0 %v5957_v50, %s7702_s17  ;;  %5978 = vrot.lane.b32.xlu1 %v5957_v50, %s7669_s14 }
 0x58e   : > { %5973 = vrot.lane.b32.xlu0 %v5957_v50, %s7704_s10  ;;  %5988 = vrot.lane.b32.xlu1 %v5957_v50, %s7664_s13  ;;  %s7809_s13 = smov 19  }
 0x592   : > { %5983 = vrot.lane.b32.xlu0 %v5957_v50, %s7668_s11  ;;  %5998 = vrot.lane.b32.xlu1 %v5957_v50, %s7705_s23 }
 0x596   : > { %5993 = vrot.lane.b32.xlu0 %v5957_v50, %s7670_s12  ;;  %6008 = vrot.lane.b32.xlu1 %v5957_v50, %s7758_s29 }
 0x59a   : > { %6003 = vrot.lane.b32.xlu0 %v5957_v50, %s7757_s6  ;;  %6013 = vrot.lane.b32.xlu1 %v5852_v33, %s7758_s29 }
 0x59e   : > { %3441 = vrot.lane.b32.xlu0 %v7131_v7, %s7671_s7  ;;  %3443 = vrot.lane.b32.xlu1 %v7100_v11, %s7671_s7 }
 0x5a2   : > { %3439 = vrot.lane.b32.xlu0 %v7115_v32, %s7671_s7  ;;  %3445 = vrot.lane.b32.xlu1 %v7120_v30, %s7671_s7 }
 0x5a6   : > { %3538 = vperm.xlu0 %5335, %v4655_v22  }
 0x5b4   : > { %v5794_v62 = vpop.permute.xlu1 %5793  ;;  %v5789_v41 = vpop.permute.xlu0 %5788 }
 0x5b5   : > { %v5796_v58 = vunpack.i.h.bf16 %v5794_v62  ;;  %v5795_v56 = vunpack.i.l.bf16 %v5794_v62  ;;  %v5791_v54 = vunpack.i.h.bf16 %v5789_v41  ;;  %v5790_v15 = vunpack.i.l.bf16 %v5789_v41 }
 0x5b8   : > { %v5804_v60 = vpop.permute.xlu1 %5803  ;;  %v5799_v34 = vpop.permute.xlu0 %5798 }
 0x5b9   : > { %v5806_v3 = vunpack.i.h.bf16 %v5804_v60  ;;  %v5805_v28 = vunpack.i.l.bf16 %v5804_v60  ;;  %v5801_v9 = vunpack.i.h.bf16 %v5799_v34  ;;  %v5800_v46 = vunpack.i.l.bf16 %v5799_v34 }
 0x5bc   : > { %v7181_v26 = vpop.permute.xlu1 %5813  ;;  %v7183_v10 = vpop.permute.xlu0 %5808 }
 0x5bd   : > { %v5816_v61 = vunpack.i.h.bf16 %v7181_v26  ;;  %v5815_v25 = vunpack.i.l.bf16 %v7181_v26  ;;  %v5811_v47 = vunpack.i.h.bf16 %v7183_v10  ;;  %v5810_v36 = vunpack.i.l.bf16 %v7183_v10 }
 0x5c0   : > { %v7185_v40 = vpop.permute.xlu1 %5823  ;;  %v7187_v52 = vpop.permute.xlu0 %5818 }
 0x5c1   : > { %v5826_v50 = vunpack.i.h.bf16 %v7185_v40  ;;  %v5825_v13 = vunpack.i.l.bf16 %v7185_v40  ;;  %v5821_v22 = vunpack.i.h.bf16 %v7187_v52 }
 0x5c4   : > { %v7189_v37 = vpop.permute.xlu1 %5833  ;;  %v7191_v17 = vpop.permute.xlu0 %5828 }
 0x5c8   : > { %v7193_v29 = vpop.permute.xlu1 %5843  ;;  %v7195_v18 = vpop.permute.xlu0 %5838 }
 0x5cc   : > { %v7197_v31 = vpop.permute.xlu0 %5853  ;;  %v7199_v12 = vpop.permute.xlu1 %5848 }
 0x5d0   : > { %v7201_v43 = vpop.permute.xlu0 %5863  ;;  %v7203_v35 = vpop.permute.xlu1 %5858 }
 0x5d4   : > { %v7205_v19 = vpop.permute.xlu0 %5873  ;;  %v7207_v59 = vpop.permute.xlu1 %5868 }
 0x5d8   : > { %v7209_v51 = vpop.permute.xlu0 %5883  ;;  %v7211_v20 = vpop.permute.xlu1 %5878 }
 0x5dc   : > { %v5889_v57 = vpop.permute.xlu0 %5888  ;;  %v5894_v63 = vpop.permute.xlu1 %5893 }
 0x5dd   : > { %v5891_v24 = vunpack.i.h.bf16 %v5889_v57  ;;  %v5890_v38 = vunpack.i.l.bf16 %v5889_v57  ;;  %v5896_v6 = vunpack.i.h.bf16 %v5894_v63  ;;  %v5895_v53 = vunpack.i.l.bf16 %v5894_v63 }
 0x5df   : > { %v2868_v49 = vsel %vm224_vm1, %v5891_v24, %v5791_v54  ;;  %v2866_v14 = vsel %vm224_vm1, %v5790_v15, %v5890_v38  ;;  %v2893_v8 = vsel %vm250_vm2, %v5896_v6, %v5796_v58  ;;  %v2891_v23 = vsel %vm250_vm2, %v5795_v56, %v5895_v53 }
 0x5e0   : > { %v4969_v5 = vpack.c.bf16 %v2893_v8, %v2868_v49  ;;  %v4922_v4 = vpack.c.bf16 %v2891_v23, %v2866_v14  ;;  %v5899_v16 = vpop.permute.xlu0 %5898  ;;  %v5904_v55 = vpop.permute.xlu1 %5903  ;;  %v2867_v33 = vsel %vm224_vm1, %v5890_v38, %v5891_v24  ;;  %v2892_v1 = vsel %vm250_vm2, %v5895_v53, %v5896_v6 }
 0x5e1   : > { %v5901_v45 = vunpack.i.h.bf16 %v5899_v16  ;;  %v5900_v48 = vunpack.i.l.bf16 %v5899_v16  ;;  %v5906_v2 = vunpack.i.h.bf16 %v5904_v55  ;;  %v5905_v42 = vunpack.i.l.bf16 %v5904_v55 }
 0x5e2   : > { %v4920_v62 = vpack.c.bf16 %v2892_v1, %v2867_v33  ;;  %4970 = vmatpush1.bf16.msra.mxu1 %v4969_v5  ;;  %v5835_v24 = vunpack.i.l.bf16 %v7189_v37  ;;  %v5846_v33 = vunpack.i.h.bf16 %v7193_v29 }
 0x5e3   : > { %v2918_v41 = vsel %vm7759_vm5, %v5901_v45, %v5801_v9  ;;  %v2916_v60 = vsel %vm7760_vm3, %v5800_v46, %v5900_v48  ;;  %v2943_v34 = vsel %vm7761_vm7, %v5906_v2, %v5806_v3  ;;  %v2941_v26 = vsel %vm7762_vm8, %v5805_v28, %v5905_v42  ;;  %4971 = vmatprep.subr.bf16.mxu1 %v6271_v0  ;;  %vm7766_vm5 = vmmov %vm7765_vm4 }
 0x5e4   : > { %v4972_v10 = vpack.c.bf16 %v2943_v34, %v2918_v41  ;;  %v4926_v58 = vpack.c.bf16 %v2941_v26, %v2916_v60  ;;  %4921 = vmatprep.subr.bf16.mxu0 %v4920_v62  ;;  %v5909_v56 = vpop.permute.xlu0 %5908  ;;  %v5914_v54 = vpop.permute.xlu1 %5913  ;;  %v2917_v40 = vsel %vm7763_vm9, %v5900_v48, %v5901_v45  ;;  %v2942_v15 = vsel %vm7764_vm6, %v5905_v42, %v5906_v2  ;;  %vm7769_vm8 = vmmov %vm7765_vm4 }
 0x5e5   : > { %4923 = vmatpush1.bf16.msra.mxu0 %v4922_v4  ;;  %v5911_v57 = vunpack.i.h.bf16 %v5909_v56  ;;  %v5910_v9 = vunpack.i.l.bf16 %v5909_v56  ;;  %v5916_v63 = vunpack.i.h.bf16 %v5914_v54  ;;  %v5915_v46 = vunpack.i.l.bf16 %v5914_v54 }
 0x5e6   : > { %v5820_v3 = vunpack.i.l.bf16 %v7187_v52  ;;  %v5836_v28 = vunpack.i.h.bf16 %v7189_v37  ;;  %v4924_v38 = vpack.c.bf16 %v2942_v15, %v2917_v40  ;;  %4973 = vmatpush1.bf16.msra.mxu1 %v4972_v10  ;;  %vm7767_vm3 = vcmask 179200  }
 0x5e7   : > { %v2968_v6 = vsel %vm7765_vm4, %v5911_v57, %v5811_v47  ;;  %v2966_v53 = vsel %vm7766_vm5, %v5810_v36, %v5910_v9  ;;  %v2993_v49 = vsel %vm7767_vm3, %v5916_v63, %v5816_v61  ;;  %vm7768_vm7 = vmmov %vm7767_vm3  ;;  %4974 = vmatprep.subr.bf16.mxu1 %v6271_v0  ;;  %v2967_v4 = vsel %vm7769_vm8, %v5910_v9, %v5911_v57 }
 0x5e8   : > { %v2991_v14 = vsel %vm7768_vm7, %v5815_v25, %v5915_v46  ;;  %v4975_v8 = vpack.c.bf16 %v2993_v49, %v2968_v6  ;;  %4925 = vmatprep.subr.bf16.mxu0 %v4924_v38  ;;  %v5919_v52 = vpop.permute.xlu0 %5918  ;;  %v5924_v5 = vpop.permute.xlu1 %5923  ;;  %vm7770_vm9 = vmmov %vm7767_vm3  ;;  %v5831_v61 = vunpack.i.h.bf16 %v7191_v17  ;;  %v5830_v25 = vunpack.i.l.bf16 %v7191_v17 }
 0x5e9   : > { %v4930_v23 = vpack.c.bf16 %v2991_v14, %v2966_v53  ;;  %v2992_v37 = vsel %vm7770_vm9, %v5915_v46, %v5916_v63  ;;  %4927 = vmatpush1.bf16.msra.mxu0 %v4926_v58  ;;  %v5921_v16 = vunpack.i.h.bf16 %v5919_v52  ;;  %v5920_v47 = vunpack.i.l.bf16 %v5919_v52 }
 0x5ea   : > { %v5926_v55 = vunpack.i.h.bf16 %v5924_v5  ;;  %v5925_v36 = vunpack.i.l.bf16 %v5924_v5  ;;  %v4928_v1 = vpack.c.bf16 %v2992_v37, %v2967_v4  ;;  %4976 = vmatpush1.bf16.msra.mxu1 %v4975_v8  ;;  %vm7771_vm6 = vcmask 171008  }
 0x5eb   : > { %v3018_v45 = vsel %vm7771_vm6, %v5921_v16, %v5821_v22  ;;  %vm7772_vm4 = vmmov %vm7771_vm6  ;;  %vm7773_vm5 = vcmask 162816   ;;  %4977 = vmatprep.subr.bf16.mxu1 %v6271_v0  ;;  %v5840_v54 = vunpack.i.l.bf16 %v7195_v18  ;;  %vm7777_vm9 = vcmask 154624  }
 0x5ec   : > { %v3016_v48 = vsel %vm7772_vm4, %v5820_v3, %v5920_v47  ;;  %v3043_v2 = vsel %vm7773_vm5, %v5926_v55, %v5826_v50  ;;  %vm7774_vm3 = vmmov %vm7773_vm5  ;;  %4929 = vmatprep.subr.bf16.mxu0 %v4928_v1  ;;  %v5929_v60 = vpop.permute.xlu0 %5928  ;;  %v5934_v34 = vpop.permute.xlu1 %5933  ;;  %v5845_v50 = vunpack.i.l.bf16 %v7193_v29 }
 0x5ed   : > { %v3041_v42 = vsel %vm7774_vm3, %v5825_v13, %v5925_v36  ;;  %v4978_v62 = vpack.c.bf16 %v3043_v2, %v3018_v45  ;;  %vm7775_vm7 = vmmov %vm7772_vm4  ;;  %4931 = vmatpush1.bf16.msra.mxu0 %v4930_v23  ;;  %v5931_v10 = vunpack.i.h.bf16 %v5929_v60  ;;  %v5930_v22 = vunpack.i.l.bf16 %v5929_v60 }
 0x5ee   : > { %v4934_v41 = vpack.c.bf16 %v3041_v42, %v3016_v48  ;;  %v3017_v17 = vsel %vm7775_vm7, %v5920_v47, %v5921_v16  ;;  %vm7776_vm8 = vmmov %vm7774_vm3  ;;  %v5936_v58 = vunpack.i.h.bf16 %v5934_v34  ;;  %v5935_v56 = vunpack.i.l.bf16 %v5934_v34 }
 0x5ef   : > { %v3042_v26 = vsel %vm7776_vm8, %v5925_v36, %v5926_v55  ;;  %v5841_v13 = vunpack.i.h.bf16 %v7195_v18  ;;  %4979 = vmatpush1.bf16.msra.mxu1 %v4978_v62  ;;  %v3068_v15 = vsel %vm7777_vm9, %v5931_v10, %v5831_v61  ;;  %vm7778_vm6 = vmmov %vm7777_vm9  ;;  %vm7779_vm4 = vcmask 146432  }
 0x5f0   : > { %v4932_v40 = vpack.c.bf16 %v3042_v26, %v3017_v17  ;;  %v3066_v57 = vsel %vm7778_vm6, %v5830_v25, %v5930_v22  ;;  %v3093_v9 = vsel %vm7779_vm4, %v5936_v58, %v5836_v28  ;;  %vm7780_vm5 = vmmov %vm7779_vm4  ;;  %4980 = vmatprep.subr.bf16.mxu1 %v6271_v0  ;;  %v5939_v29 = vpop.permute.xlu0 %5938  ;;  %v5944_v38 = vpop.permute.xlu1 %5943  ;;  %vm7783_vm8 = vcmask 15360  }
 0x5f1   : > { %v3091_v63 = vsel %vm7780_vm5, %v5835_v24, %v5935_v56  ;;  %v4981_v46 = vpack.c.bf16 %v3093_v9, %v3068_v15  ;;  %vm7781_vm3 = vmmov %vm7778_vm6  ;;  %v5941_v53 = vunpack.i.h.bf16 %v5939_v29  ;;  %v5940_v49 = vunpack.i.l.bf16 %v5939_v29 }
 0x5f2   : > { %v4938_v3 = vpack.c.bf16 %v3091_v63, %v3066_v57  ;;  %4933 = vmatprep.subr.bf16.mxu0 %v4932_v40  ;;  %v3067_v6 = vsel %vm7781_vm3, %v5930_v22, %v5931_v10  ;;  %vm7782_vm7 = vmmov %vm7779_vm4  ;;  %v5946_v14 = vunpack.i.h.bf16 %v5944_v38  ;;  %v5945_v8 = vunpack.i.l.bf16 %v5944_v38 }
 0x5f3   : > { %v3092_v18 = vsel %vm7782_vm7, %v5935_v56, %v5936_v58  ;;  %4935 = vmatpush1.bf16.msra.mxu0 %v4934_v41  ;;  %4982 = vmatpush1.bf16.msra.mxu1 %v4981_v46  ;;  %v3118_v28 = vsel %vm7783_vm8, %v5941_v53, %v5841_v13  ;;  %vm7784_vm9 = vmmov %vm7783_vm8  ;;  %vm7785_vm6 = vcmask 7168   ;;  %v5856_v25 = vunpack.i.h.bf16 %v7197_v31 }
 0x5f4   : > { %v4936_v23 = vpack.c.bf16 %v3092_v18, %v3067_v6  ;;  %v3116_v24 = vsel %vm7784_vm9, %v5840_v54, %v5940_v49  ;;  %v3143_v52 = vsel %vm7785_vm6, %v5946_v14, %v5846_v33  ;;  %vm7786_vm4 = vmmov %vm7785_vm6  ;;  %4983 = vmatprep.subr.bf16.mxu1 %v6271_v0  ;;  %v7268_v37 = vpop.permute.xlu0 %5953  ;;  %v7270_v16 = vpop.permute.xlu1 %5948  ;;  %v5855_v33 = vunpack.i.l.bf16 %v7197_v31 }
 0x5f5   : > { %v3141_v5 = vsel %vm7786_vm4, %v5845_v50, %v5945_v8  ;;  %v4984_v4 = vpack.c.bf16 %v3143_v52, %v3118_v28  ;;  %vm7787_vm5 = vmmov %vm7783_vm8  ;;  %v5851_v48 = vunpack.i.h.bf16 %v7199_v12  ;;  %v5850_v2 = vunpack.i.l.bf16 %v7199_v12 }
 0x5f6   : > { %4937 = vmatprep.subr.bf16.mxu0 %v4936_v23  ;;  %v3117_v47 = vsel %vm7787_vm5, %v5940_v49, %v5941_v53  ;;  %vm7788_vm3 = vmmov %vm7786_vm4  ;;  %v4942_v36 = vpack.c.bf16 %v3141_v5, %v3116_v24  ;;  %v5866_v41 = vunpack.i.h.bf16 %v7201_v43  ;;  %v5865_v60 = vunpack.i.l.bf16 %v7201_v43 }
 0x5f7   : > { %v3142_v55 = vsel %vm7788_vm3, %v5945_v8, %v5946_v14  ;;  %4939 = vmatpush1.bf16.msra.mxu0 %v4938_v3  ;;  %4985 = vmatpush1.bf16.msra.mxu1 %v4984_v4  ;;  %v5861_v34 = vunpack.i.h.bf16 %v7203_v35  ;;  %v5860_v17 = vunpack.i.l.bf16 %v7203_v35  ;;  %v5876_v31 = vunpack.i.h.bf16 %v7205_v19 }
 0x5f8   : > { %v4940_v61 = vpack.c.bf16 %v3142_v55, %v3117_v47  ;;  %4986 = vmatprep.subr.bf16.mxu1 %v6271_v0  ;;  %v5959_v1 = vpop.permute.xlu0 %5958  ;;  %v5969_v45 = vpop.permute.xlu1 %5968  ;;  %vm7789_vm7 = vcmask 1039360   ;;  %v5875_v12 = vunpack.i.l.bf16 %v7205_v19  ;;  %v5871_v54 = vunpack.i.h.bf16 %v7207_v59 }
 0x5f9   : > { %v5961_v42 = vunpack.i.h.bf16 %v5959_v1  ;;  %v5960_v62 = vunpack.i.l.bf16 %v5959_v1  ;;  %vm7790_vm8 = vmmov %vm7789_vm7  ;;  %v5971_v22 = vunpack.i.h.bf16 %v5969_v45  ;;  %v5970_v56 = vunpack.i.l.bf16 %v5969_v45 }
 0x5fa   : > { %4941 = vmatprep.subr.bf16.mxu0 %v4940_v61  ;;  %vm7791_vm9 = vmmov %vm7789_vm7  ;;  %v5870_v57 = vunpack.i.l.bf16 %v7207_v59  ;;  %v5886_v9 = vunpack.i.h.bf16 %v7209_v51  ;;  %v5885_v63 = vunpack.i.l.bf16 %v7209_v51  ;;  %vm7792_vm6 = vcmask 900096  }
 0x5fb   : > { %4943 = vmatpush1.bf16.msra.mxu0 %v4942_v36  ;;  %v3172_v26 = vsel %vm7789_vm7, %v5850_v2, %v5960_v62  ;;  %v3174_v10 = vsel %vm7790_vm8, %v5961_v42, %v5851_v48  ;;  %v3173_v43 = vsel %vm7791_vm9, %v5960_v62, %v5961_v42  ;;  %vm7793_vm4 = vcmask 1031168   ;;  %vm7795_vm3 = vmmov %vm7792_vm6 }
 0x5fc   : > { %v4987_v58 = vpack.c.bf16 %v3174_v10, %v7100_v11  ;;  %v5964_v50 = vpop.permute.xlu0 %5963  ;;  %v5979_v13 = vpop.permute.xlu1 %5978  ;;  %v4946_v35 = vpack.c.bf16 %v3172_v26, %v7115_v32  ;;  %v4944_v46 = vpack.c.bf16 %v3173_v43, %v7131_v7  ;;  %v3224_v11 = vsel %vm7792_vm6, %v5971_v22, %v5861_v34  ;;  %vm7794_vm5 = vmmov %vm7793_vm4 }
 0x5fd   : > { %v5966_v40 = vunpack.i.h.bf16 %v5964_v50  ;;  %v5965_v15 = vunpack.i.l.bf16 %v5964_v50  ;;  %v5981_v38 = vunpack.i.h.bf16 %v5979_v13  ;;  %v3222_v32 = vsel %vm7795_vm3, %v5860_v17, %v5970_v56  ;;  %vm7796_vm7 = vmmov %vm7793_vm4 }
 0x5fe   : > { %4988 = vmatpush1.bf16.msra.mxu1 %v4987_v58  ;;  %v5980_v59 = vunpack.i.l.bf16 %v5979_v13  ;;  %4945 = vmatprep.subr.bf16.mxu0 %v4944_v46  ;;  %vm7797_vm8 = vmmov %vm7795_vm3  ;;  %v5881_v28 = vunpack.i.h.bf16 %v7211_v20  ;;  %v5880_v24 = vunpack.i.l.bf16 %v7211_v20  ;;  %v5956_v52 = vunpack.i.h.bf16 %v7268_v37 }
 0x5ff   : > { %v3197_v3 = vsel %vm7793_vm4, %v5855_v33, %v5965_v15  ;;  %v3199_v29 = vsel %vm7794_vm5, %v5966_v40, %v5856_v25  ;;  %4989 = vmatprep.subr.bf16.mxu1 %v6271_v0  ;;  %v3198_v49 = vsel %vm7796_vm7, %v5965_v15, %v5966_v40  ;;  %4947 = vmatpush1.bf16.msra.mxu0 %v4946_v35  ;;  %vm7798_vm9 = vcmask 883712  }
 0x600   : > { %v4990_v6 = vpack.c.bf16 %v3224_v11, %v3199_v29  ;;  %v5974_v18 = vpop.permute.xlu0 %5973  ;;  %v5989_v53 = vpop.permute.xlu1 %5988  ;;  %v4950_v7 = vpack.c.bf16 %v3222_v32, %v3197_v3  ;;  %v3223_v23 = vsel %vm7797_vm8, %v5970_v56, %v5971_v22  ;;  %v3274_v4 = vsel %vm7798_vm9, %v5981_v38, %v5871_v54  ;;  %vm7801_vm5 = vmmov %vm7798_vm9 }
 0x601   : > { %v5976_v14 = vunpack.i.h.bf16 %v5974_v18  ;;  %v5975_v8 = vunpack.i.l.bf16 %v5974_v18  ;;  %v4948_v5 = vpack.c.bf16 %v3223_v23, %v3198_v49  ;;  %vm7799_vm6 = vcmask 891904   ;;  %vm7803_vm7 = vmmov %vm7801_vm5 }
 0x602   : > { %4991 = vmatpush1.bf16.msra.mxu1 %v4990_v6  ;;  %vm7800_vm4 = vmmov %vm7799_vm6  ;;  %v5991_v36 = vunpack.i.h.bf16 %v5989_v53  ;;  %v3272_v61 = vsel %vm7801_vm5, %v5870_v57, %v5980_v59  ;;  %v5990_v33 = vunpack.i.l.bf16 %v5989_v53  ;;  %v3273_v62 = vsel %vm7803_vm7, %v5980_v59, %v5981_v38 }
 0x603   : > { %v3247_v47 = vsel %vm7799_vm6, %v5865_v60, %v5975_v8  ;;  %v3249_v55 = vsel %vm7800_vm4, %v5976_v14, %v5866_v41  ;;  %4992 = vmatprep.subr.bf16.mxu1 %v6271_v0  ;;  %4949 = vmatprep.subr.bf16.mxu0 %v4948_v5  ;;  %vm7802_vm3 = vmmov %vm7800_vm4  ;;  %v5955_v41 = vunpack.i.l.bf16 %v7268_v37  ;;  %v5951_v26 = vunpack.i.h.bf16 %v7270_v16 }
 0x604   : > { %v4993_v25 = vpack.c.bf16 %v3274_v4, %v3249_v55  ;;  %v5984_v1 = vpop.permute.xlu0 %5983  ;;  %v5999_v20 = vpop.permute.xlu1 %5998  ;;  %v3248_v45 = vsel %vm7802_vm3, %v5975_v8, %v5976_v14  ;;  %v4954_v48 = vpack.c.bf16 %v3272_v61, %v3247_v47  ;;  %4951 = vmatpush1.bf16.msra.mxu0 %v4950_v7  ;;  %v3324_v10 = vsel %vm698_vm14, %v5991_v36, %v5881_v28 }
 0x605   : > { %v5986_v2 = vunpack.i.h.bf16 %v5984_v1  ;;  %v5985_v42 = vunpack.i.l.bf16 %v5984_v1  ;;  %v6001_v60 = vunpack.i.h.bf16 %v5999_v20  ;;  %v6000_v34 = vunpack.i.l.bf16 %v5999_v20 }
 0x606   : > { %v4952_v17 = vpack.c.bf16 %v3273_v62, %v3248_v45  ;;  %4994 = vmatpush1.bf16.msra.mxu1 %v4993_v25  ;;  %v5950_v56 = vunpack.i.l.bf16 %v7270_v16  ;;  %v3322_v50 = vsel %vm698_vm14, %v5880_v24, %v5990_v33  ;;  %v3323_v19 = vsel %vm698_vm14, %v5990_v33, %v5991_v36  ;;  %v4653_v25 = vld [vmem:[%s7612_s1 + $0x30] sm:$0xff]  ;;  %v3694_v45 = vld [vmem:[%s7614_s3] sm:$0x7] }
 0x607   : > { %v3297_v22 = vsel %vm672_vm15, %v5875_v12, %v5985_v42  ;;  %v3299_v58 = vsel %vm672_vm15, %v5986_v2, %v5876_v31  ;;  %4995 = vmatprep.subr.bf16.mxu1 %v6271_v0  ;;  %v3298_v35 = vsel %vm672_vm15, %v5985_v42, %v5986_v2  ;;  %v3374_v57 = vsel %vm750_vm13, %v6001_v60, %v5951_v26 }
 0x608   : > { %v4996_v13 = vpack.c.bf16 %v3324_v10, %v3299_v58  ;;  %4953 = vmatprep.subr.bf16.mxu0 %v4952_v17  ;;  %v5994_v43 = vpop.permute.xlu0 %5993  ;;  %v6009_v54 = vpop.permute.xlu1 %6008  ;;  %v4958_v40 = vpack.c.bf16 %v3322_v50, %v3297_v22  ;;  %v3372_v31 = vsel %vm750_vm13, %v5950_v56, %v6000_v34  ;;  %v4956_v46 = vpack.c.bf16 %v3323_v19, %v3298_v35  ;;  %v6262_v22 = vld [vmem:[%s6337_s20] sm:$0xff]  ;;  %s7807_s20 = smov 21  }
 0x609   : > { %4955 = vmatpush1.bf16.msra.mxu0 %v4954_v48  ;;  %v5996_v15 = vunpack.i.h.bf16 %v5994_v43  ;;  %v5995_v12 = vunpack.i.l.bf16 %v5994_v43  ;;  %v3373_v16 = vsel %vm750_vm13, %v6000_v34, %v6001_v60  ;;  %v6011_v29 = vunpack.i.h.bf16 %v6009_v54 }
 0x60a   : > { %4997 = vmatpush1.bf16.msra.mxu1 %v4996_v13  ;;  %v6010_v59 = vunpack.i.l.bf16 %v6009_v54  ;;  %4957 = vmatprep.subr.bf16.mxu0 %v4956_v46  ;;  %vm7804_vm8 = vcmask 703488   ;;  %v3699_v50 = vrot.slane %v3694_v45, %v6548_v39 }
 0x60b   : > { %v3347_v11 = vsel %vm724_vm12, %v5885_v63, %v5995_v12  ;;  %v3349_v3 = vsel %vm724_vm12, %v5996_v15, %v5886_v9  ;;  %4998 = vmatprep.subr.bf16.mxu1 %v6271_v0  ;;  %v3348_v38 = vsel %vm724_vm12, %v5995_v12, %v5996_v15  ;;  %vm7805_vm9 = vmmov %vm7804_vm8 }
 0x60c   : > { %v4962_v32 = vpack.c.bf16 %v3372_v31, %v3347_v11  ;;  %v4999_v6 = vpack.c.bf16 %v3374_v57, %v3349_v3  ;;  %v6004_v18 = vpop.permute.xlu0 %6003  ;;  %v6014_v53 = vpop.permute.xlu1 %6013  ;;  %v4960_v49 = vpack.c.bf16 %v3373_v16, %v3348_v38  ;;  %v3423_v55 = vsel %vm802_vm10, %v6010_v59, %v6011_v29  ;;  %vm7806_vm6 = vmmov %vm7804_vm8  ;;  %v4659_v31 = vld [vmem:[%s7612_s1 + $0x48] sm:$0xff]  ;;  %v4660_v57 = vld [vmem:[%s7613_s2 + $0x20] sm:$0xff] }
 0x60d   : > { %4959 = vmatpush1.bf16.msra.mxu0 %v4958_v40  ;;  %v6006_v7 = vunpack.i.h.bf16 %v6004_v18  ;;  %v6005_v14 = vunpack.i.l.bf16 %v6004_v18  ;;  %v6016_v63 = vunpack.i.h.bf16 %v6014_v53  ;;  %v6015_v8 = vunpack.i.l.bf16 %v6014_v53 }
 0x60e   : > { %4961 = vmatprep.subr.bf16.mxu0 %v4960_v49  ;;  %5000 = vmatpush1.bf16.msra.mxu1 %v4999_v6  ;;  %v3703_v40 = vrot.slane %v3694_v45, %v6565_v44 }
 0x60f   : > { %v3397_v51 = vsel %vm776_vm11, %v5955_v41, %v6005_v14  ;;  %v3399_v9 = vsel %vm776_vm11, %v6006_v7, %v5956_v52  ;;  %v3422_v23 = vsel %vm802_vm10, %v6015_v8, %v6010_v59  ;;  %v3424_v28 = vsel %vm802_vm10, %v6011_v29, %v6016_v63  ;;  %5001 = vmatprep.subr.bf16.mxu1 %v6271_v0 }
 0x610   : > { %v5002_v24 = vpack.c.bf16 %v3424_v28, %v3399_v9  ;;  %v3442_v5 = vpop.permute.xlu0 %3441  ;;  %v3444_v4 = vpop.permute.xlu1 %3443  ;;  %v3398_v47 = vsel %vm776_vm11, %v6005_v14, %v6006_v7  ;;  %v4966_v36 = vpack.c.bf16 %v3422_v23, %v3397_v51  ;;  %v3707_v41 = vrot.slane %v3694_v45, %v6532_v27 }
 0x611   : > { %4963 = vmatpush1.bf16.msra.mxu0 %v4962_v32  ;;  %v4964_v61 = vpack.c.bf16 %v3423_v55, %v3398_v47  ;;  %v3448_v1 = vsel %vm7805_vm9, %v3442_v5, %v3444_v4 }
 0x612   : > { %5003 = vmatpush1.bf16.msra.mxu1 %v5002_v24 }
 0x613   : > { %4965 = vmatprep.subr.bf16.mxu0 %v4964_v61  ;;  %3663 = vmatprep.subr.mxu1 %v6297_v21 }
 0x614   : > { %v3440_v37 = vpop.permute.xlu0 %3439  ;;  %v3446_v52 = vpop.permute.xlu1 %3445 }
 0x615   : > { %4967 = vmatpush1.bf16.msra.mxu0 %v4966_v36  ;;  %v3449_v33 = vsel %vm7804_vm8, %v3444_v4, %v3446_v52  ;;  %v3447_v20 = vsel %vm7806_vm6, %v3440_v37, %v3442_v5  ;;  %vm7814_vm8 = vcmask 318464   ;;  %vm7818_vm6 = vcmask 310272  }
 0x616   : > { %3592 = vmatprep.subr.mxu0 %v3448_v1  ;;  %3664 = vmatpush1.msra.mxu1 %v3449_v33 }
 0x617   : > { %3680 = vmatmul.mubr.f32.vlgmr.msra.gmra.mrb[6].mxu1 %v4653_v25  ;;  %5052 = vmatprep.subr.bf16.mxu1 %v6271_v0 }
 0x618   : > { %4662 = vmatprep.mubr.msk.f32.mxu1 %vm921_vm0, %v4659_v31 }
 0x619   : > { %3593 = vmatpush1.msra.mxu0 %v3447_v20 }
 0x61a   : > { %3609 = vmatmul.mubr.f32.vlgmr.msra.gmra.mrb[6].mxu0 %v4653_v25 }
 0x61b   : > { %4661 = vmatprep.mubr.msk.f32.mxu0 %vm921_vm0, %v4659_v31  ;;  %vm7812_vm0 = vcmask 326656  }
 0x61c   : > { %vm7813_vm7 = vmmov %vm7812_vm0 }
 0x625   : > { %v3539_v48 = vpop.permute.xlu0 %3538 }
 0x6ea   : > { %v3681_v2 = vpop.f32.mrb[6].mxu1 }
 0x6eb   : > { %v3682_v42 = vadd.f32 %v3681_v2, %v3539_v48  ;;  %v3683_v62 = vpop.f32.mrb[7].mxu1 }
 0x6ed   : > { %vm3687_vm4 = vcmp.gt.f32.partialorder %v3682_v42, 0.0  ;;  %v3690_v60 = vmul.f32 0.01, %v3682_v42  ;;  %v3610_v34 = vpop.f32.mrb[6].mxu0 }
 0x6ee   : > { %v3612_v17 = vpop.f32.mrb[7].mxu0  ;;  %v3611_v56 = vadd.f32 %v3610_v34, %v3539_v48 }
 0x6ef   : > { %v3693_v26 = vsel %vm3687_vm4, %v3682_v42, %v3690_v60  ;;  %v3613_v35 = vadd.f32 %v3612_v17, %v3539_v48  ;;  %vm7819_vm4 = vmmov %vm7818_vm6 }
 0x6f0   : > { %v7356_v10 = vmul.f32 %v3707_v41, %v3693_v26  ;;  %v3688_v27 = vmul.f32 0.01, %v3611_v56  ;;  %vm3685_vm5 = vcmp.gt.f32.partialorder %v3611_v56, 0.0 }
 0x6f1   : > { %v3689_v39 = vmul.f32 0.01, %v3613_v35  ;;  %vm3686_vm3 = vcmp.gt.f32.partialorder %v3613_v35, 0.0 }
 0x6f2   : > { %v6022_v58 = vpack.i.bf16 %v7356_v10, %v6262_v22  ;;  %v3691_v13 = vsel %vm3685_vm5, %v3611_v56, %v3688_v27  ;;  %vm7820_vm5 = vcmask 179200  }
 0x6f3   : > { %v7371_v43 = vmul.f32 %v3699_v50, %v3691_v13  ;;  %v3692_v15 = vsel %vm3686_vm3, %v3613_v35, %v3689_v39  ;;  %vm7821_vm3 = vmmov %vm7820_vm5 }
 0x6f4   : > { %6023 = vrot.lane.b32.xlu0 %v6022_v58, %s6273_s22  ;;  %6018 = vrot.lane.b32.xlu1 %v6022_v58, %s6272_s21  ;;  %v7386_v12 = vmul.f32 %v3703_v40, %v3692_v15 }
 0x6f5   : > { %v6082_v54 = vpack.i.bf16 %v7120_v30, %v7371_v43 }
 0x6f6   : > { %v6127_v19 = vpack.i.bf16 %v7386_v12, %v7371_v43  ;;  %v6192_v44 = vpack.i.bf16 %v7356_v10, %v7386_v12 }
 0x6f8   : > { %6033 = vrot.lane.b32.xlu0 %v6022_v58, %s6275_s24  ;;  %6028 = vrot.lane.b32.xlu1 %v6022_v58, %s7754_s18 }
 0x6fc   : > { %6043 = vrot.lane.b32.xlu0 %v6022_v58, %s6277_s26  ;;  %6038 = vrot.lane.b32.xlu1 %v6022_v58, %s6276_s25 }
 0x700   : > { %6053 = vrot.lane.b32.xlu0 %v6022_v58, %s6279_s28  ;;  %6048 = vrot.lane.b32.xlu1 %v6022_v58, %s7807_s20 }
 0x704   : > { %6063 = vrot.lane.b32.xlu0 %v6022_v58, %s7808_s9  ;;  %6058 = vrot.lane.b32.xlu1 %v6022_v58, %s7809_s13 }
 0x708   : > { %6073 = vrot.lane.b32.xlu0 %v6022_v58, %s7755_s19  ;;  %6068 = vrot.lane.b32.xlu1 %v6022_v58, %s7756_s5 }
 0x70c   : > { %6083 = vrot.lane.b32.xlu1 %v6082_v54, %s7702_s17  ;;  %6078 = vrot.lane.b32.xlu0 %v6082_v54, %s7703_s8 }
 0x710   : > { %6093 = vrot.lane.b32.xlu1 %v6082_v54, %s7704_s10  ;;  %6088 = vrot.lane.b32.xlu0 %v6082_v54, %s7810_s27 }
 0x714   : > { %6103 = vrot.lane.b32.xlu1 %v6082_v54, %s7668_s11  ;;  %6098 = vrot.lane.b32.xlu0 %v6082_v54, %s7669_s14 }
 0x718   : > { %6113 = vrot.lane.b32.xlu1 %v6082_v54, %s7670_s12  ;;  %6108 = vrot.lane.b32.xlu0 %v6082_v54, %s7811_s30 }
 0x71c   : > { %6123 = vrot.lane.b32.xlu1 %v6082_v54, %s7757_s6  ;;  %6118 = vrot.lane.b32.xlu0 %v6082_v54, %s7705_s23 }
 0x720   : > { %6128 = vrot.lane.b32.xlu1 %v6127_v19, %s6272_s21  ;;  %6133 = vrot.lane.b32.xlu0 %v6127_v19, %s6273_s22 }
 0x724   : > { %6138 = vrot.lane.b32.xlu1 %v6127_v19, %s7754_s18  ;;  %6143 = vrot.lane.b32.xlu0 %v6127_v19, %s6275_s24 }
 0x728   : > { %6148 = vrot.lane.b32.xlu1 %v6127_v19, %s6276_s25  ;;  %6153 = vrot.lane.b32.xlu0 %v6127_v19, %s6277_s26 }
 0x72c   : > { %6158 = vrot.lane.b32.xlu1 %v6127_v19, %s7807_s20  ;;  %6163 = vrot.lane.b32.xlu0 %v6127_v19, %s6279_s28  ;;  %s5089_s28 = smul.u32 24, %s7861_s16 }
 0x730   : > { %6168 = vrot.lane.b32.xlu1 %v6127_v19, %s7809_s13  ;;  %6173 = vrot.lane.b32.xlu0 %v6127_v19, %s7808_s9 }
 0x734   : > { %6178 = vrot.lane.b32.xlu1 %v6127_v19, %s7756_s5  ;;  %6183 = vrot.lane.b32.xlu0 %v6127_v19, %s7755_s19 }
 0x738   : > { %6193 = vrot.lane.b32.xlu1 %v6192_v44, %s7703_s8  ;;  %6188 = vrot.lane.b32.xlu0 %v6082_v54, %s7758_s29 }
 0x73c   : > { %6198 = vrot.lane.b32.xlu1 %v6192_v44, %s7702_s17  ;;  %6203 = vrot.lane.b32.xlu0 %v6192_v44, %s7810_s27 }
 0x740   : > { %6208 = vrot.lane.b32.xlu1 %v6192_v44, %s7704_s10  ;;  %6213 = vrot.lane.b32.xlu0 %v6192_v44, %s7669_s14 }
 0x744   : > { %6218 = vrot.lane.b32.xlu1 %v6192_v44, %s7668_s11  ;;  %6223 = vrot.lane.b32.xlu0 %v6192_v44, %s7811_s30 }
 0x748   : > { %6228 = vrot.lane.b32.xlu1 %v6192_v44, %s7670_s12  ;;  %6233 = vrot.lane.b32.xlu0 %v6192_v44, %s7705_s23  ;;  %s197_s12 = scalar_lea.vmem %s7615_s4, %s5089_s28 }
 0x74c   : > { %6238 = vrot.lane.b32.xlu1 %v6192_v44, %s7757_s6  ;;  %6243 = vrot.lane.b32.xlu0 %v6192_v44, %s7758_s29 }
 0x750   : > { %4314 = vrot.lane.b32.xlu1 %v7386_v12, %s7671_s7  ;;  %4316 = vrot.lane.b32.xlu0 %v7356_v10, %s7671_s7 }
 0x754   : > { %4312 = vrot.lane.b32.xlu1 %v7371_v43, %s7671_s7  ;;  %4318 = vrot.lane.b32.xlu0 %v7120_v30, %s7671_s7 }
 0x758   : > { %4411 = vperm.xlu1 %5786, %v4660_v57  }
 0x766   : > { %v6024_v46 = vpop.permute.xlu0 %6023  ;;  %v6019_v16 = vpop.permute.xlu1 %6018 }
 0x767   : > { %v6026_v5 = vunpack.i.h.bf16 %v6024_v46  ;;  %v6025_v4 = vunpack.i.l.bf16 %v6024_v46  ;;  %v6021_v47 = vunpack.i.h.bf16 %v6019_v16  ;;  %v6020_v55 = vunpack.i.l.bf16 %v6019_v16 }
 0x76a   : > { %v6034_v11 = vpop.permute.xlu0 %6033  ;;  %v6029_v3 = vpop.permute.xlu1 %6028 }
 0x76b   : > { %v6036_v36 = vunpack.i.h.bf16 %v6034_v11  ;;  %v6035_v61 = vunpack.i.l.bf16 %v6034_v11  ;;  %v6031_v37 = vunpack.i.h.bf16 %v6029_v3  ;;  %v6030_v52 = vunpack.i.l.bf16 %v6029_v3 }
 0x76e   : > { %v7434_v29 = vpop.permute.xlu0 %6043  ;;  %v7436_v38 = vpop.permute.xlu1 %6038 }
 0x76f   : > { %v6046_v2 = vunpack.i.h.bf16 %v7434_v29  ;;  %v6045_v42 = vunpack.i.l.bf16 %v7434_v29  ;;  %v6041_v62 = vunpack.i.h.bf16 %v7436_v38  ;;  %v6040_v41 = vunpack.i.l.bf16 %v7436_v38 }
 0x772   : > { %v7438_v32 = vpop.permute.xlu0 %6053  ;;  %v7440_v6 = vpop.permute.xlu1 %6048 }
 0x773   : > { %v6056_v15 = vunpack.i.h.bf16 %v7438_v32  ;;  %v6055_v19 = vunpack.i.l.bf16 %v7438_v32  ;;  %v6051_v44 = vunpack.i.h.bf16 %v7440_v6 }
 0x776   : > { %v7442_v59 = vpop.permute.xlu0 %6063  ;;  %v7444_v30 = vpop.permute.xlu1 %6058 }
 0x77a   : > { %v7446_v18 = vpop.permute.xlu0 %6073  ;;  %v7448_v53 = vpop.permute.xlu1 %6068 }
 0x77e   : > { %v7450_v49 = vpop.permute.xlu1 %6083  ;;  %v7452_v7 = vpop.permute.xlu0 %6078 }
 0x782   : > { %v7454_v14 = vpop.permute.xlu1 %6093  ;;  %v7456_v63 = vpop.permute.xlu0 %6088 }
 0x786   : > { %v7458_v8 = vpop.permute.xlu1 %6103  ;;  %v7460_v51 = vpop.permute.xlu0 %6098 }
 0x78a   : > { %v7462_v9 = vpop.permute.xlu1 %6113  ;;  %v7464_v23 = vpop.permute.xlu0 %6108 }
 0x78e   : > { %v7466_v28 = vpop.permute.xlu1 %6123  ;;  %v7468_v24 = vpop.permute.xlu0 %6118 }
 0x792   : > { %v6129_v25 = vpop.permute.xlu1 %6128  ;;  %v6134_v33 = vpop.permute.xlu0 %6133 }
 0x793   : > { %v6131_v1 = vunpack.i.h.bf16 %v6129_v25  ;;  %v6130_v20 = vunpack.i.l.bf16 %v6129_v25  ;;  %v6136_v45 = vunpack.i.h.bf16 %v6134_v33  ;;  %v6135_v48 = vunpack.i.l.bf16 %v6134_v33 }
 0x794   : > { %v6065_v25 = vunpack.i.l.bf16 %v7442_v59 }
 0x795   : > { %v3741_v60 = vsel %vm224_vm1, %v6131_v1, %v6021_v47  ;;  %v3739_v34 = vsel %vm224_vm1, %v6020_v55, %v6130_v20  ;;  %v3766_v17 = vsel %vm250_vm2, %v6136_v45, %v6026_v5  ;;  %v3764_v26 = vsel %vm250_vm2, %v6025_v4, %v6135_v48 }
 0x796   : > { %v5053_v22 = vpack.c.bf16 %v3766_v17, %v3741_v60  ;;  %v5006_v58 = vpack.c.bf16 %v3764_v26, %v3739_v34  ;;  %v6139_v56 = vpop.permute.xlu1 %6138  ;;  %v6144_v27 = vpop.permute.xlu0 %6143  ;;  %v3740_v50 = vsel %vm224_vm1, %v6130_v20, %v6131_v1  ;;  %v3765_v13 = vsel %vm250_vm2, %v6135_v48, %v6136_v45  ;;  %vm7815_vm1 = vmmov %vm7814_vm8 }
 0x797   : > { %v6141_v54 = vunpack.i.h.bf16 %v6139_v56  ;;  %v6140_v35 = vunpack.i.l.bf16 %v6139_v56  ;;  %v6146_v39 = vunpack.i.h.bf16 %v6144_v27  ;;  %v6145_v40 = vunpack.i.l.bf16 %v6144_v27  ;;  %vm7816_vm2 = vmmov %vm7812_vm0 }
 0x798   : > { %v5004_v31 = vpack.c.bf16 %v3765_v13, %v3740_v50  ;;  %5054 = vmatpush1.bf16.msra.mxu1 %v5053_v22  ;;  %vm7817_vm9 = vmmov %vm7815_vm1  ;;  %v6076_v56 = vunpack.i.h.bf16 %v7446_v18 }
 0x799   : > { %v3791_v57 = vsel %vm7812_vm0, %v6141_v54, %v6031_v37  ;;  %v3789_v46 = vsel %vm7813_vm7, %v6030_v52, %v6140_v35  ;;  %v3816_v16 = vsel %vm7814_vm8, %v6146_v39, %v6036_v36  ;;  %v3814_v11 = vsel %vm7815_vm1, %v6035_v61, %v6145_v40  ;;  %5055 = vmatprep.subr.bf16.mxu1 %v6271_v0  ;;  %vm7822_vm0 = vmmov %vm7819_vm4 }
 0x79a   : > { %v5056_v3 = vpack.c.bf16 %v3816_v16, %v3791_v57  ;;  %v5010_v29 = vpack.c.bf16 %v3814_v11, %v3789_v46  ;;  %5005 = vmatprep.subr.bf16.mxu0 %v5004_v31  ;;  %v6149_v38 = vpop.permute.xlu1 %6148  ;;  %v6154_v5 = vpop.permute.xlu0 %6153  ;;  %v3790_v32 = vsel %vm7816_vm2, %v6140_v35, %v6141_v54  ;;  %v3815_v4 = vsel %vm7817_vm9, %v6145_v40, %v6146_v39  ;;  %vm7823_vm7 = vmmov %vm7821_vm3 }
 0x79b   : > { %5007 = vmatpush1.bf16.msra.mxu0 %v5006_v58  ;;  %v6151_v47 = vunpack.i.h.bf16 %v6149_v38  ;;  %v6150_v55 = vunpack.i.l.bf16 %v6149_v38  ;;  %v6156_v37 = vunpack.i.h.bf16 %v6154_v5  ;;  %v6155_v52 = vunpack.i.l.bf16 %v6154_v5 }
 0x79c   : > { %v6050_v36 = vunpack.i.l.bf16 %v7440_v6  ;;  %v6066_v61 = vunpack.i.h.bf16 %v7442_v59  ;;  %v5008_v33 = vpack.c.bf16 %v3815_v4, %v3790_v32  ;;  %5057 = vmatpush1.bf16.msra.mxu1 %v5056_v3  ;;  %vm7824_vm8 = vcmask 171008  }
 0x79d   : > { %v3841_v1 = vsel %vm7818_vm6, %v6151_v47, %v6041_v62  ;;  %v3839_v20 = vsel %vm7819_vm4, %v6040_v41, %v6150_v55  ;;  %v3866_v45 = vsel %vm7820_vm5, %v6156_v37, %v6046_v2  ;;  %v3864_v48 = vsel %vm7821_vm3, %v6045_v42, %v6155_v52  ;;  %5058 = vmatprep.subr.bf16.mxu1 %v6271_v0  ;;  %vm7825_vm1 = vmmov %vm7824_vm8 }
 0x79e   : > { %v5059_v60 = vpack.c.bf16 %v3866_v45, %v3841_v1  ;;  %v5014_v34 = vpack.c.bf16 %v3864_v48, %v3839_v20  ;;  %5009 = vmatprep.subr.bf16.mxu0 %v5008_v33  ;;  %v6159_v6 = vpop.permute.xlu1 %6158  ;;  %v6164_v17 = vpop.permute.xlu0 %6163  ;;  %v3840_v26 = vsel %vm7822_vm0, %v6150_v55, %v6151_v47  ;;  %v3865_v59 = vsel %vm7823_vm7, %v6155_v52, %v6156_v37  ;;  %vm7828_vm6 = vmmov %vm7825_vm1 }
 0x79f   : > { %5011 = vmatpush1.bf16.msra.mxu0 %v5010_v29  ;;  %v6161_v22 = vunpack.i.h.bf16 %v6159_v6  ;;  %v6160_v62 = vunpack.i.l.bf16 %v6159_v6  ;;  %v6166_v58 = vunpack.i.h.bf16 %v6164_v17  ;;  %v6165_v41 = vunpack.i.l.bf16 %v6164_v17 }
 0x7a0   : > { %v6061_v2 = vunpack.i.h.bf16 %v7444_v30  ;;  %v6060_v42 = vunpack.i.l.bf16 %v7444_v30  ;;  %v5012_v27 = vpack.c.bf16 %v3865_v59, %v3840_v26  ;;  %5060 = vmatpush1.bf16.msra.mxu1 %v5059_v60  ;;  %vm7826_vm2 = vcmask 162816  }
 0x7a1   : > { %v3891_v50 = vsel %vm7824_vm8, %v6161_v22, %v6051_v44  ;;  %v3889_v13 = vsel %vm7825_vm1, %v6050_v36, %v6160_v62  ;;  %v3916_v54 = vsel %vm7826_vm2, %v6166_v58, %v6056_v15  ;;  %vm7827_vm9 = vmmov %vm7826_vm2  ;;  %5061 = vmatprep.subr.bf16.mxu1 %v6271_v0  ;;  %v3890_v30 = vsel %vm7828_vm6, %v6160_v62, %v6161_v22 }
 0x7a2   : > { %v3914_v35 = vsel %vm7827_vm9, %v6055_v19, %v6165_v41  ;;  %v5062_v39 = vpack.c.bf16 %v3916_v54, %v3891_v50  ;;  %5013 = vmatprep.subr.bf16.mxu0 %v5012_v27  ;;  %v6169_v31 = vpop.permute.xlu1 %6168  ;;  %v6174_v57 = vpop.permute.xlu0 %6173  ;;  %vm7829_vm4 = vmmov %vm7826_vm2  ;;  %v6075_v15 = vunpack.i.l.bf16 %v7446_v18  ;;  %v6071_v19 = vunpack.i.h.bf16 %v7448_v53 }
 0x7a3   : > { %v5018_v40 = vpack.c.bf16 %v3914_v35, %v3889_v13  ;;  %v3915_v46 = vsel %vm7829_vm4, %v6165_v41, %v6166_v58  ;;  %5015 = vmatpush1.bf16.msra.mxu0 %v5014_v34  ;;  %v6171_v16 = vunpack.i.h.bf16 %v6169_v31  ;;  %v6170_v44 = vunpack.i.l.bf16 %v6169_v31 }
 0x7a4   : > { %v6176_v11 = vunpack.i.h.bf16 %v6174_v57  ;;  %v6175_v3 = vunpack.i.l.bf16 %v6174_v57  ;;  %v6070_v29 = vunpack.i.l.bf16 %v7448_v53  ;;  %v5016_v38 = vpack.c.bf16 %v3915_v46, %v3890_v30  ;;  %5063 = vmatpush1.bf16.msra.mxu1 %v5062_v39 }
 0x7a5   : > { %vm7830_vm5 = vcmask 154624   ;;  %vm7832_vm0 = vcmask 146432   ;;  %5064 = vmatprep.subr.bf16.mxu1 %v6271_v0  ;;  %vm7836_vm2 = vcmask 15360   ;;  %vm7838_vm6 = vcmask 7168  }
 0x7a6   : > { %v3941_v5 = vsel %vm7830_vm5, %v6171_v16, %v6061_v2  ;;  %vm7831_vm3 = vmmov %vm7830_vm5  ;;  %v3966_v4 = vsel %vm7832_vm0, %v6176_v11, %v6066_v61  ;;  %5017 = vmatprep.subr.bf16.mxu0 %v5016_v38  ;;  %v6179_v18 = vpop.permute.xlu1 %6178  ;;  %v6184_v52 = vpop.permute.xlu0 %6183  ;;  %v6086_v61 = vunpack.i.h.bf16 %v7450_v49  ;;  %v6081_v26 = vunpack.i.h.bf16 %v7452_v7 }
 0x7a7   : > { %v3939_v32 = vsel %vm7831_vm3, %v6060_v42, %v6170_v44  ;;  %vm7833_vm7 = vmmov %vm7832_vm0  ;;  %v5065_v55 = vpack.c.bf16 %v3966_v4, %v3941_v5  ;;  %5019 = vmatpush1.bf16.msra.mxu0 %v5018_v40  ;;  %v6181_v33 = vunpack.i.h.bf16 %v6179_v18  ;;  %v6180_v1 = vunpack.i.l.bf16 %v6179_v18 }
 0x7a8   : > { %v3964_v47 = vsel %vm7833_vm7, %v6065_v25, %v6175_v3  ;;  %vm7834_vm8 = vmmov %vm7831_vm3  ;;  %v6186_v20 = vunpack.i.h.bf16 %v6184_v52  ;;  %v6185_v45 = vunpack.i.l.bf16 %v6184_v52  ;;  %v6085_v25 = vunpack.i.l.bf16 %v7450_v49 }
 0x7a9   : > { %v5022_v37 = vpack.c.bf16 %v3964_v47, %v3939_v32  ;;  %v3940_v36 = vsel %vm7834_vm8, %v6170_v44, %v6171_v16  ;;  %vm7835_vm1 = vmmov %vm7832_vm0  ;;  %5066 = vmatpush1.bf16.msra.mxu1 %v5065_v55  ;;  %v3991_v60 = vsel %vm7836_vm2, %v6181_v33, %v6071_v19  ;;  %v6080_v41 = vunpack.i.l.bf16 %v7452_v7 }
 0x7aa   : > { %v3965_v53 = vsel %vm7835_vm1, %v6175_v3, %v6176_v11  ;;  %vm7837_vm9 = vmmov %vm7836_vm2  ;;  %v4016_v6 = vsel %vm7838_vm6, %v6186_v20, %v6076_v56  ;;  %5067 = vmatprep.subr.bf16.mxu1 %v6271_v0  ;;  %v6194_v22 = vpop.permute.xlu1 %6193  ;;  %v7528_v62 = vpop.permute.xlu0 %6188  ;;  %v6096_v27 = vunpack.i.h.bf16 %v7454_v14  ;;  %v6095_v50 = vunpack.i.l.bf16 %v7454_v14 }
 0x7ab   : > { %v5020_v48 = vpack.c.bf16 %v3965_v53, %v3940_v36  ;;  %v3989_v34 = vsel %vm7837_vm9, %v6070_v29, %v6180_v1  ;;  %vm7839_vm4 = vmmov %vm7838_vm6  ;;  %v5068_v59 = vpack.c.bf16 %v4016_v6, %v3991_v60  ;;  %v6196_v42 = vunpack.i.h.bf16 %v6194_v22 }
 0x7ac   : > { %v4014_v17 = vsel %vm7839_vm4, %v6075_v15, %v6185_v45  ;;  %vm7840_vm5 = vmmov %vm7836_vm2  ;;  %v6195_v56 = vunpack.i.l.bf16 %v6194_v22  ;;  %v6091_v13 = vunpack.i.h.bf16 %v7456_v63  ;;  %v6090_v35 = vunpack.i.l.bf16 %v7456_v63 }
 0x7ad   : > { %5021 = vmatprep.subr.bf16.mxu0 %v5020_v48  ;;  %v3990_v49 = vsel %vm7840_vm5, %v6180_v1, %v6181_v33  ;;  %vm7841_vm3 = vmmov %vm7839_vm4  ;;  %v5026_v2 = vpack.c.bf16 %v4014_v17, %v3989_v34  ;;  %5069 = vmatpush1.bf16.msra.mxu1 %v5068_v59  ;;  %vm7842_vm0 = vcmask 1039360   ;;  %v6106_v31 = vunpack.i.h.bf16 %v7458_v8 }
 0x7ae   : > { %v4015_v58 = vsel %vm7841_vm3, %v6185_v45, %v6186_v20  ;;  %5023 = vmatpush1.bf16.msra.mxu0 %v5022_v37  ;;  %v4045_v39 = vsel %vm7842_vm0, %v6080_v41, %v6195_v56  ;;  %vm7843_vm7 = vmmov %vm7842_vm0  ;;  %5070 = vmatprep.subr.bf16.mxu1 %v6271_v0  ;;  %v6199_v30 = vpop.permute.xlu1 %6198  ;;  %v6204_v46 = vpop.permute.xlu0 %6203  ;;  %v6105_v15 = vunpack.i.l.bf16 %v7458_v8  ;;  %v6101_v19 = vunpack.i.h.bf16 %v7460_v51 }
 0x7af   : > { %v5024_v54 = vpack.c.bf16 %v4015_v58, %v3990_v49  ;;  %v4047_v40 = vsel %vm7843_vm7, %v6196_v42, %v6081_v26  ;;  %vm7844_vm8 = vmmov %vm7842_vm0  ;;  %v5030_v57 = vpack.c.bf16 %v4045_v39, %v7371_v43  ;;  %v6201_v63 = vunpack.i.h.bf16 %v6199_v30 }
 0x7b0   : > { %v4046_v7 = vsel %vm7844_vm8, %v6195_v56, %v6196_v42  ;;  %v5071_v14 = vpack.c.bf16 %v4047_v40, %v7356_v10  ;;  %v6200_v44 = vunpack.i.l.bf16 %v6199_v30  ;;  %v6206_v11 = vunpack.i.h.bf16 %v6204_v46 }
 0x7b1   : > { %5025 = vmatprep.subr.bf16.mxu0 %v5024_v54  ;;  %v5028_v16 = vpack.c.bf16 %v4046_v7, %v7386_v12  ;;  %v6205_v3 = vunpack.i.l.bf16 %v6204_v46  ;;  %v6100_v29 = vunpack.i.l.bf16 %v7460_v51  ;;  %v6116_v43 = vunpack.i.h.bf16 %v7462_v9 }
 0x7b2   : > { %5027 = vmatpush1.bf16.msra.mxu0 %v5026_v2  ;;  %5072 = vmatpush1.bf16.msra.mxu1 %v5071_v14  ;;  %vm7845_vm1 = vcmask 1031168   ;;  %vm7847_vm9 = vcmask 900096   ;;  %v6209_v47 = vpop.permute.xlu1 %6208  ;;  %v6214_v55 = vpop.permute.xlu0 %6213  ;;  %v6115_v33 = vunpack.i.l.bf16 %v7462_v9  ;;  %v6111_v1 = vunpack.i.h.bf16 %v7464_v23 }
 0x7b3   : > { %5029 = vmatprep.subr.bf16.mxu0 %v5028_v16  ;;  %v4070_v10 = vsel %vm7845_vm1, %v6085_v25, %v6200_v44  ;;  %vm7846_vm2 = vmmov %vm7845_vm1  ;;  %v4095_v12 = vsel %vm7847_vm9, %v6090_v35, %v6205_v3  ;;  %5073 = vmatprep.subr.bf16.mxu1 %v6271_v0  ;;  %v6211_v18 = vunpack.i.h.bf16 %v6209_v47  ;;  %v6210_v52 = vunpack.i.l.bf16 %v6209_v47 }
 0x7b4   : > { %v4072_v38 = vsel %vm7846_vm2, %v6201_v63, %v6086_v61  ;;  %vm7848_vm6 = vmmov %vm7847_vm9  ;;  %v5034_v32 = vpack.c.bf16 %v4095_v12, %v4070_v10  ;;  %v6216_v36 = vunpack.i.h.bf16 %v6214_v55  ;;  %v6215_v53 = vunpack.i.l.bf16 %v6214_v55 }
 0x7b5   : > { %v4097_v5 = vsel %vm7848_vm6, %v6206_v11, %v6091_v13  ;;  %vm7849_vm4 = vmmov %vm7845_vm1  ;;  %v6110_v20 = vunpack.i.l.bf16 %v7464_v23  ;;  %vm7851_vm3 = vcmask 891904   ;;  %vm7853_vm7 = vcmask 883712  }
 0x7b6   : > { %v5074_v4 = vpack.c.bf16 %v4097_v5, %v4072_v38  ;;  %v4071_v51 = vsel %vm7849_vm4, %v6200_v44, %v6201_v63  ;;  %vm7850_vm5 = vmmov %vm7848_vm6  ;;  %5031 = vmatpush1.bf16.msra.mxu0 %v5030_v57  ;;  %v4120_v61 = vsel %vm7851_vm3, %v6095_v50, %v6210_v52  ;;  %v4145_v48 = vsel %vm7853_vm7, %v6100_v29, %v6215_v53  ;;  %v6219_v17 = vpop.permute.xlu1 %6218  ;;  %v6224_v26 = vpop.permute.xlu0 %6223 }
 0x7b7   : > { %v4096_v37 = vsel %vm7850_vm5, %v6205_v3, %v6206_v11  ;;  %vm7852_vm0 = vmmov %vm7851_vm3  ;;  %v5038_v34 = vpack.c.bf16 %v4145_v48, %v4120_v61  ;;  %v6221_v22 = vunpack.i.h.bf16 %v6219_v17  ;;  %v6220_v49 = vunpack.i.l.bf16 %v6219_v17 }
 0x7b8   : > { %v5032_v45 = vpack.c.bf16 %v4096_v37, %v4071_v51  ;;  %5075 = vmatpush1.bf16.msra.mxu1 %v5074_v4  ;;  %v4122_v25 = vsel %vm7852_vm0, %v6211_v18, %v6096_v27  ;;  %vm7854_vm8 = vmmov %vm7853_vm7  ;;  %v6226_v58 = vunpack.i.h.bf16 %v6224_v26  ;;  %v6225_v41 = vunpack.i.l.bf16 %v6224_v26 }
 0x7b9   : > { %v4147_v60 = vsel %vm7854_vm8, %v6216_v36, %v6101_v19  ;;  %5076 = vmatprep.subr.bf16.mxu1 %v6271_v0  ;;  %vm7855_vm1 = vmmov %vm7852_vm0  ;;  %v6126_v2 = vunpack.i.h.bf16 %v7466_v28  ;;  %v6121_v42 = vunpack.i.h.bf16 %v7468_v24  ;;  %v6120_v56 = vunpack.i.l.bf16 %v7468_v24 }
 0x7ba   : > { %v5077_v6 = vpack.c.bf16 %v4147_v60, %v4122_v25  ;;  %5033 = vmatprep.subr.bf16.mxu0 %v5032_v45  ;;  %v4121_v59 = vsel %vm7855_vm1, %v6210_v52, %v6211_v18  ;;  %vm7856_vm2 = vmmov %vm7853_vm7  ;;  %v4170_v50 = vsel %vm672_vm15, %v6105_v15, %v6220_v49  ;;  %v4172_v13 = vsel %vm672_vm15, %v6221_v22, %v6106_v31  ;;  %v6229_v7 = vpop.permute.xlu1 %6228  ;;  %v6234_v57 = vpop.permute.xlu0 %6233 }
 0x7bb   : > { %v4146_v23 = vsel %vm7856_vm2, %v6215_v53, %v6216_v36  ;;  %5035 = vmatpush1.bf16.msra.mxu0 %v5034_v32  ;;  %v4195_v54 = vsel %vm698_vm14, %v6110_v20, %v6225_v41  ;;  %v4197_v35 = vsel %vm698_vm14, %v6226_v58, %v6111_v1  ;;  %v4171_v24 = vsel %vm672_vm15, %v6220_v49, %v6221_v22 }
 0x7bc   : > { %v5036_v27 = vpack.c.bf16 %v4146_v23, %v4121_v59  ;;  %5078 = vmatpush1.bf16.msra.mxu1 %v5077_v6  ;;  %v5042_v39 = vpack.c.bf16 %v4195_v54, %v4170_v50  ;;  %v5080_v40 = vpack.c.bf16 %v4197_v35, %v4172_v13  ;;  %v4196_v14 = vsel %vm698_vm14, %v6225_v41, %v6226_v58 }
 0x7bd   : > { %5079 = vmatprep.subr.bf16.mxu1 %v6271_v0  ;;  %v6231_v30 = vunpack.i.h.bf16 %v6229_v7  ;;  %v6230_v8 = vunpack.i.l.bf16 %v6229_v7  ;;  %v6236_v46 = vunpack.i.h.bf16 %v6234_v57  ;;  %v6235_v31 = vunpack.i.l.bf16 %v6234_v57 }
 0x7be   : > { %5037 = vmatprep.subr.bf16.mxu0 %v5036_v27  ;;  %v6125_v16 = vunpack.i.l.bf16 %v7466_v28  ;;  %v6191_v63 = vunpack.i.h.bf16 %v7528_v62  ;;  %v6190_v44 = vunpack.i.l.bf16 %v7528_v62  ;;  %v5040_v11 = vpack.c.bf16 %v4196_v14, %v4171_v24  ;;  %v6239_v38 = vpop.permute.xlu1 %6238  ;;  %v6244_v12 = vpop.permute.xlu0 %6243 }
 0x7bf   : > { %5039 = vmatpush1.bf16.msra.mxu0 %v5038_v34  ;;  %v4220_v3 = vsel %vm724_vm12, %v6115_v33, %v6230_v8  ;;  %v4222_v15 = vsel %vm724_vm12, %v6231_v30, %v6116_v43  ;;  %v4245_v19 = vsel %vm750_vm13, %v6120_v56, %v6235_v31  ;;  %v4247_v29 = vsel %vm750_vm13, %v6236_v46, %v6121_v42 }
 0x7c0   : > { %5081 = vmatpush1.bf16.msra.mxu1 %v5080_v40  ;;  %v5046_v10 = vpack.c.bf16 %v4245_v19, %v4220_v3  ;;  %v5083_v28 = vpack.c.bf16 %v4247_v29, %v4222_v15  ;;  %5041 = vmatprep.subr.bf16.mxu0 %v5040_v11  ;;  %v4221_v62 = vsel %vm724_vm12, %v6230_v8, %v6231_v30  ;;  %v6241_v32 = vunpack.i.h.bf16 %v6239_v38 }
 0x7c1   : > { %5082 = vmatprep.subr.bf16.mxu1 %v6271_v0  ;;  %v4246_v5 = vsel %vm750_vm13, %v6235_v31, %v6236_v46  ;;  %v6240_v9 = vunpack.i.l.bf16 %v6239_v38  ;;  %v6246_v4 = vunpack.i.h.bf16 %v6244_v12  ;;  %v6245_v43 = vunpack.i.l.bf16 %v6244_v12 }
 0x7c2   : > { %v5044_v47 = vpack.c.bf16 %v4246_v5, %v4221_v62  ;;  %v4272_v51 = vsel %vm776_vm11, %v6241_v32, %v6126_v2  ;;  %v4315_v36 = vpop.permute.xlu1 %4314  ;;  %v4317_v53 = vpop.permute.xlu0 %4316  ;;  %vm7857_vm12 = vcmask 703488  }
 0x7c3   : > { %5043 = vmatpush1.bf16.msra.mxu0 %v5042_v39  ;;  %v4270_v55 = vsel %vm776_vm11, %v6125_v16, %v6240_v9  ;;  %v4295_v37 = vsel %vm802_vm10, %v6190_v44, %v6245_v43  ;;  %v4297_v18 = vsel %vm802_vm10, %v6246_v4, %v6191_v63  ;;  %v4271_v33 = vsel %vm776_vm11, %v6240_v9, %v6241_v32  ;;  %vm7858_vm13 = vmmov %vm7857_vm12 }
 0x7c4   : > { %5084 = vmatpush1.bf16.msra.mxu1 %v5083_v28  ;;  %v5086_v52 = vpack.c.bf16 %v4297_v18, %v4272_v51  ;;  %5045 = vmatprep.subr.bf16.mxu0 %v5044_v47  ;;  %v4296_v1 = vsel %vm802_vm10, %v6245_v43, %v6246_v4  ;;  %v5050_v20 = vpack.c.bf16 %v4295_v37, %v4270_v55  ;;  %vm7859_vm11 = vmmov %vm7857_vm12 }
 0x7c5   : > { %5085 = vmatprep.subr.bf16.mxu1 %v6271_v0  ;;  %v5048_v45 = vpack.c.bf16 %v4296_v1, %v4271_v33  ;;  %v4658_v0 = vld [vmem:[%s7612_s1 + $0x40] sm:$0xff]  ;;  %v4321_v60 = vsel %vm7858_vm13, %v4315_v36, %v4317_v53 }
 0x7c6   : > { %v4313_v61 = vpop.permute.xlu1 %4312  ;;  %v4319_v25 = vpop.permute.xlu0 %4318 }
 0x7c7   : > { %5047 = vmatpush1.bf16.msra.mxu0 %v5046_v10  ;;  %v4322_v48 = vsel %vm7857_vm12, %v4317_v53, %v4319_v25  ;;  %v4320_v34 = vsel %vm7859_vm11, %v4313_v61, %v4315_v36 }
 0x7c8   : > { %5087 = vmatpush1.bf16.msra.mxu1 %v5086_v52  ;;  %5049 = vmatprep.subr.bf16.mxu0 %v5048_v45 }
 0x7c9   : > { %4536 = vmatprep.subr.mxu1 %v6297_v21 }
 0x7cb   : > { %5051 = vmatpush1.bf16.msra.mxu0 %v5050_v20 }
 0x7cc   : > { %4465 = vmatprep.subr.mxu0 %v4321_v60  ;;  %4537 = vmatpush1.msra.mxu1 %v4322_v48 }
 0x7cd   : > { %4553 = vmatmul.mubr.f32.vlgmr.msra.gmra.mrb[8].mxu1 %v4658_v0 }
 0x7cf   : > { %4466 = vmatpush1.msra.mxu0 %v4320_v34 }
 0x7d0   : > { %4482 = vmatmul.mubr.f32.vlgmr.msra.gmra.mrb[8].mxu0 %v4658_v0 }
 0x7d7   : > { %v4412_v6 = vpop.permute.xlu1 %4411 }
 0x8a0   : > { %v4554_v21 = vpop.f32.mrb[8].mxu1 }
 0x8a1   : > { %v4555_v17 = vadd.f32 %v4554_v21, %v4412_v6  ;;  %v4556_v26 = vpop.f32.mrb[9].mxu1 }
 0x8a3   : > { %v4665_v59 = vmul.f32 -1.442695, %v4555_v17  ;;  %v4483_v23 = vpop.f32.mrb[8].mxu0 }
 0x8a4   : > { %v4484_v22 = vadd.f32 %v4483_v23, %v4412_v6  ;;  %v4485_v49 = vpop.f32.mrb[9].mxu0 }
 0x8a5   : > { %6247 = vpow2.f32 %v4665_v59  ;;  %v4486_v58 = vadd.f32 %v4485_v49, %v4412_v6 }
 0x8a6   : > { %v4663_v41 = vmul.f32 -1.442695, %v4484_v22 }
 0x8a7   : > { %v4664_v2 = vmul.f32 -1.442695, %v4486_v58 }
 0x8a8   : > { %6249 = vpow2.f32 %v4663_v41 }
 0x8a9   : > { %6251 = vpow2.f32 %v4664_v2 }
 0x8af   : > { %v6248_v42 = vpop.eup %6247 }
 0x8b0   : > { %v4569_v56 = vadd.f32 1.0, %v6248_v42 }
 0x8b2   : > { %v6250_v27 = vpop.eup %6249  ;;  %6253 = vrcp.f32 %v4569_v56 }
 0x8b3   : > { %v6252_v50 = vpop.eup %6251  ;;  %v4567_v13 = vadd.f32 1.0, %v6250_v27 }
 0x8b4   : > { %v4568_v54 = vadd.f32 1.0, %v6252_v50 }
 0x8b5   : > { %6255 = vrcp.f32 %v4567_v13 }
 0x8b6   : > { %6257 = vrcp.f32 %v4568_v54 }
 0x8bc   : > { %v6254_v35 = vpop.eup %6253 }
 0x8bd   : > { %4578 = vst [vmem:[%s197_s12 + $0x10] sm:$0xff] %v6254_v35 }
 0x8bf   : > { %v6256_v39 = vpop.eup %6255 }
 0x8c0   : > { %v6258_v40 = vpop.eup %6257  ;;  %4576 = vst [vmem:[%s197_s12] sm:$0xff] %v6256_v39 }
 0x8c1   : > { %4577 = vst [vmem:[%s197_s12 + $0x8] sm:$0xff] %v6258_v40 }
 0x8c2 PF: > { %s14_s15 = sadd.s32 1, %s6269_s15  }
 0x8c3   : > { %p11_p4 = scmp.ge.s32.totalorder %s14_s15, 4  }
 0x8c5   :  { %13 = sbr.rel (!%p11_p4) target bundleno = 1 (0x1), region = 74 }

</bundles_post_ra>
